<compile_context>
chip_gen: v7x
topology: tpu7x:2x2x1
jax: 0.10.0
libtpu: 0.0.40
codegen_flags: <defaults>
</compile_context>

<pallas_src>
import functools

import jax
import jax.numpy as jnp
from jax import lax
from jax.experimental import pallas as pl
from jax.experimental.pallas import tpu as pltpu


# ------------------------------ Pallas kernel -------------------------------

def _fused_attention_super_kernel(x_ref, wqkv_ref, wproj_ref, bproj_ref,
                                  rpk_ref, rpv_ref, o_ref,
                                  *, batch_block, seq_len, num_heads, scale):
    """qkv-proj + rel-pos attention + out-proj for a block of `batch_block` batches.

    x_ref:     (1, Bb*N, C) f32     wqkv_ref: (C, 3C) bf16    wproj_ref: (C, C) bf16
    bproj_ref: (1, C) f32           rpk_ref / rpv_ref: (N, N, hd) bf16
    o_ref:     (1, Bb*N, C) f32
    """
    Bb, N, H = batch_block, seq_len, num_heads
    C = x_ref.shape[2]
    hd = C // H
    f32 = jnp.float32
    bf16 = jnp.bfloat16

    # Batch-fused qkv projection: (Bb*N, C) @ (C, 3C) on the MXU, f32 accumulation.
    x = x_ref[0].astype(bf16)
    qkv = jnp.dot(x, wqkv_ref[...], preferred_element_type=f32)            # (Bb*N, 3C)

    y_parts = []
    for b in range(Bb):                       # Bb is 1 or 2 (static, tiny)
        a = qkv[b * N:(b + 1) * N, :]         # (N, 3C) activation of this batch element

        # Per-head slices (each consumed once). q is pre-scaled once so `scale`
        # applies to both the q.k^T term and the rel-pos K term, as in the module.
        q_heads = [a[:, h * hd:(h + 1) * hd] * scale for h in range(H)]         # (N, hd)
        k_heads = [a[:, C + h * hd:C + (h + 1) * hd] for h in range(H)]
        v_heads = [a[:, 2 * C + h * hd:2 * C + (h + 1) * hd] for h in range(H)]

        # Head-batched relative-position K term: one n-batched dot with an H-row LHS
        # per token instead of H degenerate 1-row matmuls.
        q_n = jnp.stack(q_heads, axis=1).astype(bf16)                           # (N, H, hd)
        rel_k = lax.dot_general(q_n, rpk_ref[...],
                                (((2,), (2,)), ((0,), (0,))),
                                preferred_element_type=f32)                     # (N, H, N)

        # Short static head loop; per-iteration live values are small now that
        # rpk/rpv are no longer held across it.
        p_heads, denoms, outs = [], [], []
        for h in range(H):
            s = lax.dot_general(q_heads[h].astype(bf16), k_heads[h].astype(bf16),
                                (((1,), (1,)), ((), ())),
                                preferred_element_type=f32)                     # (N, N)
            s = s + rel_k[:, h, :]
            s = s - jnp.max(s, axis=-1, keepdims=True)
            p = jnp.exp(s)                                                      # unnormalized
            denoms.append(jnp.sum(p, axis=-1, keepdims=True))                   # (N, 1)
            p_heads.append(p)
            outs.append(jnp.dot(p.astype(bf16), v_heads[h].astype(bf16),
                                preferred_element_type=f32))                    # (N, hd)

        # Head-batched relative-position V term (same n-batched trick).
        p_n = jnp.stack(p_heads, axis=1).astype(bf16)                           # (N, H, N)
        rel_v = lax.dot_general(p_n, rpv_ref[...],
                                (((2,), (1,)), ((0,), (0,))),
                                preferred_element_type=f32)                     # (N, H, hd)

        # Deferred softmax normalization (both attn@v and rel_v are linear in p);
        # exact divide to avoid the approx-reciprocal numerics concern.
        y_parts.append(jnp.concatenate(
            [(outs[h] + rel_v[:, h, :]) / denoms[h] for h in range(H)],
            axis=-1))                                                           # (N, C)

    y = y_parts[0] if Bb == 1 else jnp.concatenate(y_parts, axis=0)             # (Bb*N, C)

    # Output projection + bias, written lane-dense for the whole batch block.
    # TODO(synk): attn_drop / proj_drop are identity (p=0.0, eval semantics).
    o_ref[0] = (jnp.dot(y.astype(bf16), wproj_ref[...],
                        preferred_element_type=f32) + bproj_ref[...])


# ------------------------------ JAX wrappers ---------------------------------

def relative_position_2d(table_v, table_h, length_q, length_k, max_rel):
    """RelativePosition2D_super.forward — pure index/gather glue (plain JAX)."""
    lq = length_q - 1
    lk = length_k - 1
    s = int(round(lq ** 0.5))
    assert s * s == lq, "RelativePosition2D_super assumes (N-1) is a perfect square"
    rq = jnp.arange(lq)
    rk = jnp.arange(lk)
    dist_v = rk[None, :] // s - rq[:, None] // s
    dist_h = rk[None, :] % s - rq[:, None] % s
    fin_v = jnp.clip(dist_v, -max_rel, max_rel) + max_rel + 1
    fin_h = jnp.clip(dist_h, -max_rel, max_rel) + max_rel + 1
    fin_v = jnp.pad(fin_v, ((1, 0), (1, 0)), constant_values=0)
    fin_h = jnp.pad(fin_h, ((1, 0), (1, 0)), constant_values=0)
    return table_v[fin_v] + table_h[fin_h]                       # (N, N, head_dim)


def _batch_grid_size(batch):
    """2 'parallel' grid steps on 2-TensorCore chips (v7x) when the batch splits
    evenly; a single batch-fused step on single-TC chips (v5e / v6e)."""
    kind = ""
    try:
        kind = jax.devices()[0].device_kind.lower()
    except Exception:
        pass
    if batch % 2 == 0 and "v7" in kind:
        return 2
    # TODO(synk): for B == 1 on v7x a further "parallel" split over heads/query rows
    # would be needed to occupy both TensorCores.
    return 1


def attention_super_forward(x, params, num_heads, max_rel):
    B, N, C = x.shape
    H = num_heads
    hd = C // H
    # change_qkv=False path: sample_scale = (sample_in_embed_dim // num_heads) ** -0.5
    scale = float(hd) ** -0.5

    # Relative-position embeddings (index/gather glue stays in XLA); bf16 halves the
    # VMEM/DMA footprint of the lane-padded (N, N, hd) tensors.
    rpk = relative_position_2d(params["rel_k_v"], params["rel_k_h"], N, N, max_rel)
    rpv = relative_position_2d(params["rel_v_v"], params["rel_v_h"], N, N, max_rel)
    rpk = rpk.astype(jnp.bfloat16)
    rpv = rpv.astype(jnp.bfloat16)
    wqkv = params["w_qkv"].astype(jnp.bfloat16)       # MXU operands in bf16, f32 accum
    wproj = params["w_proj"].astype(jnp.bfloat16)
    bproj = params["b_proj"].astype(jnp.float32)

    gb = _batch_grid_size(B)
    bb = B // gb
    x3 = x.reshape(gb, bb * N, C)            # free row-major regroup, no data movement

    kernel = functools.partial(_fused_attention_super_kernel,
                               batch_block=bb, seq_len=N, num_heads=H, scale=scale)
    const2 = lambda g: (0, 0)
    const3 = lambda g: (0, 0, 0)
    out = pl.pallas_call(
        kernel,
        out_shape=jax.ShapeDtypeStruct((gb, bb * N, C), jnp.float32),
        grid=(gb,),
        in_specs=[
            pl.BlockSpec((1, bb * N, C), lambda g: (g, 0, 0)),    # x, per-grid block
            pl.BlockSpec((C, 3 * C), const2),                     # w_qkv  (resident)
            pl.BlockSpec((C, C), const2),                         # w_proj (resident)
            pl.BlockSpec((1, C), const2),                         # b_proj (resident)
            pl.BlockSpec((N, N, hd), const3),                     # rel-pos K (resident)
            pl.BlockSpec((N, N, hd), const3),                     # rel-pos V (resident)
        ],
        out_specs=pl.BlockSpec((1, bb * N, C), lambda g: (g, 0, 0)),
        compiler_params=pltpu.CompilerParams(
            dimension_semantics=("parallel",),
        ),
    )(x3, wqkv, wproj, bproj, rpk, rpv)
    return out.reshape(B, N, C)


# ------------------------------ f32 reference ---------------------------------

def attention_super_reference(x, params, num_heads, max_rel):
    """Pure-JAX (f32) mirror of AttentionSuper.forward, for validation."""
    B, N, C = x.shape
    H = num_heads
    hd = C // H
    scale = float(hd) ** -0.5
    rpk = relative_position_2d(params["rel_k_v"], params["rel_k_h"], N, N, max_rel)
    rpv = relative_position_2d(params["rel_v_v"], params["rel_v_h"], N, N, max_rel)
    qkv = (x @ params["w_qkv"]).reshape(B, N, 3, H, hd).transpose(2, 0, 3, 1, 4)
    q, k, v = qkv[0], qkv[1], qkv[2]                              # (B, H, N, hd)
    attn = jnp.einsum("bhqd,bhkd->bhqk", q, k) * scale
    attn = attn + jnp.einsum("bhqd,qkd->bhqk", q, rpk) * scale
    attn = jax.nn.softmax(attn, axis=-1)
    out = jnp.einsum("bhqk,bhkd->bhqd", attn, v)
    out = out + jnp.einsum("bhqk,qkd->bhqd", attn, rpv)
    out = out.transpose(0, 2, 1, 3).reshape(B, N, C)
    return out @ params["w_proj"] + params["b_proj"]


# ---------------------------------- main -------------------------------------

if __name__ == "__main__":
    B = 2
    num_heads = 4
    C = 64                    # super_embed_dim
    hd = C // num_heads       # 16
    S = 4
    N = S * S + 1             # 17 tokens (1 cls + 4x4 patches); (N-1) is a perfect square
    max_rel = 14

    key = jax.random.PRNGKey(0)
    ks = jax.random.split(key, 8)

    x = jax.random.normal(ks[0], (B, N, C), jnp.float32)

    # Deterministic synthetic parameters (trunc_normal std=0.02 approximated by
    # scaled normals; exact checkpoint values are irrelevant for this kernel).
    params = {
        "w_qkv": jax.random.normal(ks[1], (C, 3 * C), jnp.float32) * 0.02,
        "w_proj": jax.random.normal(ks[2], (C, C), jnp.float32) * 0.02,
        "b_proj": jax.random.normal(ks[3], (1, C), jnp.float32) * 0.02,
        "rel_k_v": jax.random.normal(ks[4], (2 * max_rel + 2, hd), jnp.float32) * 0.02,
        "rel_k_h": jax.random.normal(ks[5], (2 * max_rel + 2, hd), jnp.float32) * 0.02,
        "rel_v_v": jax.random.normal(ks[6], (2 * max_rel + 2, hd), jnp.float32) * 0.02,
        "rel_v_h": jax.random.normal(ks[7], (2 * max_rel + 2, hd), jnp.float32) * 0.02,
    }

    out = attention_super_forward(x, params, num_heads, max_rel)
    jax.block_until_ready(out)
    assert out.shape == (B, N, C)

    # Loose tolerance: bf16 MXU operands (f32 accumulation) vs the f32 reference.
    ref = attention_super_reference(x, params, num_heads, max_rel)
    max_err = float(jnp.max(jnp.abs(out - ref)))
    assert max_err < 5e-3, f"kernel mismatch vs reference: max_err={max_err}"

    print("KERNEL_OK")
</pallas_src>

<mosaic_0001>
module attributes {stable_mosaic.version = 11 : i64} {
  func.func @_fused_attention_super_kernel(%arg0: i32, %arg1: memref<1x34x64xf32, #tpu.memory_space<vmem>>, %arg2: memref<64x192xbf16, #tpu.memory_space<vmem>>, %arg3: memref<64x64xbf16, #tpu.memory_space<vmem>>, %arg4: memref<1x64xf32, #tpu.memory_space<vmem>>, %arg5: memref<17x17x16xbf16, #tpu.memory_space<vmem>>, %arg6: memref<17x17x16xbf16, #tpu.memory_space<vmem>>, %arg7: memref<1x34x64xf32, #tpu.memory_space<vmem>>) attributes {dimension_semantics = [#tpu.dimension_semantics<parallel>], iteration_bounds = array<i64: 1>, scalar_prefetch = 0 : i64, scratch_operands = 0 : i64, tpu.core_type = #tpu.core_type<tc>, window_params = [{transform_indices = @transform_0, window_bounds = array<i64: 1, 34, 64>}, {pipeline_mode = #tpu.pipeline_mode<synchronous>, transform_indices = @transform_1, window_bounds = array<i64: 64, 192>}, {pipeline_mode = #tpu.pipeline_mode<synchronous>, transform_indices = @transform_2, window_bounds = array<i64: 64, 64>}, {pipeline_mode = #tpu.pipeline_mode<synchronous>, transform_indices = @transform_3, window_bounds = array<i64: 1, 64>}, {pipeline_mode = #tpu.pipeline_mode<synchronous>, transform_indices = @transform_4, window_bounds = array<i64: 17, 17, 16>}, {pipeline_mode = #tpu.pipeline_mode<synchronous>, transform_indices = @transform_5, window_bounds = array<i64: 17, 17, 16>}, {transform_indices = @transform_6, window_bounds = array<i64: 1, 34, 64>}]} {
    %c0 = arith.constant 0 : index
    %c0_0 = arith.constant 0 : index
    %c0_1 = arith.constant 0 : index
    %0 = vector.load %arg1[%c0, %c0_0, %c0_1] : memref<1x34x64xf32, #tpu.memory_space<vmem>>, vector<1x34x64xf32>
    %1 = vector.shape_cast %0 : vector<1x34x64xf32> to vector<34x64xf32>
    %2 = arith.truncf %1 : vector<34x64xf32> to vector<34x64xbf16>
    %c0_2 = arith.constant 0 : index
    %c0_3 = arith.constant 0 : index
    %3 = vector.load %arg2[%c0_2, %c0_3] : memref<64x192xbf16, #tpu.memory_space<vmem>>, vector<64x192xbf16>
    %cst = arith.constant dense<0.000000e+00> : vector<34x192xf32>
    %4 = tpu.matmul %2, %3, %cst {dimension_numbers = #tpu.dot_dimension_numbers<[1], [0], [0], [1], [0, 0, 1, 1], [], []>} : vector<34x64xbf16>, vector<64x192xbf16>, vector<34x192xf32> -> vector<34x192xf32>
    %5 = vector.extract_strided_slice %4 {offsets = [0, 0], sizes = [17, 192], strides = [1, 1]} : vector<34x192xf32> to vector<17x192xf32>
    %6 = vector.extract_strided_slice %5 {offsets = [0, 0], sizes = [17, 16], strides = [1, 1]} : vector<17x192xf32> to vector<17x16xf32>
    %cst_4 = arith.constant 2.500000e-01 : f32
    %7 = vector.broadcast %cst_4 : f32 to vector<17x16xf32>
    %8 = arith.mulf %6, %7 : vector<17x16xf32>
    %9 = vector.extract_strided_slice %5 {offsets = [0, 16], sizes = [17, 16], strides = [1, 1]} : vector<17x192xf32> to vector<17x16xf32>
    %cst_5 = arith.constant 2.500000e-01 : f32
    %10 = vector.broadcast %cst_5 : f32 to vector<17x16xf32>
    %11 = arith.mulf %9, %10 : vector<17x16xf32>
    %12 = vector.extract_strided_slice %5 {offsets = [0, 32], sizes = [17, 16], strides = [1, 1]} : vector<17x192xf32> to vector<17x16xf32>
    %cst_6 = arith.constant 2.500000e-01 : f32
    %13 = vector.broadcast %cst_6 : f32 to vector<17x16xf32>
    %14 = arith.mulf %12, %13 : vector<17x16xf32>
    %15 = vector.extract_strided_slice %5 {offsets = [0, 48], sizes = [17, 16], strides = [1, 1]} : vector<17x192xf32> to vector<17x16xf32>
    %cst_7 = arith.constant 2.500000e-01 : f32
    %16 = vector.broadcast %cst_7 : f32 to vector<17x16xf32>
    %17 = arith.mulf %15, %16 : vector<17x16xf32>
    %18 = vector.extract_strided_slice %5 {offsets = [0, 64], sizes = [17, 16], strides = [1, 1]} : vector<17x192xf32> to vector<17x16xf32>
    %19 = vector.extract_strided_slice %5 {offsets = [0, 80], sizes = [17, 16], strides = [1, 1]} : vector<17x192xf32> to vector<17x16xf32>
    %20 = vector.extract_strided_slice %5 {offsets = [0, 96], sizes = [17, 16], strides = [1, 1]} : vector<17x192xf32> to vector<17x16xf32>
    %21 = vector.extract_strided_slice %5 {offsets = [0, 112], sizes = [17, 16], strides = [1, 1]} : vector<17x192xf32> to vector<17x16xf32>
    %22 = vector.extract_strided_slice %5 {offsets = [0, 128], sizes = [17, 16], strides = [1, 1]} : vector<17x192xf32> to vector<17x16xf32>
    %23 = vector.extract_strided_slice %5 {offsets = [0, 144], sizes = [17, 16], strides = [1, 1]} : vector<17x192xf32> to vector<17x16xf32>
    %24 = vector.extract_strided_slice %5 {offsets = [0, 160], sizes = [17, 16], strides = [1, 1]} : vector<17x192xf32> to vector<17x16xf32>
    %25 = vector.extract_strided_slice %5 {offsets = [0, 176], sizes = [17, 16], strides = [1, 1]} : vector<17x192xf32> to vector<17x16xf32>
    %26 = vector.shape_cast %8 : vector<17x16xf32> to vector<17x1x16xf32>
    %27 = vector.shape_cast %11 : vector<17x16xf32> to vector<17x1x16xf32>
    %28 = vector.shape_cast %14 : vector<17x16xf32> to vector<17x1x16xf32>
    %29 = vector.shape_cast %17 : vector<17x16xf32> to vector<17x1x16xf32>
    %30 = tpu.concatenate %26, %27, %28, %29 in 1 : vector<17x1x16xf32>, vector<17x1x16xf32>, vector<17x1x16xf32>, vector<17x1x16xf32> -> vector<17x4x16xf32>
    %31 = arith.truncf %30 : vector<17x4x16xf32> to vector<17x4x16xbf16>
    %c0_8 = arith.constant 0 : index
    %c0_9 = arith.constant 0 : index
    %c0_10 = arith.constant 0 : index
    %32 = vector.load %arg5[%c0_8, %c0_9, %c0_10] : memref<17x17x16xbf16, #tpu.memory_space<vmem>>, vector<17x17x16xbf16>
    %cst_11 = arith.constant dense<0.000000e+00> : vector<17x4x17xf32>
    %33 = tpu.matmul %31, %32, %cst_11 {dimension_numbers = #tpu.dot_dimension_numbers<[2], [2], [1], [1], [0, 0, 0, 1, 1, 1], [0], [0]>} : vector<17x4x16xbf16>, vector<17x17x16xbf16>, vector<17x4x17xf32> -> vector<17x4x17xf32>
    %34 = arith.truncf %8 : vector<17x16xf32> to vector<17x16xbf16>
    %35 = arith.truncf %18 : vector<17x16xf32> to vector<17x16xbf16>
    %cst_12 = arith.constant dense<0.000000e+00> : vector<17x17xf32>
    %36 = tpu.matmul %34, %35, %cst_12 {dimension_numbers = #tpu.dot_dimension_numbers<[1], [1], [0], [0], [0, 0, 1, 0], [], []>} : vector<17x16xbf16>, vector<17x16xbf16>, vector<17x17xf32> -> vector<17x17xf32>
    %37 = vector.extract_strided_slice %33 {offsets = [0, 0, 0], sizes = [17, 1, 17], strides = [1, 1, 1]} : vector<17x4x17xf32> to vector<17x1x17xf32>
    %38 = vector.shape_cast %37 : vector<17x1x17xf32> to vector<17x17xf32>
    %39 = arith.addf %36, %38 : vector<17x17xf32>
    %cst_13 = arith.constant dense<0xFF800000> : vector<17xf32>
    %40 = vector.multi_reduction <maximumf>, %39, %cst_13 [1] : vector<17x17xf32> to vector<17xf32>
    %41 = vector.shape_cast %40 : vector<17xf32> to vector<17x1xf32>
    %42 = vector.broadcast %41 : vector<17x1xf32> to vector<17x17xf32>
    %43 = arith.subf %39, %42 : vector<17x17xf32>
    %44 = math.exp %43 : vector<17x17xf32>
    %cst_14 = arith.constant dense<0.000000e+00> : vector<17xf32>
    %45 = vector.multi_reduction <add>, %44, %cst_14 [1] : vector<17x17xf32> to vector<17xf32>
    %46 = vector.shape_cast %45 : vector<17xf32> to vector<17x1xf32>
    %47 = arith.truncf %44 : vector<17x17xf32> to vector<17x17xbf16>
    %48 = arith.truncf %22 : vector<17x16xf32> to vector<17x16xbf16>
    %cst_15 = arith.constant dense<0.000000e+00> : vector<17x16xf32>
    %49 = tpu.matmul %47, %48, %cst_15 {dimension_numbers = #tpu.dot_dimension_numbers<[1], [0], [0], [1], [0, 0, 1, 1], [], []>} : vector<17x17xbf16>, vector<17x16xbf16>, vector<17x16xf32> -> vector<17x16xf32>
    %50 = arith.truncf %11 : vector<17x16xf32> to vector<17x16xbf16>
    %51 = arith.truncf %19 : vector<17x16xf32> to vector<17x16xbf16>
    %cst_16 = arith.constant dense<0.000000e+00> : vector<17x17xf32>
    %52 = tpu.matmul %50, %51, %cst_16 {dimension_numbers = #tpu.dot_dimension_numbers<[1], [1], [0], [0], [0, 0, 1, 0], [], []>} : vector<17x16xbf16>, vector<17x16xbf16>, vector<17x17xf32> -> vector<17x17xf32>
    %53 = vector.extract_strided_slice %33 {offsets = [0, 1, 0], sizes = [17, 1, 17], strides = [1, 1, 1]} : vector<17x4x17xf32> to vector<17x1x17xf32>
    %54 = vector.shape_cast %53 : vector<17x1x17xf32> to vector<17x17xf32>
    %55 = arith.addf %52, %54 : vector<17x17xf32>
    %cst_17 = arith.constant dense<0xFF800000> : vector<17xf32>
    %56 = vector.multi_reduction <maximumf>, %55, %cst_17 [1] : vector<17x17xf32> to vector<17xf32>
    %57 = vector.shape_cast %56 : vector<17xf32> to vector<17x1xf32>
    %58 = vector.broadcast %57 : vector<17x1xf32> to vector<17x17xf32>
    %59 = arith.subf %55, %58 : vector<17x17xf32>
    %60 = math.exp %59 : vector<17x17xf32>
    %cst_18 = arith.constant dense<0.000000e+00> : vector<17xf32>
    %61 = vector.multi_reduction <add>, %60, %cst_18 [1] : vector<17x17xf32> to vector<17xf32>
    %62 = vector.shape_cast %61 : vector<17xf32> to vector<17x1xf32>
    %63 = arith.truncf %60 : vector<17x17xf32> to vector<17x17xbf16>
    %64 = arith.truncf %23 : vector<17x16xf32> to vector<17x16xbf16>
    %cst_19 = arith.constant dense<0.000000e+00> : vector<17x16xf32>
    %65 = tpu.matmul %63, %64, %cst_19 {dimension_numbers = #tpu.dot_dimension_numbers<[1], [0], [0], [1], [0, 0, 1, 1], [], []>} : vector<17x17xbf16>, vector<17x16xbf16>, vector<17x16xf32> -> vector<17x16xf32>
    %66 = arith.truncf %14 : vector<17x16xf32> to vector<17x16xbf16>
    %67 = arith.truncf %20 : vector<17x16xf32> to vector<17x16xbf16>
    %cst_20 = arith.constant dense<0.000000e+00> : vector<17x17xf32>
    %68 = tpu.matmul %66, %67, %cst_20 {dimension_numbers = #tpu.dot_dimension_numbers<[1], [1], [0], [0], [0, 0, 1, 0], [], []>} : vector<17x16xbf16>, vector<17x16xbf16>, vector<17x17xf32> -> vector<17x17xf32>
    %69 = vector.extract_strided_slice %33 {offsets = [0, 2, 0], sizes = [17, 1, 17], strides = [1, 1, 1]} : vector<17x4x17xf32> to vector<17x1x17xf32>
    %70 = vector.shape_cast %69 : vector<17x1x17xf32> to vector<17x17xf32>
    %71 = arith.addf %68, %70 : vector<17x17xf32>
    %cst_21 = arith.constant dense<0xFF800000> : vector<17xf32>
    %72 = vector.multi_reduction <maximumf>, %71, %cst_21 [1] : vector<17x17xf32> to vector<17xf32>
    %73 = vector.shape_cast %72 : vector<17xf32> to vector<17x1xf32>
    %74 = vector.broadcast %73 : vector<17x1xf32> to vector<17x17xf32>
    %75 = arith.subf %71, %74 : vector<17x17xf32>
    %76 = math.exp %75 : vector<17x17xf32>
    %cst_22 = arith.constant dense<0.000000e+00> : vector<17xf32>
    %77 = vector.multi_reduction <add>, %76, %cst_22 [1] : vector<17x17xf32> to vector<17xf32>
    %78 = vector.shape_cast %77 : vector<17xf32> to vector<17x1xf32>
    %79 = arith.truncf %76 : vector<17x17xf32> to vector<17x17xbf16>
    %80 = arith.truncf %24 : vector<17x16xf32> to vector<17x16xbf16>
    %cst_23 = arith.constant dense<0.000000e+00> : vector<17x16xf32>
    %81 = tpu.matmul %79, %80, %cst_23 {dimension_numbers = #tpu.dot_dimension_numbers<[1], [0], [0], [1], [0, 0, 1, 1], [], []>} : vector<17x17xbf16>, vector<17x16xbf16>, vector<17x16xf32> -> vector<17x16xf32>
    %82 = arith.truncf %17 : vector<17x16xf32> to vector<17x16xbf16>
    %83 = arith.truncf %21 : vector<17x16xf32> to vector<17x16xbf16>
    %cst_24 = arith.constant dense<0.000000e+00> : vector<17x17xf32>
    %84 = tpu.matmul %82, %83, %cst_24 {dimension_numbers = #tpu.dot_dimension_numbers<[1], [1], [0], [0], [0, 0, 1, 0], [], []>} : vector<17x16xbf16>, vector<17x16xbf16>, vector<17x17xf32> -> vector<17x17xf32>
    %85 = vector.extract_strided_slice %33 {offsets = [0, 3, 0], sizes = [17, 1, 17], strides = [1, 1, 1]} : vector<17x4x17xf32> to vector<17x1x17xf32>
    %86 = vector.shape_cast %85 : vector<17x1x17xf32> to vector<17x17xf32>
    %87 = arith.addf %84, %86 : vector<17x17xf32>
    %cst_25 = arith.constant dense<0xFF800000> : vector<17xf32>
    %88 = vector.multi_reduction <maximumf>, %87, %cst_25 [1] : vector<17x17xf32> to vector<17xf32>
    %89 = vector.shape_cast %88 : vector<17xf32> to vector<17x1xf32>
    %90 = vector.broadcast %89 : vector<17x1xf32> to vector<17x17xf32>
    %91 = arith.subf %87, %90 : vector<17x17xf32>
    %92 = math.exp %91 : vector<17x17xf32>
    %cst_26 = arith.constant dense<0.000000e+00> : vector<17xf32>
    %93 = vector.multi_reduction <add>, %92, %cst_26 [1] : vector<17x17xf32> to vector<17xf32>
    %94 = vector.shape_cast %93 : vector<17xf32> to vector<17x1xf32>
    %95 = arith.truncf %92 : vector<17x17xf32> to vector<17x17xbf16>
    %96 = arith.truncf %25 : vector<17x16xf32> to vector<17x16xbf16>
    %cst_27 = arith.constant dense<0.000000e+00> : vector<17x16xf32>
    %97 = tpu.matmul %95, %96, %cst_27 {dimension_numbers = #tpu.dot_dimension_numbers<[1], [0], [0], [1], [0, 0, 1, 1], [], []>} : vector<17x17xbf16>, vector<17x16xbf16>, vector<17x16xf32> -> vector<17x16xf32>
    %98 = vector.shape_cast %44 : vector<17x17xf32> to vector<17x1x17xf32>
    %99 = vector.shape_cast %60 : vector<17x17xf32> to vector<17x1x17xf32>
    %100 = vector.shape_cast %76 : vector<17x17xf32> to vector<17x1x17xf32>
    %101 = vector.shape_cast %92 : vector<17x17xf32> to vector<17x1x17xf32>
    %102 = tpu.concatenate %98, %99, %100, %101 in 1 : vector<17x1x17xf32>, vector<17x1x17xf32>, vector<17x1x17xf32>, vector<17x1x17xf32> -> vector<17x4x17xf32>
    %103 = arith.truncf %102 : vector<17x4x17xf32> to vector<17x4x17xbf16>
    %c0_28 = arith.constant 0 : index
    %c0_29 = arith.constant 0 : index
    %c0_30 = arith.constant 0 : index
    %104 = vector.load %arg6[%c0_28, %c0_29, %c0_30] : memref<17x17x16xbf16, #tpu.memory_space<vmem>>, vector<17x17x16xbf16>
    %cst_31 = arith.constant dense<0.000000e+00> : vector<17x4x16xf32>
    %105 = tpu.matmul %103, %104, %cst_31 {dimension_numbers = #tpu.dot_dimension_numbers<[2], [1], [1], [2], [0, 0, 0, 1, 1, 2], [0], [0]>} : vector<17x4x17xbf16>, vector<17x17x16xbf16>, vector<17x4x16xf32> -> vector<17x4x16xf32>
    %106 = vector.extract_strided_slice %105 {offsets = [0, 0, 0], sizes = [17, 1, 16], strides = [1, 1, 1]} : vector<17x4x16xf32> to vector<17x1x16xf32>
    %107 = vector.shape_cast %106 : vector<17x1x16xf32> to vector<17x16xf32>
    %108 = arith.addf %49, %107 : vector<17x16xf32>
    %109 = vector.broadcast %46 : vector<17x1xf32> to vector<17x16xf32>
    %110 = arith.divf %108, %109 : vector<17x16xf32>
    %111 = vector.extract_strided_slice %105 {offsets = [0, 1, 0], sizes = [17, 1, 16], strides = [1, 1, 1]} : vector<17x4x16xf32> to vector<17x1x16xf32>
    %112 = vector.shape_cast %111 : vector<17x1x16xf32> to vector<17x16xf32>
    %113 = arith.addf %65, %112 : vector<17x16xf32>
    %114 = vector.broadcast %62 : vector<17x1xf32> to vector<17x16xf32>
    %115 = arith.divf %113, %114 : vector<17x16xf32>
    %116 = vector.extract_strided_slice %105 {offsets = [0, 2, 0], sizes = [17, 1, 16], strides = [1, 1, 1]} : vector<17x4x16xf32> to vector<17x1x16xf32>
    %117 = vector.shape_cast %116 : vector<17x1x16xf32> to vector<17x16xf32>
    %118 = arith.addf %81, %117 : vector<17x16xf32>
    %119 = vector.broadcast %78 : vector<17x1xf32> to vector<17x16xf32>
    %120 = arith.divf %118, %119 : vector<17x16xf32>
    %121 = vector.extract_strided_slice %105 {offsets = [0, 3, 0], sizes = [17, 1, 16], strides = [1, 1, 1]} : vector<17x4x16xf32> to vector<17x1x16xf32>
    %122 = vector.shape_cast %121 : vector<17x1x16xf32> to vector<17x16xf32>
    %123 = arith.addf %97, %122 : vector<17x16xf32>
    %124 = vector.broadcast %94 : vector<17x1xf32> to vector<17x16xf32>
    %125 = arith.divf %123, %124 : vector<17x16xf32>
    %126 = tpu.concatenate %110, %115, %120, %125 in 1 : vector<17x16xf32>, vector<17x16xf32>, vector<17x16xf32>, vector<17x16xf32> -> vector<17x64xf32>
    %127 = vector.extract_strided_slice %4 {offsets = [17, 0], sizes = [17, 192], strides = [1, 1]} : vector<34x192xf32> to vector<17x192xf32>
    %128 = vector.extract_strided_slice %127 {offsets = [0, 0], sizes = [17, 16], strides = [1, 1]} : vector<17x192xf32> to vector<17x16xf32>
    %cst_32 = arith.constant 2.500000e-01 : f32
    %129 = vector.broadcast %cst_32 : f32 to vector<17x16xf32>
    %130 = arith.mulf %128, %129 : vector<17x16xf32>
    %131 = vector.extract_strided_slice %127 {offsets = [0, 16], sizes = [17, 16], strides = [1, 1]} : vector<17x192xf32> to vector<17x16xf32>
    %cst_33 = arith.constant 2.500000e-01 : f32
    %132 = vector.broadcast %cst_33 : f32 to vector<17x16xf32>
    %133 = arith.mulf %131, %132 : vector<17x16xf32>
    %134 = vector.extract_strided_slice %127 {offsets = [0, 32], sizes = [17, 16], strides = [1, 1]} : vector<17x192xf32> to vector<17x16xf32>
    %cst_34 = arith.constant 2.500000e-01 : f32
    %135 = vector.broadcast %cst_34 : f32 to vector<17x16xf32>
    %136 = arith.mulf %134, %135 : vector<17x16xf32>
    %137 = vector.extract_strided_slice %127 {offsets = [0, 48], sizes = [17, 16], strides = [1, 1]} : vector<17x192xf32> to vector<17x16xf32>
    %cst_35 = arith.constant 2.500000e-01 : f32
    %138 = vector.broadcast %cst_35 : f32 to vector<17x16xf32>
    %139 = arith.mulf %137, %138 : vector<17x16xf32>
    %140 = vector.extract_strided_slice %127 {offsets = [0, 64], sizes = [17, 16], strides = [1, 1]} : vector<17x192xf32> to vector<17x16xf32>
    %141 = vector.extract_strided_slice %127 {offsets = [0, 80], sizes = [17, 16], strides = [1, 1]} : vector<17x192xf32> to vector<17x16xf32>
    %142 = vector.extract_strided_slice %127 {offsets = [0, 96], sizes = [17, 16], strides = [1, 1]} : vector<17x192xf32> to vector<17x16xf32>
    %143 = vector.extract_strided_slice %127 {offsets = [0, 112], sizes = [17, 16], strides = [1, 1]} : vector<17x192xf32> to vector<17x16xf32>
    %144 = vector.extract_strided_slice %127 {offsets = [0, 128], sizes = [17, 16], strides = [1, 1]} : vector<17x192xf32> to vector<17x16xf32>
    %145 = vector.extract_strided_slice %127 {offsets = [0, 144], sizes = [17, 16], strides = [1, 1]} : vector<17x192xf32> to vector<17x16xf32>
    %146 = vector.extract_strided_slice %127 {offsets = [0, 160], sizes = [17, 16], strides = [1, 1]} : vector<17x192xf32> to vector<17x16xf32>
    %147 = vector.extract_strided_slice %127 {offsets = [0, 176], sizes = [17, 16], strides = [1, 1]} : vector<17x192xf32> to vector<17x16xf32>
    %148 = vector.shape_cast %130 : vector<17x16xf32> to vector<17x1x16xf32>
    %149 = vector.shape_cast %133 : vector<17x16xf32> to vector<17x1x16xf32>
    %150 = vector.shape_cast %136 : vector<17x16xf32> to vector<17x1x16xf32>
    %151 = vector.shape_cast %139 : vector<17x16xf32> to vector<17x1x16xf32>
    %152 = tpu.concatenate %148, %149, %150, %151 in 1 : vector<17x1x16xf32>, vector<17x1x16xf32>, vector<17x1x16xf32>, vector<17x1x16xf32> -> vector<17x4x16xf32>
    %153 = arith.truncf %152 : vector<17x4x16xf32> to vector<17x4x16xbf16>
    %c0_36 = arith.constant 0 : index
    %c0_37 = arith.constant 0 : index
    %c0_38 = arith.constant 0 : index
    %154 = vector.load %arg5[%c0_36, %c0_37, %c0_38] : memref<17x17x16xbf16, #tpu.memory_space<vmem>>, vector<17x17x16xbf16>
    %cst_39 = arith.constant dense<0.000000e+00> : vector<17x4x17xf32>
    %155 = tpu.matmul %153, %154, %cst_39 {dimension_numbers = #tpu.dot_dimension_numbers<[2], [2], [1], [1], [0, 0, 0, 1, 1, 1], [0], [0]>} : vector<17x4x16xbf16>, vector<17x17x16xbf16>, vector<17x4x17xf32> -> vector<17x4x17xf32>
    %156 = arith.truncf %130 : vector<17x16xf32> to vector<17x16xbf16>
    %157 = arith.truncf %140 : vector<17x16xf32> to vector<17x16xbf16>
    %cst_40 = arith.constant dense<0.000000e+00> : vector<17x17xf32>
    %158 = tpu.matmul %156, %157, %cst_40 {dimension_numbers = #tpu.dot_dimension_numbers<[1], [1], [0], [0], [0, 0, 1, 0], [], []>} : vector<17x16xbf16>, vector<17x16xbf16>, vector<17x17xf32> -> vector<17x17xf32>
    %159 = vector.extract_strided_slice %155 {offsets = [0, 0, 0], sizes = [17, 1, 17], strides = [1, 1, 1]} : vector<17x4x17xf32> to vector<17x1x17xf32>
    %160 = vector.shape_cast %159 : vector<17x1x17xf32> to vector<17x17xf32>
    %161 = arith.addf %158, %160 : vector<17x17xf32>
    %cst_41 = arith.constant dense<0xFF800000> : vector<17xf32>
    %162 = vector.multi_reduction <maximumf>, %161, %cst_41 [1] : vector<17x17xf32> to vector<17xf32>
    %163 = vector.shape_cast %162 : vector<17xf32> to vector<17x1xf32>
    %164 = vector.broadcast %163 : vector<17x1xf32> to vector<17x17xf32>
    %165 = arith.subf %161, %164 : vector<17x17xf32>
    %166 = math.exp %165 : vector<17x17xf32>
    %cst_42 = arith.constant dense<0.000000e+00> : vector<17xf32>
    %167 = vector.multi_reduction <add>, %166, %cst_42 [1] : vector<17x17xf32> to vector<17xf32>
    %168 = vector.shape_cast %167 : vector<17xf32> to vector<17x1xf32>
    %169 = arith.truncf %166 : vector<17x17xf32> to vector<17x17xbf16>
    %170 = arith.truncf %144 : vector<17x16xf32> to vector<17x16xbf16>
    %cst_43 = arith.constant dense<0.000000e+00> : vector<17x16xf32>
    %171 = tpu.matmul %169, %170, %cst_43 {dimension_numbers = #tpu.dot_dimension_numbers<[1], [0], [0], [1], [0, 0, 1, 1], [], []>} : vector<17x17xbf16>, vector<17x16xbf16>, vector<17x16xf32> -> vector<17x16xf32>
    %172 = arith.truncf %133 : vector<17x16xf32> to vector<17x16xbf16>
    %173 = arith.truncf %141 : vector<17x16xf32> to vector<17x16xbf16>
    %cst_44 = arith.constant dense<0.000000e+00> : vector<17x17xf32>
    %174 = tpu.matmul %172, %173, %cst_44 {dimension_numbers = #tpu.dot_dimension_numbers<[1], [1], [0], [0], [0, 0, 1, 0], [], []>} : vector<17x16xbf16>, vector<17x16xbf16>, vector<17x17xf32> -> vector<17x17xf32>
    %175 = vector.extract_strided_slice %155 {offsets = [0, 1, 0], sizes = [17, 1, 17], strides = [1, 1, 1]} : vector<17x4x17xf32> to vector<17x1x17xf32>
    %176 = vector.shape_cast %175 : vector<17x1x17xf32> to vector<17x17xf32>
    %177 = arith.addf %174, %176 : vector<17x17xf32>
    %cst_45 = arith.constant dense<0xFF800000> : vector<17xf32>
    %178 = vector.multi_reduction <maximumf>, %177, %cst_45 [1] : vector<17x17xf32> to vector<17xf32>
    %179 = vector.shape_cast %178 : vector<17xf32> to vector<17x1xf32>
    %180 = vector.broadcast %179 : vector<17x1xf32> to vector<17x17xf32>
    %181 = arith.subf %177, %180 : vector<17x17xf32>
    %182 = math.exp %181 : vector<17x17xf32>
    %cst_46 = arith.constant dense<0.000000e+00> : vector<17xf32>
    %183 = vector.multi_reduction <add>, %182, %cst_46 [1] : vector<17x17xf32> to vector<17xf32>
    %184 = vector.shape_cast %183 : vector<17xf32> to vector<17x1xf32>
    %185 = arith.truncf %182 : vector<17x17xf32> to vector<17x17xbf16>
    %186 = arith.truncf %145 : vector<17x16xf32> to vector<17x16xbf16>
    %cst_47 = arith.constant dense<0.000000e+00> : vector<17x16xf32>
    %187 = tpu.matmul %185, %186, %cst_47 {dimension_numbers = #tpu.dot_dimension_numbers<[1], [0], [0], [1], [0, 0, 1, 1], [], []>} : vector<17x17xbf16>, vector<17x16xbf16>, vector<17x16xf32> -> vector<17x16xf32>
    %188 = arith.truncf %136 : vector<17x16xf32> to vector<17x16xbf16>
    %189 = arith.truncf %142 : vector<17x16xf32> to vector<17x16xbf16>
    %cst_48 = arith.constant dense<0.000000e+00> : vector<17x17xf32>
    %190 = tpu.matmul %188, %189, %cst_48 {dimension_numbers = #tpu.dot_dimension_numbers<[1], [1], [0], [0], [0, 0, 1, 0], [], []>} : vector<17x16xbf16>, vector<17x16xbf16>, vector<17x17xf32> -> vector<17x17xf32>
    %191 = vector.extract_strided_slice %155 {offsets = [0, 2, 0], sizes = [17, 1, 17], strides = [1, 1, 1]} : vector<17x4x17xf32> to vector<17x1x17xf32>
    %192 = vector.shape_cast %191 : vector<17x1x17xf32> to vector<17x17xf32>
    %193 = arith.addf %190, %192 : vector<17x17xf32>
    %cst_49 = arith.constant dense<0xFF800000> : vector<17xf32>
    %194 = vector.multi_reduction <maximumf>, %193, %cst_49 [1] : vector<17x17xf32> to vector<17xf32>
    %195 = vector.shape_cast %194 : vector<17xf32> to vector<17x1xf32>
    %196 = vector.broadcast %195 : vector<17x1xf32> to vector<17x17xf32>
    %197 = arith.subf %193, %196 : vector<17x17xf32>
    %198 = math.exp %197 : vector<17x17xf32>
    %cst_50 = arith.constant dense<0.000000e+00> : vector<17xf32>
    %199 = vector.multi_reduction <add>, %198, %cst_50 [1] : vector<17x17xf32> to vector<17xf32>
    %200 = vector.shape_cast %199 : vector<17xf32> to vector<17x1xf32>
    %201 = arith.truncf %198 : vector<17x17xf32> to vector<17x17xbf16>
    %202 = arith.truncf %146 : vector<17x16xf32> to vector<17x16xbf16>
    %cst_51 = arith.constant dense<0.000000e+00> : vector<17x16xf32>
    %203 = tpu.matmul %201, %202, %cst_51 {dimension_numbers = #tpu.dot_dimension_numbers<[1], [0], [0], [1], [0, 0, 1, 1], [], []>} : vector<17x17xbf16>, vector<17x16xbf16>, vector<17x16xf32> -> vector<17x16xf32>
    %204 = arith.truncf %139 : vector<17x16xf32> to vector<17x16xbf16>
    %205 = arith.truncf %143 : vector<17x16xf32> to vector<17x16xbf16>
    %cst_52 = arith.constant dense<0.000000e+00> : vector<17x17xf32>
    %206 = tpu.matmul %204, %205, %cst_52 {dimension_numbers = #tpu.dot_dimension_numbers<[1], [1], [0], [0], [0, 0, 1, 0], [], []>} : vector<17x16xbf16>, vector<17x16xbf16>, vector<17x17xf32> -> vector<17x17xf32>
    %207 = vector.extract_strided_slice %155 {offsets = [0, 3, 0], sizes = [17, 1, 17], strides = [1, 1, 1]} : vector<17x4x17xf32> to vector<17x1x17xf32>
    %208 = vector.shape_cast %207 : vector<17x1x17xf32> to vector<17x17xf32>
    %209 = arith.addf %206, %208 : vector<17x17xf32>
    %cst_53 = arith.constant dense<0xFF800000> : vector<17xf32>
    %210 = vector.multi_reduction <maximumf>, %209, %cst_53 [1] : vector<17x17xf32> to vector<17xf32>
    %211 = vector.shape_cast %210 : vector<17xf32> to vector<17x1xf32>
    %212 = vector.broadcast %211 : vector<17x1xf32> to vector<17x17xf32>
    %213 = arith.subf %209, %212 : vector<17x17xf32>
    %214 = math.exp %213 : vector<17x17xf32>
    %cst_54 = arith.constant dense<0.000000e+00> : vector<17xf32>
    %215 = vector.multi_reduction <add>, %214, %cst_54 [1] : vector<17x17xf32> to vector<17xf32>
    %216 = vector.shape_cast %215 : vector<17xf32> to vector<17x1xf32>
    %217 = arith.truncf %214 : vector<17x17xf32> to vector<17x17xbf16>
    %218 = arith.truncf %147 : vector<17x16xf32> to vector<17x16xbf16>
    %cst_55 = arith.constant dense<0.000000e+00> : vector<17x16xf32>
    %219 = tpu.matmul %217, %218, %cst_55 {dimension_numbers = #tpu.dot_dimension_numbers<[1], [0], [0], [1], [0, 0, 1, 1], [], []>} : vector<17x17xbf16>, vector<17x16xbf16>, vector<17x16xf32> -> vector<17x16xf32>
    %220 = vector.shape_cast %166 : vector<17x17xf32> to vector<17x1x17xf32>
    %221 = vector.shape_cast %182 : vector<17x17xf32> to vector<17x1x17xf32>
    %222 = vector.shape_cast %198 : vector<17x17xf32> to vector<17x1x17xf32>
    %223 = vector.shape_cast %214 : vector<17x17xf32> to vector<17x1x17xf32>
    %224 = tpu.concatenate %220, %221, %222, %223 in 1 : vector<17x1x17xf32>, vector<17x1x17xf32>, vector<17x1x17xf32>, vector<17x1x17xf32> -> vector<17x4x17xf32>
    %225 = arith.truncf %224 : vector<17x4x17xf32> to vector<17x4x17xbf16>
    %c0_56 = arith.constant 0 : index
    %c0_57 = arith.constant 0 : index
    %c0_58 = arith.constant 0 : index
    %226 = vector.load %arg6[%c0_56, %c0_57, %c0_58] : memref<17x17x16xbf16, #tpu.memory_space<vmem>>, vector<17x17x16xbf16>
    %cst_59 = arith.constant dense<0.000000e+00> : vector<17x4x16xf32>
    %227 = tpu.matmul %225, %226, %cst_59 {dimension_numbers = #tpu.dot_dimension_numbers<[2], [1], [1], [2], [0, 0, 0, 1, 1, 2], [0], [0]>} : vector<17x4x17xbf16>, vector<17x17x16xbf16>, vector<17x4x16xf32> -> vector<17x4x16xf32>
    %228 = vector.extract_strided_slice %227 {offsets = [0, 0, 0], sizes = [17, 1, 16], strides = [1, 1, 1]} : vector<17x4x16xf32> to vector<17x1x16xf32>
    %229 = vector.shape_cast %228 : vector<17x1x16xf32> to vector<17x16xf32>
    %230 = arith.addf %171, %229 : vector<17x16xf32>
    %231 = vector.broadcast %168 : vector<17x1xf32> to vector<17x16xf32>
    %232 = arith.divf %230, %231 : vector<17x16xf32>
    %233 = vector.extract_strided_slice %227 {offsets = [0, 1, 0], sizes = [17, 1, 16], strides = [1, 1, 1]} : vector<17x4x16xf32> to vector<17x1x16xf32>
    %234 = vector.shape_cast %233 : vector<17x1x16xf32> to vector<17x16xf32>
    %235 = arith.addf %187, %234 : vector<17x16xf32>
    %236 = vector.broadcast %184 : vector<17x1xf32> to vector<17x16xf32>
    %237 = arith.divf %235, %236 : vector<17x16xf32>
    %238 = vector.extract_strided_slice %227 {offsets = [0, 2, 0], sizes = [17, 1, 16], strides = [1, 1, 1]} : vector<17x4x16xf32> to vector<17x1x16xf32>
    %239 = vector.shape_cast %238 : vector<17x1x16xf32> to vector<17x16xf32>
    %240 = arith.addf %203, %239 : vector<17x16xf32>
    %241 = vector.broadcast %200 : vector<17x1xf32> to vector<17x16xf32>
    %242 = arith.divf %240, %241 : vector<17x16xf32>
    %243 = vector.extract_strided_slice %227 {offsets = [0, 3, 0], sizes = [17, 1, 16], strides = [1, 1, 1]} : vector<17x4x16xf32> to vector<17x1x16xf32>
    %244 = vector.shape_cast %243 : vector<17x1x16xf32> to vector<17x16xf32>
    %245 = arith.addf %219, %244 : vector<17x16xf32>
    %246 = vector.broadcast %216 : vector<17x1xf32> to vector<17x16xf32>
    %247 = arith.divf %245, %246 : vector<17x16xf32>
    %248 = tpu.concatenate %232, %237, %242, %247 in 1 : vector<17x16xf32>, vector<17x16xf32>, vector<17x16xf32>, vector<17x16xf32> -> vector<17x64xf32>
    %249 = tpu.concatenate %126, %248 in 0 : vector<17x64xf32>, vector<17x64xf32> -> vector<34x64xf32>
    %250 = arith.truncf %249 : vector<34x64xf32> to vector<34x64xbf16>
    %c0_60 = arith.constant 0 : index
    %c0_61 = arith.constant 0 : index
    %251 = vector.load %arg3[%c0_60, %c0_61] : memref<64x64xbf16, #tpu.memory_space<vmem>>, vector<64x64xbf16>
    %cst_62 = arith.constant dense<0.000000e+00> : vector<34x64xf32>
    %252 = tpu.matmul %250, %251, %cst_62 {dimension_numbers = #tpu.dot_dimension_numbers<[1], [0], [0], [1], [0, 0, 1, 1], [], []>} : vector<34x64xbf16>, vector<64x64xbf16>, vector<34x64xf32> -> vector<34x64xf32>
    %c0_63 = arith.constant 0 : index
    %c0_64 = arith.constant 0 : index
    %253 = vector.load %arg4[%c0_63, %c0_64] : memref<1x64xf32, #tpu.memory_space<vmem>>, vector<1x64xf32>
    %254 = vector.broadcast %253 : vector<1x64xf32> to vector<34x64xf32>
    %255 = arith.addf %252, %254 : vector<34x64xf32>
    %c0_65 = arith.constant 0 : index
    %c0_66 = arith.constant 0 : index
    %c0_67 = arith.constant 0 : index
    %256 = vector.load %arg7[%c0_65, %c0_66, %c0_67] : memref<1x34x64xf32, #tpu.memory_space<vmem>>, vector<1x34x64xf32>
    %257 = vector.shape_cast %256 : vector<1x34x64xf32> to vector<34x64xf32>
    %258 = vector.shape_cast %255 : vector<34x64xf32> to vector<1x34x64xf32>
    tpu.vector_store %arg7[%c0_65, %c0_66, %c0_67], %258 {strides = array<i32>} : memref<1x34x64xf32, #tpu.memory_space<vmem>>, vector<1x34x64xf32>,
    return
  }
  func.func @transform_0(%arg0: i32) -> (i32, i32, i32) {
    %c0_i32 = arith.constant 0 : i32
    %c0_i32_0 = arith.constant 0 : i32
    %c0_i32_1 = arith.constant 0 : i32
    return %arg0, %c0_i32, %c0_i32_0 : i32, i32, i32
  }
  func.func @transform_1(%arg0: i32) -> (i32, i32) {
    %c0_i32 = arith.constant 0 : i32
    %c0_i32_0 = arith.constant 0 : i32
    %c0_i32_1 = arith.constant 0 : i32
    return %c0_i32, %c0_i32_0 : i32, i32
  }
  func.func @transform_2(%arg0: i32) -> (i32, i32) {
    %c0_i32 = arith.constant 0 : i32
    %c0_i32_0 = arith.constant 0 : i32
    %c0_i32_1 = arith.constant 0 : i32
    return %c0_i32, %c0_i32_0 : i32, i32
  }
  func.func @transform_3(%arg0: i32) -> (i32, i32) {
    %c0_i32 = arith.constant 0 : i32
    %c0_i32_0 = arith.constant 0 : i32
    %c0_i32_1 = arith.constant 0 : i32
    return %c0_i32, %c0_i32_0 : i32, i32
  }
  func.func @transform_4(%arg0: i32) -> (i32, i32, i32) {
    %c0_i32 = arith.constant 0 : i32
    %c0_i32_0 = arith.constant 0 : i32
    %c0_i32_1 = arith.constant 0 : i32
    %c0_i32_2 = arith.constant 0 : i32
    return %c0_i32, %c0_i32_0, %c0_i32_1 : i32, i32, i32
  }
  func.func @transform_5(%arg0: i32) -> (i32, i32, i32) {
    %c0_i32 = arith.constant 0 : i32
    %c0_i32_0 = arith.constant 0 : i32
    %c0_i32_1 = arith.constant 0 : i32
    %c0_i32_2 = arith.constant 0 : i32
    return %c0_i32, %c0_i32_0, %c0_i32_1 : i32, i32, i32
  }
  func.func @transform_6(%arg0: i32) -> (i32, i32, i32) {
    %c0_i32 = arith.constant 0 : i32
    %c0_i32_0 = arith.constant 0 : i32
    %c0_i32_1 = arith.constant 0 : i32
    return %arg0, %c0_i32, %c0_i32_0 : i32, i32, i32
  }
}

</mosaic_0001>

<bundles_post_ra>
// kernel: tpu_custom_call.1
= control target key start
LH: loop header
LB: loop body
LE: loop exit
PB: predicated region body
PF: predicated region fallthrough
CT: control target
= control target key end

     0   :  { %v12769_v1 = vmov 0   ;;  %vm80_vm0 = vcmask 523264   ;;  %vm637_vm1 = vcmask 130048   ;;  %v12773_v17 = vmov 0.0   ;;  %s9887_s29 = smov 80   ;;  %s9888_s30 = smov 112   ;;  %s12762_s1 = inlined_call_operand.vmem [shape: bf16[64,192], index: 1, kind: input, shape index: {}]   ;;  %s12763_s0 = inlined_call_operand.vmem [shape: f32[1,34,64], index: 0, kind: input, shape index: {}]   ;;  %s12764_s4 = inlined_call_operand.vmem [shape: bf16[17,17,16], index: 4, kind: input, shape index: {}]   ;;  %s12765_s5 = inlined_call_operand.vmem [shape: bf16[17,17,16], index: 5, kind: input, shape index: {}]   ;;  %s12766_s2 = inlined_call_operand.vmem [shape: bf16[64,64], index: 2, kind: input, shape index: {}]   ;;  %s12767_s3 = inlined_call_operand.vmem [shape: f32[1,64], index: 3, kind: input, shape index: {}]   ;;  %s12768_s6 = inlined_call_operand.vmem [shape: f32[1,34,64], index: 6, kind: output, shape index: {}]  }
   0x1   :  { %v9686_v0 = vld [vmem:[%s12762_s1 + $0x4] ss:$8 sps:$4 sm:$0xff]   ;;  %122 = vmatprep.mubr.bf16.mxu0 %v12769_v1  ;;  %v9688_v2 = vld [vmem:[%s12762_s1] ss:$8 sps:$4 sm:$0xff]   ;;  %v9689_v3 = vld [vmem:[%s12762_s1 + $0x14] ss:$8 sps:$4 sm:$0xff]   ;;  %8705 = vmatprep.subr.bf16.mxu1 %v12773_v17  ;;  %v161_v26 = vlaneseq }
   0x2   :  { %90 = vmatprep.subr.bf16.mxu0 %v9686_v0  ;;  %v9691_v4 = vld [vmem:[%s12762_s1 + $0x10] ss:$8 sps:$4 sm:$0xff]   ;;  %v9692_v5 = vld [vmem:[%s12762_s1 + $0x24] ss:$8 sps:$4 sm:$0xff]   ;;  %v9694_v6 = vld [vmem:[%s12762_s1 + $0x20] ss:$8 sps:$4 sm:$0xff]  }
   0x3   :  { %91 = vmatpush1.bf16.msra.mxu0 %v9688_v2  ;;  %v9695_v7 = vld [vmem:[%s12762_s1 + $0x34] ss:$8 sps:$4 sm:$0xff]   ;;  %v9697_v8 = vld [vmem:[%s12762_s1 + $0x30] ss:$8 sps:$4 sm:$0xff]   ;;  %v24_v9 = vld [vmem:[%s12763_s0] sm:$0xff]  ;;  %v162_v28 = vshrl.u32 %v161_v26, 7 }
   0x4   :  { %92 = vmatprep.subr.bf16.mxu0 %v9689_v3  ;;  %v25_v10 = vld [vmem:[%s12763_s0 + $0x8] sm:$0xff]  ;;  %v26_v12 = vld [vmem:[%s12763_s0 + $0x10] sm:$0xff]  ;;  %v27_v13 = vld [vmem:[%s12763_s0 + $0x18] sm:$0xff]  ;;  %v9885_v24 = vmov 1966171168   ;;  %vm9886_vm2 = vmmov 0  }
   0x5   :  { %v29_v11 = vpack.c.bf16 %v25_v10, %v24_v9  ;;  %v30_v14 = vpack.c.bf16 %v27_v13, %v26_v12  ;;  %v28_v15 = vld [vmem:[%s12763_s0 + $0x20] sm:$0x3]  ;;  %v9699_v19 = vld [vmem:[%s12764_s4 + $0x8] ss:$0 sps:$4 sm:$0x11]   ;;  %v9700_v20 = vld [vmem:[%s12764_s4 + $0xc] sm:$0xff]   ;;  %v159_v25 = vunpack.c.l.s4 %v9885_v24  ;;  %8709 = vmatprep.mubr.msk.bf16.mxu1 %vm9886_vm2, %v12773_v17 }
   0x6   :  { %v31_v16 = vpack.c.bf16 %v28_v15, %v28_v15  ;;  %v9698_v18 = vld [vmem:[%s12764_s4] sm:$0xff]   ;;  %v9990_v22 = vsel %vm637_vm1, %v9699_v19, 0  ;;  %v9993_v23 = vsel %vm637_vm1, %v9700_v20, 0  ;;  %v10009_v39 = vsub.s32 0, %v162_v28  ;;  %s9889_s7 = smov 96   ;;  %s9890_s8 = smov 64  }
   0x7   :  { %93 = vmatpush1.bf16.msra.mxu0 %v9691_v4  ;;  %v9986_v21 = vsel %vm637_vm1, %v9698_v18, 0  ;;  %8706 = vmatpush3.bf16.xpose.msra.mxu1 %v9993_v23  ;;  %v160_v27 = vunpack.c.0.s8 %v159_v25  ;;  %v9701_v40 = vld [vmem:[%s12764_s4 + $0x14] ss:$0 sps:$4 sm:$0x11]   ;;  %vm5545_vm3 = vsmask.f32 7424 }
   0x8   :  { %94 = vmatprep.subr.bf16.mxu0 %v9692_v5  ;;  %8707 = vmatprep.subr.bf16.mxu1 %v12773_v17  ;;  %v10023_v45 = vsel %vm637_vm1, %v9701_v40, 0  ;;  %s9891_s9 = smov 48   ;;  %s9892_s10 = smov 32   ;;  %vm507_vm4 = vcmask 1040384   ;;  %vm525_vm5 = vcmask 1041408   ;;  %vm543_vm6 = vcmask 1042432  }
   0x9   :  { %v10000_v29 = vsub.s32 %v160_v27, %v162_v28  ;;  %s9893_s11 = smov 16   ;;  %vm1627_vm7 = vcmask 1041409   ;;  %vm1630_vm8 = vcmask 1042434   ;;  %vm1633_vm9 = vcmask 1043459  }
   0xa   :  { %vm1636_vm10 = vcmask 1044484   ;;  %vm1639_vm11 = vcmask 1045509   ;;  %vm1642_vm12 = vcmask 1046534   ;;  %vm1645_vm13 = vcmask 1047559  }
   0xb   :  { %95 = vmatpush1.bf16.msra.mxu0 %v9694_v6  ;;  %vm1724_vm14 = vcmask 138240   ;;  %vm1731_vm15 = vcmask 131072  }
   0xc   :  { %96 = vmatprep.subr.bf16.mxu0 %v9695_v7 }
   0xf   :  { %97 = vmatpush1.bf16.msra.mxu0 %v9697_v8  ;;  %8708 = vmatpush3.bf16.xpose.msra.mxu1 %v10023_v45 }
  0x10   :  { %8697 = vmatprep.subr.bf16.mxu0 %v12773_v17  ;;  %8721 = vmatprep.subr.bf16.mxu1 %v12773_v17 }
  0x12   :  { %8243 = vmatmul.mubr.msk.bf16.vlgmr.msra.gmra.mrb[0].mxu0 %vm80_vm0, %v29_v11 }
  0x13   :  { %132 = vmatprep.mubr.bf16.mxu0 %v12769_v1 }
  0x18   :  { %8698 = vmatpush3.bf16.xpose.msra.mxu0 %v9986_v21 }
  0x19   :  { %8699 = vmatprep.subr.bf16.mxu0 %v12773_v17 }
  0x1a   :  { %8244 = vmatmul.mubr.msk.bf16.gmra.mrb[4].mxu0 %vm80_vm0, %v30_v14 }
  0x1b   :  { %142 = vmatprep.mubr.bf16.mxu0 %v12769_v1 }
  0x20   :  { %8700 = vmatpush3.bf16.xpose.msra.mxu0 %v9990_v22 }
  0x21   :  { %8713 = vmatprep.subr.bf16.mxu0 %v12773_v17 }
  0x22   :  { %8245 = vmatmul.mubr.msk.bf16.gmra.mrb[8].mxu0 %vm80_vm0, %v31_v16 }
  0x23   :  { %8701 = vmatprep.mubr.msk.bf16.mxu0 %vm9886_vm2, %v12773_v17 }
  0xe5   :  { %v124_v30 = vpop.f32.mrb[0].mxu0 }
  0xe6   :  { %v151_v31 = vmul.f32 0.25, %v124_v30  ;;  %v126_v32 = vpop.f32.mrb[1].mxu0 }
  0xe7   :  { %v128_v33 = vpop.f32.mrb[2].mxu0 }
  0xe8   :  { %v164_v34 = vrot.slane %v151_v31, %v10000_v29  ;;  %v10003_v35 = vmul.f32 0.25, %v128_v33  ;;  %v10005_v36 = vpack.c.bf16 %v128_v33, %v124_v30  ;;  %v130_v37 = vpop.f32.mrb[3].mxu0  ;;  %v157_v41 = vcombine.high %v151_v31, %v151_v31 }
  0xe9   :  { %v10007_v38 = vpack.c.bf16 %v130_v37, %v126_v32 }
  0xea   :  { %v172_v42 = vcombine.high %v164_v34, %v164_v34  ;;  %v10015_v43 = vrot.slane %v164_v34, %v10000_v29  ;;  %v10020_v44 = vpack.c.bf16 %v10003_v35, %v151_v31  ;;  %v171_v50 = vrot.slane %v157_v41, %v10000_v29 }
  0xeb   :  { %v213_v6 = vrot.slane %v10003_v35, %v10000_v29  ;;  %v206_v19 = vcombine.high %v10003_v35, %v10003_v35 }
  0xec   :  { %v10028_v46 = vrot.slane %v172_v42, %v10000_v29  ;;  %v289_v48 = vrot.slane %v10015_v43, %v10009_v39  ;;  %v10037_v49 = vcombine.high %v10015_v43, %v10015_v43  ;;  %v173_v57 = vcombine.high %v171_v50, %v171_v50 }
  0xed   :  { %v10031_v47 = vpop.f32.mrb[4].mxu0  ;;  %v10054_v58 = vrot.slane %v171_v50, %v10000_v29  ;;  %v221_v14 = vcombine.high %v213_v6, %v213_v6  ;;  %v10094_v15 = vrot.slane %v213_v6, %v10000_v29  ;;  %v220_v27 = vrot.slane %v206_v19, %v10000_v29 }
  0xee   :  { %v10041_v51 = vpop.f32.mrb[5].mxu0  ;;  %456 = vrot.lane.b32.xlu1 %v289_v48, %s9887_s29  ;;  %354 = vrot.lane.b32.xlu0 %v289_v48, %s9888_s30  ;;  %v293_v52 = vrot.slane %v10028_v46, %v10009_v39  ;;  %v297_v54 = vrot.slane %v10037_v49, %v10009_v39  ;;  %v10051_v56 = vcombine.high %v10028_v46, %v10028_v46  ;;  %v10080_v9 = vmul.f32 0.25, %v10031_v47 }
  0xef   :  { %v138_v53 = vpop.f32.mrb[6].mxu0  ;;  %v10061_v62 = vrot.slane %v173_v57, %v10000_v29  ;;  %v10065_v63 = vcombine.high %v10054_v58, %v10054_v58  ;;  %v305_v2 = vrot.slane %v10054_v58, %v10009_v39  ;;  %v10106_v24 = vrot.slane %v221_v14, %v10000_v29 }
  0xf0   :  { %v140_v55 = vpop.f32.mrb[7].mxu0  ;;  %v9416_v59 = vpack.i.bf16 %v297_v54, %v293_v52  ;;  %v301_v60 = vrot.slane %v10051_v56, %v10009_v39  ;;  %v10083_v10 = vmul.f32 0.25, %v138_v53  ;;  %v5543_v11 = vpack.c.bf16 %v138_v53, %v10031_v47 }
  0xf1   :  { %v309_v7 = vrot.slane %v10061_v62, %v10009_v39  ;;  %v313_v8 = vrot.slane %v10065_v63, %v10009_v39  ;;  %v10089_v12 = vcombine.high %v10061_v62, %v10061_v62  ;;  %v10099_v18 = vpack.c.bf16 %v140_v55, %v10041_v51 }
  0xf2   :  { %405 = vrot.lane.b32.xlu0 %v289_v48, %s9889_s7  ;;  %9417 = vrot.lane.b32.xlu1 %v9416_v59, %s9888_s30  ;;  %v9431_v5 = vpack.i.bf16 %v305_v2, %v301_v60  ;;  %v5541_v13 = vpack.c.bf16 %v10083_v10, %v10080_v9  ;;  %v10110_v25 = vcombine.high %v10094_v15, %v10094_v15  ;;  %v5563_v33 = vshll.u32 %v5543_v11, 16 }
  0xf3   :  { %v9446_v16 = vpack.i.bf16 %v313_v8, %v309_v7  ;;  %v317_v20 = vrot.slane %v10089_v12, %v10009_v39  ;;  %v321_v26 = vrot.slane %v10094_v15, %v10009_v39  ;;  %v325_v30 = vrot.slane %v10106_v24, %v10009_v39 }
  0xf4   :  { %v329_v31 = vrot.slane %v10110_v25, %v10009_v39  ;;  %v10129_v35 = vcombine.high %v10106_v24, %v10106_v24  ;;  %v222_v37 = vcombine.high %v220_v27, %v220_v27  ;;  %v10132_v40 = vrot.slane %v220_v27, %v10000_v29 }
  0xf5   :  { %v144_v61 = vpop.f32.mrb[8].mxu0  ;;  %v9461_v28 = vpack.i.bf16 %v321_v26, %v317_v20  ;;  %v5549_v48 = vshll.u32 %v5541_v13, 16  ;;  %v5561_v50 = vshrl.u32 %v5543_v11, 16  ;;  %v5565_v52 = vrot.slane %v5563_v33, 1 }
  0xf6   :  { %v10067_v0 = vpop.f32.mrb[9].mxu0  ;;  %9422 = vrot.lane.b32.xlu0 %v9416_v59, %s9889_s7  ;;  %9427 = vrot.lane.b32.xlu1 %v9416_v59, %s9887_s29  ;;  %v10121_v32 = vmul.f32 0.25, %v144_v61  ;;  %v10125_v34 = vpack.c.bf16 %v144_v61, %v144_v61  ;;  %v9476_v41 = vpack.i.bf16 %v329_v31, %v325_v30  ;;  %v333_v54 = vrot.slane %v10129_v35, %v10009_v39 }
  0xf7   :  { %v148_v3 = vpop.f32.mrb[10].mxu0  ;;  %v10144_v55 = vrot.slane %v222_v37, %v10000_v29  ;;  %v10148_v57 = vcombine.high %v10132_v40, %v10132_v40  ;;  %v337_v60 = vrot.slane %v10132_v40, %v10009_v39  ;;  %v5547_v61 = vshrl.u32 %v5541_v13, 16 }
  0xf8   :  { %v149_v4 = vpop.f32.mrb[11].mxu0  ;;  %v10136_v42 = vpack.c.bf16 %v10121_v32, %v10121_v32  ;;  %v5568_v53 = vshll.u32 %v10125_v34, 16  ;;  %v5551_v2 = vrot.slane %v5549_v48, 1  ;;  %v5566_v3 = vor.u32 %v5565_v52, %v5561_v50 }
  0xf9   :  { %v9491_v6 = vpack.i.bf16 %v337_v60, %v333_v54  ;;  %v341_v7 = vrot.slane %v10144_v55, %v10009_v39  ;;  %v345_v8 = vrot.slane %v10148_v57, %v10009_v39  ;;  %v1602_v31 = vpack.c.bf16 %v10031_v47, %v10031_v47  ;;  %v9702_v54 = vld [vmem:[%s12764_s4 + $0x18] sm:$0xff]  }
  0xfa   :  { %9432 = vrot.lane.b32.xlu0 %v9431_v5, %s9888_s30  ;;  %9437 = vrot.lane.b32.xlu1 %v9431_v5, %s9889_s7  ;;  %v5554_v59 = vshll.u32 %v10136_v42, 16  ;;  %v5570_v4 = vrot.slane %v5568_v53, 1  ;;  %v5552_v14 = vor.u32 %v5551_v2, %v5547_v61  ;;  %v7638_v33 = vshll.u32 %v10099_v18, 16 }
  0xfb   :  { %v9506_v20 = vpack.i.bf16 %v345_v8, %v341_v7  ;;  %v10203_v47 = vpack.c.bf16 %v10067_v0, %v10067_v0  ;;  %v10209_v37 = vpack.c.bf16 %v10080_v9, %v10080_v9  ;;  %v10238_v7 = vsel %vm637_vm1, %v9702_v54, 0  ;;  %v9705_v54 = vld [vmem:[%s12764_s4 + $0x2c] ss:$0 sps:$4 sm:$0x11]  }
  0xfc   :  { %v5556_v11 = vrot.slane %v5554_v59, 1  ;;  %v10166_v13 = vsel %vm5545_vm3, %v5566_v3, %v5570_v4  ;;  %v7640_v48 = vrot.slane %v7638_v33, 1 }
  0xfd   :  { %12816 = vst [vmem:[#allocation3_spill] sm:$0xff] %v10203_v47  ;;  %v7643_v50 = vshll.u32 %v10203_v47, 16 }
  0xfe   :  { %9442 = vrot.lane.b32.xlu0 %v9431_v5, %s9887_s29  ;;  %9447 = vrot.lane.b32.xlu1 %v9446_v16, %s9888_s30  ;;  %v10157_v5 = vrot.slane %v10080_v9, %v10000_v29  ;;  %v10177_v26 = vsel %vm5545_vm3, %v5552_v14, %v5556_v11 }
  0xff   :  { %12815 = vst [vmem:[#allocation2_spill] sm:$0xff] %v10177_v26  ;;  %v7645_v52 = vrot.slane %v7643_v50, 1 }
 0x100   :  { %v10174_v19 = vrot.slane %v10157_v5, %v10000_v29 }
 0x102   :  { %9452 = vrot.lane.b32.xlu0 %v9446_v16, %s9889_s7  ;;  %9457 = vrot.lane.b32.xlu1 %v9446_v16, %s9887_s29  ;;  %v10170_v16 = vcombine.high %v10144_v55, %v10144_v55 }
 0x104   :  { %v349_v27 = vrot.slane %v10170_v16, %v10009_v39 }
 0x106   :  { %9462 = vrot.lane.b32.xlu0 %v9461_v28, %s9888_s30  ;;  %9467 = vrot.lane.b32.xlu1 %v9461_v28, %s9889_s7 }
 0x10a   :  { %9472 = vrot.lane.b32.xlu0 %v9461_v28, %s9887_s29  ;;  %9477 = vrot.lane.b32.xlu1 %v9476_v41, %s9888_s30  ;;  %v353_v28 = vrot.slane %v10174_v19, %v10009_v39 }
 0x10c   :  { %v9521_v30 = vpack.i.bf16 %v353_v28, %v349_v27 }
 0x10e   :  { %9482 = vrot.lane.b32.xlu0 %v9476_v41, %s9889_s7  ;;  %9487 = vrot.lane.b32.xlu1 %v9476_v41, %s9887_s29  ;;  %v7636_v41 = vshrl.u32 %v10099_v18, 16 }
 0x110   :  { %v7641_v0 = vor.u32 %v7640_v48, %v7636_v41 }
 0x112   :  { %9492 = vrot.lane.b32.xlu0 %v9491_v6, %s9888_s30  ;;  %9497 = vrot.lane.b32.xlu1 %v9491_v6, %s9889_s7  ;;  %v10222_v53 = vsel %vm5545_vm3, %v7641_v0, %v7645_v52  ;;  %vm4386_vm3 = vcmask 261120  }
 0x113   :  { %12817 = vst [vmem:[#allocation4_spill] sm:$0xff] %v10222_v53 }
 0x116   :  { %9502 = vrot.lane.b32.xlu0 %v9491_v6, %s9887_s29  ;;  %9507 = vrot.lane.b32.xlu1 %v9506_v20, %s9888_s30 }
 0x11a   :  { %9512 = vrot.lane.b32.xlu0 %v9506_v20, %s9889_s7  ;;  %9517 = vrot.lane.b32.xlu1 %v9506_v20, %s9887_s29 }
 0x11e   :  { %9522 = vrot.lane.b32.xlu0 %v9521_v30, %s9888_s30  ;;  %9527 = vrot.lane.b32.xlu1 %v9521_v30, %s9889_s7 }
 0x122   :  { %9532 = vrot.lane.b32.xlu0 %v9521_v30, %s9887_s29  ;;  %1605 = vrot.lane.b32.xlu1 %v10005_v36, %s9890_s8  ;;  %v9704_v30 = vld [vmem:[%s12764_s4 + $0x20] ss:$0 sps:$4 sm:$0x11]  }
 0x123   :  { %v10260_v0 = vsel %vm637_vm1, %v9704_v30, 0 }
 0x126   :  { %1763 = vrot.lane.b32.xlu0 %v10005_v36, %s9891_s9  ;;  %1607 = vrot.lane.b32.xlu1 %v1602_v31, %s9890_s8 }
 0x12a   :  { %1765 = vrot.lane.b32.xlu0 %v1602_v31, %s9891_s9  ;;  %1892 = vrot.lane.b32.xlu1 %v10005_v36, %s9892_s10 }
 0x12e   :  { %1759 = vrot.lane.b32.xlu0 %v10020_v44, %s9888_s30  ;;  %2021 = vrot.lane.b32.xlu1 %v10005_v36, %s9893_s11 }
 0x132   :  { %1761 = vrot.lane.b32.xlu0 %v10209_v37, %s9888_s30  ;;  %1894 = vrot.lane.b32.xlu1 %v1602_v31, %s9892_s10 }
 0x136   :  { %2023 = vrot.lane.b32.xlu0 %v1602_v31, %s9893_s11  ;;  %1888 = vrot.lane.b32.xlu1 %v10020_v44, %s9889_s7 }
 0x13a   :  { %1890 = vrot.lane.b32.xlu0 %v10209_v37, %s9889_s7  ;;  %2017 = vrot.lane.b32.xlu1 %v10020_v44, %s9887_s29 }
 0x13e   :  { %2019 = vrot.lane.b32.xlu0 %v10209_v37, %s9887_s29 }
 0x160   :  { %v457_v36 = vpop.permute.xlu1 %456  ;;  %v355_v18 = vpop.permute.xlu0 %354 }
 0x161   :  { %v508_v59 = vsel %vm507_vm4, %v10015_v43, %v355_v18  ;;  %v9703_v43 = vld [vmem:[%s12764_s4 + $0x24] sm:$0xff]  }
 0x162   :  { %v10256_v50 = vsel %vm637_vm1, %v9703_v43, 0 }
 0x164   :  { %v406_v60 = vpop.permute.xlu0 %405  ;;  %v9418_v2 = vpop.permute.xlu1 %9417 }
 0x165   :  { %v526_v61 = vsel %vm525_vm5, %v508_v59, %v406_v60  ;;  %v9419_v4 = vunpack.i.l.bf16 %v9418_v2  ;;  %v9420_v31 = vunpack.i.h.bf16 %v9418_v2 }
 0x166   :  { %v544_v3 = vsel %vm543_vm6, %v526_v61, %v457_v36 }
 0x167   :  { %v561_v6 = vpack.c.bf16 %v544_v3, %v544_v3  ;;  %v509_v20 = vsel %vm507_vm4, %v10028_v46, %v9419_v4  ;;  %v510_v52 = vsel %vm507_vm4, %v10037_v49, %v9420_v31  ;;  %v9706_v49 = vld [vmem:[%s12764_s4 + $0x30] sm:$0xff]   ;;  %v10279_v4 = vsel %vm637_vm1, %v9705_v54, 0 }
 0x168   :  { %v9423_v8 = vpop.permute.xlu0 %9422  ;;  %v9428_v14 = vpop.permute.xlu1 %9427 }
 0x169   :  { %v9424_v11 = vunpack.i.l.bf16 %v9423_v8  ;;  %8702 = vmatmul.mubr.msk.bf16.vlgmr.msra.gmra.mrb[12].mxu0 %vm637_vm1, %v561_v6  ;;  %v9429_v27 = vunpack.i.l.bf16 %v9428_v14  ;;  %v9425_v41 = vunpack.i.h.bf16 %v9423_v8  ;;  %v9430_v36 = vunpack.i.h.bf16 %v9428_v14 }
 0x16a   :  { %8714 = vmatpush3.bf16.xpose.msra.mxu0 %v10238_v7  ;;  %8717 = vmatprep.mubr.msk.bf16.mxu0 %vm9886_vm2, %v12773_v17  ;;  %v10284_v14 = vsel %vm637_vm1, %v9706_v49, 0 }
 0x16b   :  { %v527_v28 = vsel %vm525_vm5, %v509_v20, %v9424_v11  ;;  %8715 = vmatprep.subr.bf16.mxu0 %v12773_v17  ;;  %v528_v18 = vsel %vm525_vm5, %v510_v52, %v9425_v41  ;;  %v9707_v20 = vld [vmem:[%s12764_s4 + $0x3c] sm:$0xff]  }
 0x16c   :  { %v545_v33 = vsel %vm543_vm6, %v527_v28, %v9429_v27  ;;  %v9433_v48 = vpop.permute.xlu0 %9432  ;;  %v9438_v59 = vpop.permute.xlu1 %9437  ;;  %v546_v2 = vsel %vm543_vm6, %v528_v18, %v9430_v36 }
 0x16d   :  { %v562_v46 = vpack.c.bf16 %v545_v33, %v545_v33  ;;  %v9434_v60 = vunpack.i.l.bf16 %v9433_v48  ;;  %v9439_v3 = vunpack.i.l.bf16 %v9438_v59  ;;  %v563_v11 = vpack.c.bf16 %v546_v2, %v546_v2 }
 0x16e   :  { %v9435_v28 = vunpack.i.h.bf16 %v9433_v48  ;;  %v10302_v33 = vsel %vm637_vm1, %v9707_v20, 0  ;;  %v9440_v41 = vunpack.i.h.bf16 %v9438_v59  ;;  %v9709_v48 = vld [vmem:[%s12764_s4 + $0x44] ss:$0 sps:$4 sm:$0x11]   ;;  %v9711_v20 = vld [vmem:[%s12764_s4 + $0x54] sm:$0xff]  }
 0x16f   :  { %8710 = vmatmul.mubr.msk.bf16.vlgmr.msra.gmra.mrb[0].mxu1 %vm637_vm1, %v562_v46  ;;  %v511_v6 = vsel %vm507_vm4, %v10051_v56, %v9434_v60  ;;  %v9708_v56 = vld [vmem:[%s12764_s4 + $0x38] ss:$0 sps:$4 sm:$0x11]   ;;  %v10325_v2 = vsel %vm637_vm1, %v9709_v48, 0 }
 0x170   :  { %8722 = vmatpush3.bf16.xpose.msra.mxu1 %v10256_v50  ;;  %8725 = vmatprep.mubr.msk.bf16.mxu1 %vm9886_vm2, %v12773_v17  ;;  %v9443_v61 = vpop.permute.xlu0 %9442  ;;  %v529_v43 = vsel %vm525_vm5, %v511_v6, %v9439_v3  ;;  %v9448_v31 = vpop.permute.xlu1 %9447  ;;  %v10306_v46 = vsel %vm637_vm1, %v9708_v56, 0  ;;  %v512_v52 = vsel %vm507_vm4, %v10054_v58, %v9435_v28  ;;  %12818 = vst [vmem:[#allocation5_spill] sm:$0xff] %v10325_v2 }
 0x171   :  { %8723 = vmatprep.subr.bf16.mxu1 %v12773_v17  ;;  %v9444_v8 = vunpack.i.l.bf16 %v9443_v61  ;;  %v9445_v36 = vunpack.i.h.bf16 %v9443_v61  ;;  %v9449_v54 = vunpack.i.l.bf16 %v9448_v31  ;;  %v530_v59 = vsel %vm525_vm5, %v512_v52, %v9440_v41  ;;  %v9710_v61 = vld [vmem:[%s12764_s4 + $0x48] sm:$0xff]  }
 0x172   :  { %8716 = vmatpush3.bf16.xpose.msra.mxu0 %v10260_v0  ;;  %v9450_v56 = vunpack.i.h.bf16 %v9448_v31  ;;  %v10348_v52 = vsel %vm637_vm1, %v9711_v20, 0 }
 0x173   :  { %8729 = vmatprep.subr.bf16.mxu0 %v12773_v17  ;;  %v547_v27 = vsel %vm543_vm6, %v529_v43, %v9444_v8  ;;  %v548_v49 = vsel %vm543_vm6, %v530_v59, %v9445_v36  ;;  %v513_v3 = vsel %vm507_vm4, %v10061_v62, %v9449_v54  ;;  %v10331_v43 = vsel %vm637_vm1, %v9710_v61, 0  ;;  %v9712_v62 = vld [vmem:[%s12764_s4 + $0x50] ss:$0 sps:$4 sm:$0x11]   ;;  %12820 = vst [vmem:[#allocation7_spill] sm:$0xff] %v10348_v52 }
 0x174   :  { %v564_v30 = vpack.c.bf16 %v547_v27, %v547_v27  ;;  %v9453_v18 = vpop.permute.xlu0 %9452  ;;  %v9458_v58 = vpop.permute.xlu1 %9457  ;;  %v565_v8 = vpack.c.bf16 %v548_v49, %v548_v49  ;;  %12819 = vst [vmem:[#allocation6_spill] sm:$0xff] %v10331_v43  ;;  %v10352_v36 = vsel %vm637_vm1, %v9712_v62, 0  ;;  %v514_v48 = vsel %vm507_vm4, %v10065_v63, %v9450_v56  ;;  %v9714_v63 = vld [vmem:[%s12764_s4 + $0x60] sm:$0xff]   ;;  %v9715_v62 = vld [vmem:[%s12764_s4 + $0x6c] sm:$0xff]  }
 0x175   :  { %v9454_v60 = vunpack.i.l.bf16 %v9453_v18  ;;  %v9459_v6 = vunpack.i.l.bf16 %v9458_v58  ;;  %v9455_v28 = vunpack.i.h.bf16 %v9453_v18  ;;  %12821 = vst [vmem:[#allocation8_spill] sm:$0xff] %v10352_v36  ;;  %v9460_v54 = vunpack.i.h.bf16 %v9458_v58  ;;  %v9713_v18 = vld [vmem:[%s12764_s4 + $0x5c] ss:$0 sps:$4 sm:$0x11]  }
 0x176   :  { %v10376_v20 = vsel %vm637_vm1, %v9714_v63, 0 }
 0x177   :  { %v532_v31 = vsel %vm525_vm5, %v514_v48, %v9455_v28  ;;  %12823 = vst [vmem:[#allocation10_spill] sm:$0xff] %v10376_v20 }
 0x178   :  { %8724 = vmatpush3.bf16.xpose.msra.mxu1 %v10279_v4  ;;  %v9463_v41 = vpop.permute.xlu0 %9462  ;;  %v9468_v59 = vpop.permute.xlu1 %9467  ;;  %v550_v58 = vsel %vm543_vm6, %v532_v31, %v9460_v54  ;;  %v10394_v54 = vsel %vm637_vm1, %v9715_v62, 0 }
 0x179   :  { %8718 = vmatmul.mubr.msk.bf16.vlgmr.msra.gmra.mrb[16].mxu0 %vm637_vm1, %v563_v11  ;;  %8737 = vmatprep.subr.bf16.mxu1 %v12773_v17  ;;  %v531_v11 = vsel %vm525_vm5, %v513_v3, %v9454_v60  ;;  %v9464_v60 = vunpack.i.l.bf16 %v9463_v41  ;;  %v9469_v49 = vunpack.i.l.bf16 %v9468_v59  ;;  %v10371_v3 = vsel %vm637_vm1, %v9713_v18, 0  ;;  %12824 = vst [vmem:[#allocation11_spill] sm:$0xff] %v10394_v54 }
 0x17a   :  { %8730 = vmatpush3.bf16.xpose.msra.mxu0 %v10284_v14  ;;  %8733 = vmatprep.mubr.msk.bf16.mxu0 %vm9886_vm2, %v12773_v17  ;;  %v549_v27 = vsel %vm543_vm6, %v531_v11, %v9459_v6  ;;  %12822 = vst [vmem:[#allocation9_spill] sm:$0xff] %v10371_v3  ;;  %v567_v11 = vpack.c.bf16 %v550_v58, %v550_v58  ;;  %v9465_v28 = vunpack.i.h.bf16 %v9463_v41  ;;  %v9470_v31 = vunpack.i.h.bf16 %v9468_v59  ;;  %v9717_v41 = vld [vmem:[%s12764_s4 + $0x74] ss:$0 sps:$4 sm:$0x11]  }
 0x17b   :  { %8731 = vmatprep.subr.bf16.mxu0 %v12773_v17  ;;  %v515_v6 = vsel %vm507_vm4, %v10089_v12, %v9464_v60  ;;  %v9716_v12 = vld [vmem:[%s12764_s4 + $0x68] ss:$0 sps:$4 sm:$0x11]  }
 0x17c   :  { %v9473_v61 = vpop.permute.xlu0 %9472  ;;  %v9478_v48 = vpop.permute.xlu1 %9477  ;;  %v10398_v18 = vsel %vm637_vm1, %v9716_v12, 0  ;;  %v516_v60 = vsel %vm507_vm4, %v10094_v15, %v9465_v28 }
 0x17d   :  { %12825 = vst [vmem:[#allocation12_spill] sm:$0xff] %v10398_v18  ;;  %v9475_v63 = vunpack.i.h.bf16 %v9473_v61  ;;  %v9479_v59 = vunpack.i.l.bf16 %v9478_v48 }
 0x17f   :  { %8726 = vmatmul.mubr.msk.bf16.vlgmr.msra.gmra.mrb[4].mxu1 %vm637_vm1, %v564_v30  ;;  %v566_v30 = vpack.c.bf16 %v549_v27, %v549_v27  ;;  %v533_v27 = vsel %vm525_vm5, %v515_v6, %v9469_v49  ;;  %v534_v49 = vsel %vm525_vm5, %v516_v60, %v9470_v31  ;;  %v9480_v60 = vunpack.i.h.bf16 %v9478_v48 }
 0x180   :  { %8738 = vmatpush3.bf16.xpose.msra.mxu1 %v10302_v33  ;;  %8741 = vmatprep.mubr.msk.bf16.mxu1 %vm9886_vm2, %v12773_v17  ;;  %v9483_v58 = vpop.permute.xlu0 %9482  ;;  %v9488_v15 = vpop.permute.xlu1 %9487 }
 0x181   :  { %8739 = vmatprep.subr.bf16.mxu1 %v12773_v17  ;;  %v9484_v6 = vunpack.i.l.bf16 %v9483_v58  ;;  %v9489_v62 = vunpack.i.l.bf16 %v9488_v15 }
 0x182   :  { %8732 = vmatpush3.bf16.xpose.msra.mxu0 %v10306_v46 }
 0x183   :  { %8745 = vmatprep.subr.bf16.mxu0 %v12773_v17 }
 0x188   :  { %8740 = vmatpush3.bf16.xpose.msra.mxu1 %v10325_v2 }
 0x189   :  { %8734 = vmatmul.mubr.msk.bf16.vlgmr.msra.gmra.mrb[20].mxu0 %vm637_vm1, %v565_v8  ;;  %8753 = vmatprep.subr.bf16.mxu1 %v12773_v17  ;;  %v9474_v8 = vunpack.i.l.bf16 %v9473_v61  ;;  %v9718_v61 = vld [vmem:[%s12764_s4 + $0x78] sm:$0xff]  }
 0x18a   :  { %8746 = vmatpush3.bf16.xpose.msra.mxu0 %v10331_v43  ;;  %8749 = vmatprep.mubr.msk.bf16.mxu0 %vm9886_vm2, %v12773_v17  ;;  %v10423_v28 = vsel %vm637_vm1, %v9718_v61, 0  ;;  %v518_v61 = vsel %vm507_vm4, %v10110_v25, %v9480_v60  ;;  %v9722_v25 = vld [vmem:[%s12764_s4 + $0x90] sm:$0xff]  }
 0x18b   :  { %8747 = vmatprep.subr.bf16.mxu0 %v12773_v17  ;;  %v551_v56 = vsel %vm543_vm6, %v533_v27, %v9474_v8  ;;  %v552_v8 = vsel %vm543_vm6, %v534_v49, %v9475_v63  ;;  %v517_v27 = vsel %vm507_vm4, %v10106_v24, %v9479_v59  ;;  %12827 = vst [vmem:[#allocation14_spill] sm:$0xff] %v10423_v28  ;;  %v9720_v24 = vld [vmem:[%s12764_s4 + $0x80] ss:$0 sps:$4 sm:$0x11]   ;;  %v9485_v63 = vunpack.i.h.bf16 %v9483_v58  ;;  %v9493_v59 = vpop.permute.xlu0 %9492 }
 0x18c   :  { %v535_v12 = vsel %vm525_vm5, %v517_v27, %v9484_v6  ;;  %v10444_v6 = vsel %vm637_vm1, %v9720_v24, 0  ;;  %v9721_v58 = vld [vmem:[%s12764_s4 + $0x8c] ss:$0 sps:$4 sm:$0x11]   ;;  %v9498_v27 = vpop.permute.xlu1 %9497 }
 0x18d   :  { %v553_v31 = vsel %vm543_vm6, %v535_v12, %v9489_v62  ;;  %12829 = vst [vmem:[#allocation16_spill] sm:$0xff] %v10444_v6  ;;  %v536_v48 = vsel %vm525_vm5, %v518_v61, %v9485_v63  ;;  %v9494_v62 = vunpack.i.l.bf16 %v9493_v59  ;;  %v9499_v12 = vunpack.i.l.bf16 %v9498_v27  ;;  %v9723_v61 = vld [vmem:[%s12764_s4 + $0x9c] sm:$0xff]  }
 0x18e   :  { %v10468_v63 = vsel %vm637_vm1, %v9722_v25, 0  ;;  %v10486_v25 = vsel %vm637_vm1, %v9723_v61, 0 }
 0x18f   :  { %8742 = vmatmul.mubr.msk.bf16.vlgmr.msra.gmra.mrb[8].mxu1 %vm637_vm1, %v566_v30  ;;  %v568_v30 = vpack.c.bf16 %v551_v56, %v551_v56  ;;  %v569_v56 = vpack.c.bf16 %v552_v8, %v552_v8  ;;  %v9490_v8 = vunpack.i.h.bf16 %v9488_v15  ;;  %12831 = vst [vmem:[#allocation18_spill] sm:$0xff] %v10468_v63  ;;  %12832 = vst [vmem:[#allocation19_spill] sm:$0xff] %v10486_v25 }
 0x190   :  { %8754 = vmatpush3.bf16.xpose.msra.mxu1 %v10348_v52  ;;  %8757 = vmatprep.mubr.msk.bf16.mxu1 %vm9886_vm2, %v12773_v17 }
 0x191   :  { %8755 = vmatprep.subr.bf16.mxu1 %v12773_v17  ;;  %v554_v15 = vsel %vm543_vm6, %v536_v48, %v9490_v8  ;;  %v9495_v48 = vunpack.i.h.bf16 %v9493_v59  ;;  %v9725_v59 = vld [vmem:[%s12764_s4 + $0xa4] ss:$0 sps:$4 sm:$0x11]  }
 0x192   :  { %8748 = vmatpush3.bf16.xpose.msra.mxu0 %v10352_v36  ;;  %v571_v60 = vpack.c.bf16 %v554_v15, %v554_v15  ;;  %v9500_v15 = vunpack.i.h.bf16 %v9498_v27 }
 0x193   :  { %8761 = vmatprep.subr.bf16.mxu0 %v12773_v17 }
 0x198   :  { %8756 = vmatpush3.bf16.xpose.msra.mxu1 %v10371_v3 }
 0x199   :  { %8750 = vmatmul.mubr.msk.bf16.vlgmr.msra.gmra.mrb[24].mxu0 %vm637_vm1, %v567_v11  ;;  %8769 = vmatprep.subr.bf16.mxu1 %v12773_v17  ;;  %v10417_v11 = vsel %vm637_vm1, %v9717_v41, 0  ;;  %v570_v41 = vpack.c.bf16 %v553_v31, %v553_v31  ;;  %v519_v31 = vsel %vm507_vm4, %v10129_v35, %v9494_v62  ;;  %v9724_v35 = vld [vmem:[%s12764_s4 + $0x98] ss:$0 sps:$4 sm:$0x11]   ;;  %v9508_v62 = vpop.permute.xlu1 %9507 }
 0x19a   :  { %8762 = vmatpush3.bf16.xpose.msra.mxu0 %v10376_v20  ;;  %8765 = vmatprep.mubr.msk.bf16.mxu0 %vm9886_vm2, %v12773_v17  ;;  %12826 = vst [vmem:[#allocation13_spill] sm:$0xff] %v10417_v11  ;;  %v9509_v27 = vunpack.i.l.bf16 %v9508_v62 }
 0x19b   :  { %8763 = vmatprep.subr.bf16.mxu0 %v12773_v17 }
 0x19f   :  { %8758 = vmatmul.mubr.msk.bf16.vlgmr.msra.gmra.mrb[12].mxu1 %vm637_vm1, %v568_v30  ;;  %v9719_v30 = vld [vmem:[%s12764_s4 + $0x84] sm:$0xff]  }
 0x1a0   :  { %8770 = vmatpush3.bf16.xpose.msra.mxu1 %v10394_v54  ;;  %8773 = vmatprep.mubr.msk.bf16.mxu1 %vm9886_vm2, %v12773_v17  ;;  %v10440_v49 = vsel %vm637_vm1, %v9719_v30, 0  ;;  %v10463_v30 = vsel %vm637_vm1, %v9721_v58, 0 }
 0x1a1   :  { %8771 = vmatprep.subr.bf16.mxu1 %v12773_v17  ;;  %12828 = vst [vmem:[#allocation15_spill] sm:$0xff] %v10440_v49  ;;  %12830 = vst [vmem:[#allocation17_spill] sm:$0xff] %v10463_v30 }
 0x1a2   :  { %8764 = vmatpush3.bf16.xpose.msra.mxu0 %v10398_v18 }
 0x1a3   :  { %8777 = vmatprep.subr.bf16.mxu0 %v12773_v17 }
 0x1a8   :  { %8772 = vmatpush3.bf16.xpose.msra.mxu1 %v10417_v11 }
 0x1a9   :  { %8766 = vmatmul.mubr.msk.bf16.vlgmr.msra.gmra.mrb[28].mxu0 %vm637_vm1, %v569_v56  ;;  %8785 = vmatprep.subr.bf16.mxu1 %v12773_v17  ;;  %v9503_v56 = vpop.permute.xlu0 %9502 }
 0x1aa   :  { %8778 = vmatpush3.bf16.xpose.msra.mxu0 %v10423_v28  ;;  %8781 = vmatprep.mubr.msk.bf16.mxu0 %vm9886_vm2, %v12773_v17  ;;  %v9504_v24 = vunpack.i.l.bf16 %v9503_v56 }
 0x1ab   :  { %8779 = vmatprep.subr.bf16.mxu0 %v12773_v17 }
 0x1af   :  { %8774 = vmatmul.mubr.msk.bf16.vlgmr.msra.gmra.mrb[16].mxu1 %vm637_vm1, %v570_v41  ;;  %v537_v41 = vsel %vm525_vm5, %v519_v31, %v9499_v12  ;;  %v10490_v12 = vsel %vm637_vm1, %v9724_v35, 0  ;;  %v520_v31 = vsel %vm507_vm4, %v10132_v40, %v9495_v48  ;;  %v9518_v40 = vpop.permute.xlu1 %9517  ;;  %v10509_v35 = vsel %vm637_vm1, %v9725_v59, 0 }
 0x1b0   :  { %8786 = vmatpush3.bf16.xpose.msra.mxu1 %v10440_v49  ;;  %8789 = vmatprep.mubr.msk.bf16.mxu1 %vm9886_vm2, %v12773_v17  ;;  %v555_v8 = vsel %vm543_vm6, %v537_v41, %v9504_v24  ;;  %12833 = vst [vmem:[#allocation20_spill] sm:$0xff] %v10490_v12  ;;  %v9505_v24 = vunpack.i.h.bf16 %v9503_v56  ;;  %v538_v41 = vsel %vm525_vm5, %v520_v31, %v9500_v15  ;;  %v9726_v56 = vld [vmem:[%s12764_s4 + $0xa8] sm:$0xff]   ;;  %12834 = vst [vmem:[#allocation21_spill] sm:$0xff] %v10509_v35 }
 0x1b1   :  { %8787 = vmatprep.subr.bf16.mxu1 %v12773_v17  ;;  %v572_v58 = vpack.c.bf16 %v555_v8, %v555_v8  ;;  %v521_v48 = vsel %vm507_vm4, %v10144_v55, %v9509_v27  ;;  %v10515_v31 = vsel %vm637_vm1, %v9726_v56, 0  ;;  %v9510_v27 = vunpack.i.h.bf16 %v9508_v62 }
 0x1b2   :  { %8780 = vmatpush3.bf16.xpose.msra.mxu0 %v10444_v6  ;;  %v556_v8 = vsel %vm543_vm6, %v538_v41, %v9505_v24  ;;  %12835 = vst [vmem:[#allocation22_spill] sm:$0xff] %v10515_v31  ;;  %v9727_v24 = vld [vmem:[%s12764_s4 + $0xb4] sm:$0xff]  }
 0x1b3   :  { %8793 = vmatprep.subr.bf16.mxu0 %v12773_v17  ;;  %v573_v1 = vpack.c.bf16 %v556_v8, %v556_v8  ;;  %v9528_v55 = vpop.permute.xlu1 %9527  ;;  %v10532_v8 = vsel %vm637_vm1, %v9727_v24, 0  ;;  %v9729_v24 = vld [vmem:[%s12764_s4 + $0xbc] ss:$0 sps:$4 sm:$0x11]  }
 0x1b4   :  { %12836 = vst [vmem:[#allocation23_spill] sm:$0xff] %v10532_v8 }
 0x1b8   :  { %8788 = vmatpush3.bf16.xpose.msra.mxu1 %v10463_v30 }
 0x1b9   :  { %8782 = vmatmul.mubr.msk.bf16.vlgmr.msra.gmra.mrb[32].mxu0 %vm637_vm1, %v571_v60  ;;  %8801 = vmatprep.subr.bf16.mxu1 %v12773_v17  ;;  %v9513_v60 = vpop.permute.xlu0 %9512 }
 0x1ba   :  { %8794 = vmatpush3.bf16.xpose.msra.mxu0 %v10468_v63  ;;  %8797 = vmatprep.mubr.msk.bf16.mxu0 %vm9886_vm2, %v12773_v17  ;;  %v9514_v61 = vunpack.i.l.bf16 %v9513_v60  ;;  %v9515_v41 = vunpack.i.h.bf16 %v9513_v60  ;;  %v1606_v60 = vpop.permute.xlu1 %1605 }
 0x1bb   :  { %8795 = vmatprep.subr.bf16.mxu0 %v12773_v17 }
 0x1bc   :  { %v539_v15 = vsel %vm525_vm5, %v521_v48, %v9514_v61 }
 0x1bd   :  { %v9523_v56 = vpop.permute.xlu0 %9522 }
 0x1be   :  { %v1608_v53 = vpop.permute.xlu1 %1607 }
 0x1bf   :  { %8790 = vmatmul.mubr.msk.bf16.vlgmr.msra.gmra.mrb[20].mxu1 %vm637_vm1, %v572_v58  ;;  %v9519_v58 = vunpack.i.l.bf16 %v9518_v40 }
 0x1c0   :  { %8802 = vmatpush3.bf16.xpose.msra.mxu1 %v10486_v25  ;;  %8805 = vmatprep.mubr.msk.bf16.mxu1 %vm9886_vm2, %v12773_v17 }
 0x1c1   :  { %8803 = vmatprep.subr.bf16.mxu1 %v12773_v17  ;;  %v557_v59 = vsel %vm543_vm6, %v539_v15, %v9519_v58  ;;  %v522_v58 = vsel %vm507_vm4, %v10148_v57, %v9510_v27  ;;  %v9520_v15 = vunpack.i.h.bf16 %v9518_v40  ;;  %v9730_v57 = vld [vmem:[%s12764_s4 + $0xc0] sm:$0xff]   ;;  %v9529_v27 = vunpack.i.l.bf16 %v9528_v55 }
 0x1c2   :  { %8796 = vmatpush3.bf16.xpose.msra.mxu0 %v10490_v12  ;;  %v574_v61 = vpack.c.bf16 %v557_v59, %v557_v59  ;;  %v540_v62 = vsel %vm525_vm5, %v522_v58, %v9515_v41  ;;  %v9524_v59 = vunpack.i.l.bf16 %v9523_v56  ;;  %v10555_v41 = vsel %vm637_vm1, %v9729_v24, 0 }
 0x1c3   :  { %8809 = vmatprep.subr.bf16.mxu0 %v12773_v17  ;;  %v558_v40 = vsel %vm543_vm6, %v540_v62, %v9520_v15  ;;  %12838 = vst [vmem:[#allocation25_spill] sm:$0xff] %v10555_v41  ;;  %v12840_v62 = vmov 0.0   ;;  %v9525_v24 = vunpack.i.h.bf16 %v9523_v56 }
 0x1c4   :  { %v575_v47 = vpack.c.bf16 %v558_v40, %v558_v40  ;;  %v1893_v40 = vpop.permute.xlu1 %1892 }
 0x1c8   :  { %8804 = vmatpush3.bf16.xpose.msra.mxu1 %v10509_v35 }
 0x1c9   :  { %8798 = vmatmul.mubr.msk.bf16.vlgmr.msra.gmra.mrb[36].mxu0 %vm637_vm1, %v573_v1  ;;  %8817 = vmatprep.subr.bf16.mxu1 %v12773_v17  ;;  %v9728_v1 = vld [vmem:[%s12764_s4 + $0xb0] ss:$0 sps:$4 sm:$0x11]  }
 0x1ca   :  { %8810 = vmatpush3.bf16.xpose.msra.mxu0 %v10515_v31  ;;  %8813 = vmatprep.mubr.msk.bf16.mxu0 %vm9886_vm2, %v12773_v17  ;;  %v10536_v48 = vsel %vm637_vm1, %v9728_v1, 0  ;;  %v9533_v1 = vpop.permute.xlu0 %9532 }
 0x1cb   :  { %8811 = vmatprep.subr.bf16.mxu0 %v12773_v17  ;;  %12837 = vst [vmem:[#allocation24_spill] sm:$0xff] %v10536_v48  ;;  %v9534_v58 = vunpack.i.l.bf16 %v9533_v1 }
 0x1cf   :  { %8806 = vmatmul.mubr.msk.bf16.vlgmr.msra.gmra.mrb[24].mxu1 %vm637_vm1, %v574_v61  ;;  %v523_v61 = vsel %vm507_vm4, %v10170_v16, %v9524_v59  ;;  %v9731_v16 = vld [vmem:[%s12764_s4 + $0xc8] ss:$0 sps:$4 sm:$0x11]  }
 0x1d0   :  { %8818 = vmatpush3.bf16.xpose.msra.mxu1 %v10532_v8  ;;  %8821 = vmatprep.mubr.msk.bf16.mxu1 %vm9886_vm2, %v12773_v17  ;;  %v10560_v8 = vsel %vm637_vm1, %v9730_v57, 0  ;;  %v1764_v57 = vpop.permute.xlu0 %1763 }
 0x1d1   :  { %8819 = vmatprep.subr.bf16.mxu1 %v12773_v17  ;;  %12839 = vst [vmem:[#allocation26_spill] sm:$0xff] %v10560_v8 }
 0x1d2   :  { %8812 = vmatpush3.bf16.xpose.msra.mxu0 %v10536_v48 }
 0x1d3   :  { %8825 = vmatprep.subr.bf16.mxu0 %v12773_v17  ;;  %v541_v17 = vsel %vm525_vm5, %v523_v61, %v9529_v27  ;;  %v10577_v27 = vsel %vm637_vm1, %v9731_v16, 0  ;;  %v524_v61 = vsel %vm507_vm4, %v10174_v19, %v9525_v24  ;;  %v1674_v24 = vsel %vm637_vm1, %v1608_v53, 0 }
 0x1d4   :  { %v559_v15 = vsel %vm543_vm6, %v541_v17, %v9534_v58  ;;  %v1671_v17 = vsel %vm637_vm1, %v1606_v60, 0  ;;  %12841 = vst [vmem:[#allocation27_spill] sm:$0xff] %v10577_v27  ;;  %v9535_v58 = vunpack.i.h.bf16 %v9533_v1  ;;  %v1766_v56 = vpop.permute.xlu0 %1765 }
 0x1d5   :  { %v576_v59 = vpack.c.bf16 %v559_v15, %v559_v15  ;;  %v2022_v15 = vpop.permute.xlu1 %2021 }
 0x1d8   :  { %8820 = vmatpush3.bf16.xpose.msra.mxu1 %v10555_v41  ;;  %v1760_v1 = vpop.permute.xlu0 %1759 }
 0x1d9   :  { %8814 = vmatmul.mubr.msk.bf16.vlgmr.msra.gmra.mrb[40].mxu0 %vm637_vm1, %v575_v47  ;;  %9389 = vmatprep.subr.msk.bf16.mxu1 %vm637_vm1, %v1606_v60  ;;  %v9530_v47 = vunpack.i.h.bf16 %v9528_v55 }
 0x1da   :  { %8826 = vmatpush3.bf16.xpose.msra.mxu0 %v10560_v8  ;;  %8829 = vmatprep.mubr.msk.bf16.mxu0 %vm9886_vm2, %v12840_v62 }
 0x1db   :  { %8827 = vmatprep.subr.bf16.mxu0 %v12840_v62  ;;  %v542_v55 = vsel %vm525_vm5, %v524_v61, %v9530_v47 }
 0x1dc   :  { %v560_v60 = vsel %vm543_vm6, %v542_v55, %v9535_v58  ;;  %v1762_v61 = vpop.permute.xlu0 %1761 }
 0x1dd   :  { %v577_v16 = vpack.c.bf16 %v560_v60, %v560_v60 }
 0x1df   :  { %8822 = vmatmul.mubr.msk.bf16.vlgmr.msra.gmra.mrb[28].mxu1 %vm637_vm1, %v576_v59  ;;  %v1895_v59 = vpop.permute.xlu1 %1894 }
 0x1e0   :  { %8834 = vmatpush3.bf16.xpose.msra.mxu1 %v1671_v17  ;;  %8837 = vmatprep.mubr.msk.bf16.mxu1 %vm637_vm1, %v10020_v44  ;;  %v1806_v44 = vsel %vm637_vm1, %v1764_v57, 0  ;;  %v1809_v17 = vsel %vm637_vm1, %v1766_v56, 0  ;;  %v2024_v58 = vpop.permute.xlu0 %2023 }
 0x1e1   :  { %9390 = vmatprep.subr.msk.bf16.mxu1 %vm637_vm1, %v1608_v53  ;;  %v1935_v53 = vsel %vm637_vm1, %v1893_v40, 0 }
 0x1e2   :  { %8828 = vmatpush3.bf16.xpose.msra.mxu0 %v10577_v27 }
 0x1e3   :  { %9391 = vmatprep.subr.msk.bf16.mxu0 %vm637_vm1, %v1764_v57  ;;  %v1889_v47 = vpop.permute.xlu1 %1888  ;;  %v1938_v57 = vsel %vm637_vm1, %v1895_v59, 0 }
 0x1e7   :  { %v2018_v55 = vpop.permute.xlu1 %2017 }
 0x1e8   :  { %8836 = vmatpush3.bf16.xpose.msra.mxu1 %v1674_v24 }
 0x1e9   :  { %8830 = vmatmul.mubr.msk.bf16.vlgmr.msra.gmra.mrb[44].mxu0 %vm637_vm1, %v577_v16  ;;  %9393 = vmatprep.subr.msk.bf16.mxu1 %vm637_vm1, %v1893_v40  ;;  %v1891_v40 = vpop.permute.xlu0 %1890 }
 0x1ea   :  { %8842 = vmatpush3.bf16.xpose.msra.mxu0 %v1806_v44  ;;  %8845 = vmatprep.mubr.msk.bf16.mxu0 %vm637_vm1, %v1760_v1 }
 0x1eb   :  { %9392 = vmatprep.subr.msk.bf16.mxu0 %vm637_vm1, %v1766_v56  ;;  %v2067_v56 = vsel %vm637_vm1, %v2024_v58, 0 }
 0x1ed   :  { %v2020_v60 = vpop.permute.xlu0 %2019 }
 0x1ef   :  { %8838 = vmatmul.mubr.msk.bf16.vlgmr.msra.gmra.mrb[32].mxu1 %vm637_vm1, %v10209_v37  ;;  %v2064_v37 = vsel %vm637_vm1, %v2022_v15, 0 }
 0x1f0   :  { %8850 = vmatpush3.bf16.xpose.msra.mxu1 %v1935_v53  ;;  %8853 = vmatprep.mubr.msk.bf16.mxu1 %vm637_vm1, %v1889_v47 }
 0x1f1   :  { %9394 = vmatprep.subr.msk.bf16.mxu1 %vm637_vm1, %v1895_v59 }
 0x1f2   :  { %8844 = vmatpush3.bf16.xpose.msra.mxu0 %v1809_v17 }
 0x1f3   :  { %9395 = vmatprep.subr.msk.bf16.mxu0 %vm637_vm1, %v2022_v15 }
 0x1f8   :  { %8852 = vmatpush3.bf16.xpose.msra.mxu1 %v1938_v57 }
 0x1f9   :  { %8846 = vmatmul.mubr.msk.bf16.vlgmr.msra.gmra.mrb[48].mxu0 %vm637_vm1, %v1762_v61  ;;  %8865 = vmatprep.subr.bf16.mxu1 %v12840_v62 }
 0x1fa   :  { %8858 = vmatpush3.bf16.xpose.msra.mxu0 %v2064_v37  ;;  %8861 = vmatprep.mubr.msk.bf16.mxu0 %vm637_vm1, %v2018_v55 }
 0x1fb   :  { %9396 = vmatprep.subr.msk.bf16.mxu0 %vm637_vm1, %v2024_v58 }
 0x1ff   :  { %8854 = vmatmul.mubr.msk.bf16.vlgmr.msra.gmra.mrb[36].mxu1 %vm637_vm1, %v1891_v40 }
 0x200   :  { %8869 = vmatprep.mubr.msk.bf16.mxu1 %vm9886_vm2, %v12840_v62 }
 0x202   :  { %8860 = vmatpush3.bf16.xpose.msra.mxu0 %v2067_v56 }
 0x203   :  { %8873 = vmatprep.subr.bf16.mxu0 %v12840_v62 }
 0x209   :  { %8862 = vmatmul.mubr.msk.bf16.vlgmr.msra.gmra.mrb[52].mxu0 %vm637_vm1, %v2020_v60 }
 0x20a   :  { %8877 = vmatprep.mubr.msk.bf16.mxu0 %vm9886_vm2, %v12840_v62 }
 0x23c   :  { %v681_v15 = vpop.f32.mrb[12].mxu0 }
 0x23d   :  { %v8703_v16 = vpop.f32.mrb[13].mxu0  ;;  %v1767_v59 = vrot.slane %v681_v15, 1  ;;  %v1896_v44 = vrot.slane %v681_v15, 2  ;;  %v2025_v47 = vrot.slane %v681_v15, 3 }
 0x23e   :  { %v684_v24 = vpop.f32.mrb[14].mxu0 }
 0x23f   :  { %v8704_v1 = vpop.f32.mrb[15].mxu0 }
 0x242   :  { %v738_v53 = vpop.f32.mrb[0].mxu1 }
 0x243   :  { %v1626_v17 = vrot.slane %v738_v53, 7  ;;  %v1768_v61 = vsel %vm1627_vm7, %v738_v53, %v1767_v59  ;;  %v1897_v57 = vrot.slane %v738_v53, 1  ;;  %v2026_v58 = vrot.slane %v738_v53, 2  ;;  %v8711_v55 = vpop.f32.mrb[1].mxu1 }
 0x244   :  { %v741_v37 = vpop.f32.mrb[2].mxu1 }
 0x245   :  { %v1628_v40 = vsel %vm1627_vm7, %v1626_v17, %v681_v15  ;;  %v8712_v56 = vpop.f32.mrb[3].mxu1  ;;  %v1898_v60 = vsel %vm1627_vm7, %v1897_v57, %v1896_v44  ;;  %v2027_v16 = vsel %vm1627_vm7, %v2026_v58, %v2025_v47 }
 0x24c   :  { %v795_v24 = vpop.f32.mrb[16].mxu0 }
 0x24d   :  { %v1629_v1 = vrot.slane %v795_v24, 6  ;;  %v1769_v27 = vrot.slane %v795_v24, 7  ;;  %v1899_v41 = vsel %vm1630_vm8, %v795_v24, %v1898_v60  ;;  %v2028_v8 = vrot.slane %v795_v24, 1  ;;  %v8719_v48 = vpop.f32.mrb[17].mxu0 }
 0x24e   :  { %v798_v59 = vpop.f32.mrb[18].mxu0 }
 0x24f   :  { %v1631_v53 = vsel %vm1630_vm8, %v1629_v1, %v1628_v40  ;;  %v1770_v55 = vsel %vm1630_vm8, %v1769_v27, %v1768_v61  ;;  %v8720_v37 = vpop.f32.mrb[19].mxu0  ;;  %v2029_v15 = vsel %vm1630_vm8, %v2028_v8, %v2027_v16 }
 0x252   :  { %v852_v44 = vpop.f32.mrb[4].mxu1 }
 0x253   :  { %v1632_v17 = vrot.slane %v852_v44, 5  ;;  %v1771_v47 = vrot.slane %v852_v44, 6  ;;  %v1900_v57 = vrot.slane %v852_v44, 7  ;;  %v2030_v58 = vsel %vm1633_vm9, %v852_v44, %v2029_v15  ;;  %v8727_v56 = vpop.f32.mrb[5].mxu1 }
 0x254   :  { %v855_v35 = vpop.f32.mrb[6].mxu1 }
 0x255   :  { %v1634_v60 = vsel %vm1633_vm9, %v1632_v17, %v1631_v53  ;;  %v1772_v48 = vsel %vm1633_vm9, %v1771_v47, %v1770_v55  ;;  %v1901_v40 = vsel %vm1633_vm9, %v1900_v57, %v1899_v41  ;;  %v8728_v24 = vpop.f32.mrb[7].mxu1 }
 0x25c   :  { %v909_v27 = vpop.f32.mrb[20].mxu0 }
 0x25d   :  { %v1635_v61 = vrot.slane %v909_v27, 4  ;;  %v1773_v8 = vrot.slane %v909_v27, 5  ;;  %v1902_v16 = vrot.slane %v909_v27, 6  ;;  %v2031_v1 = vrot.slane %v909_v27, 7  ;;  %v8735_v59 = vpop.f32.mrb[21].mxu0 }
 0x25e   :  { %v912_v37 = vpop.f32.mrb[22].mxu0 }
 0x25f   :  { %v8736_v31 = vpop.f32.mrb[23].mxu0  ;;  %v1637_v15 = vsel %vm1636_vm10, %v1635_v61, %v1634_v60  ;;  %v1774_v35 = vsel %vm1636_vm10, %v1773_v8, %v1772_v48  ;;  %v1903_v53 = vsel %vm1636_vm10, %v1902_v16, %v1901_v40  ;;  %v2032_v55 = vsel %vm1636_vm10, %v2031_v1, %v2030_v58 }
 0x262   :  { %v966_v44 = vpop.f32.mrb[8].mxu1 }
 0x263   :  { %v1638_v41 = vrot.slane %v966_v44, 3  ;;  %v1775_v17 = vrot.slane %v966_v44, 4  ;;  %v1904_v47 = vrot.slane %v966_v44, 5  ;;  %v2033_v57 = vrot.slane %v966_v44, 6  ;;  %v8743_v56 = vpop.f32.mrb[9].mxu1 }
 0x264   :  { %v969_v24 = vpop.f32.mrb[10].mxu1 }
 0x265   :  { %v8744_v27 = vpop.f32.mrb[11].mxu1  ;;  %v1640_v59 = vsel %vm1639_vm11, %v1638_v41, %v1637_v15  ;;  %v1776_v31 = vsel %vm1639_vm11, %v1775_v17, %v1774_v35  ;;  %v1905_v60 = vsel %vm1639_vm11, %v1904_v47, %v1903_v53  ;;  %v2034_v48 = vsel %vm1639_vm11, %v2033_v57, %v2032_v55 }
 0x26c   :  { %v1023_v40 = vpop.f32.mrb[24].mxu0 }
 0x26d   :  { %v1641_v58 = vrot.slane %v1023_v40, 2  ;;  %v1777_v61 = vrot.slane %v1023_v40, 3  ;;  %v1906_v8 = vrot.slane %v1023_v40, 4  ;;  %v2035_v16 = vrot.slane %v1023_v40, 5  ;;  %v8751_v1 = vpop.f32.mrb[25].mxu0 }
 0x26e   :  { %v1026_v37 = vpop.f32.mrb[26].mxu0 }
 0x26f   :  { %v8752_v44 = vpop.f32.mrb[27].mxu0  ;;  %v1643_v56 = vsel %vm1642_vm12, %v1641_v58, %v1640_v59  ;;  %v1778_v24 = vsel %vm1642_vm12, %v1777_v61, %v1776_v31  ;;  %v1907_v15 = vsel %vm1642_vm12, %v1906_v8, %v1905_v60  ;;  %v2036_v35 = vsel %vm1642_vm12, %v2035_v16, %v2034_v48 }
 0x272   :  { %v1080_v53 = vpop.f32.mrb[12].mxu1 }
 0x273   :  { %v1644_v55 = vrot.slane %v1080_v53, 1  ;;  %v1779_v41 = vrot.slane %v1080_v53, 2  ;;  %v1908_v17 = vrot.slane %v1080_v53, 3  ;;  %v2037_v47 = vrot.slane %v1080_v53, 4  ;;  %v8759_v57 = vpop.f32.mrb[13].mxu1 }
 0x274   :  { %v1083_v27 = vpop.f32.mrb[14].mxu1 }
 0x275   :  { %v8760_v40 = vpop.f32.mrb[15].mxu1  ;;  %v10640_v1 = vsel %vm1645_vm13, %v1644_v55, %v1643_v56  ;;  %v10643_v59 = vsel %vm1645_vm13, %v1779_v41, %v1778_v24  ;;  %v10646_v31 = vsel %vm1645_vm13, %v1908_v17, %v1907_v15  ;;  %v10649_v60 = vsel %vm1645_vm13, %v2037_v47, %v2036_v35 }
 0x27c   :  { %v1137_v48 = vpop.f32.mrb[28].mxu0 }
 0x27d   :  { %v8767_v58 = vpop.f32.mrb[29].mxu0  ;;  %v1781_v16 = vrot.slane %v1137_v48, 1  ;;  %v1910_v37 = vrot.slane %v1137_v48, 2  ;;  %v2039_v44 = vrot.slane %v1137_v48, 3 }
 0x27e   :  { %v1140_v61 = vpop.f32.mrb[30].mxu0 }
 0x27f   :  { %v8768_v8 = vpop.f32.mrb[31].mxu0 }
 0x282   :  { %v1194_v53 = vpop.f32.mrb[16].mxu1 }
 0x283   :  { %v1647_v57 = vrot.slane %v1194_v53, 7  ;;  %v1782_v56 = vsel %vm1627_vm7, %v1194_v53, %v1781_v16  ;;  %v1911_v55 = vrot.slane %v1194_v53, 1  ;;  %v2040_v24 = vrot.slane %v1194_v53, 2  ;;  %v8775_v41 = vpop.f32.mrb[17].mxu1 }
 0x284   :  { %v1197_v27 = vpop.f32.mrb[18].mxu1 }
 0x285   :  { %v1648_v15 = vsel %vm1627_vm7, %v1647_v57, %v1137_v48  ;;  %v8776_v17 = vpop.f32.mrb[19].mxu1  ;;  %v1912_v35 = vsel %vm1627_vm7, %v1911_v55, %v1910_v37  ;;  %v2041_v47 = vsel %vm1627_vm7, %v2040_v24, %v2039_v44 }
 0x28c   :  { %v1251_v40 = vpop.f32.mrb[32].mxu0 }
 0x28d   :  { %v1649_v58 = vrot.slane %v1251_v40, 6  ;;  %v1783_v61 = vrot.slane %v1251_v40, 7  ;;  %v1913_v8 = vsel %vm1630_vm8, %v1251_v40, %v1912_v35  ;;  %v2042_v25 = vrot.slane %v1251_v40, 1  ;;  %v8783_v12 = vpop.f32.mrb[33].mxu0 }
 0x28e   :  { %v1254_v30 = vpop.f32.mrb[34].mxu0 }
 0x28f   :  { %v1650_v16 = vsel %vm1630_vm8, %v1649_v58, %v1648_v15  ;;  %v1784_v53 = vsel %vm1630_vm8, %v1783_v61, %v1782_v56  ;;  %v8784_v41 = vpop.f32.mrb[35].mxu0  ;;  %v2043_v48 = vsel %vm1630_vm8, %v2042_v25, %v2041_v47 }
 0x292   :  { %v1308_v57 = vpop.f32.mrb[20].mxu1 }
 0x293   :  { %v1651_v27 = vrot.slane %v1308_v57, 5  ;;  %v1785_v37 = vrot.slane %v1308_v57, 6  ;;  %v1914_v55 = vrot.slane %v1308_v57, 7  ;;  %v2044_v44 = vsel %vm1633_vm9, %v1308_v57, %v2043_v48  ;;  %v8791_v24 = vpop.f32.mrb[21].mxu1 }
 0x294   :  { %v1311_v17 = vpop.f32.mrb[22].mxu1 }
 0x295   :  { %v1652_v35 = vsel %vm1633_vm9, %v1651_v27, %v1650_v16  ;;  %v1786_v12 = vsel %vm1633_vm9, %v1785_v37, %v1784_v53  ;;  %v1915_v30 = vsel %vm1633_vm9, %v1914_v55, %v1913_v8  ;;  %v8792_v15 = vpop.f32.mrb[23].mxu1 }
 0x29c   :  { %v1365_v40 = vpop.f32.mrb[36].mxu0 }
 0x29d   :  { %v1653_v56 = vrot.slane %v1365_v40, 4  ;;  %v1787_v58 = vrot.slane %v1365_v40, 5  ;;  %v1916_v61 = vrot.slane %v1365_v40, 6  ;;  %v2045_v25 = vrot.slane %v1365_v40, 7  ;;  %v8799_v47 = vpop.f32.mrb[37].mxu0 }
 0x29e   :  { %v1368_v41 = vpop.f32.mrb[38].mxu0 }
 0x29f   :  { %v8800_v63 = vpop.f32.mrb[39].mxu0  ;;  %v1654_v49 = vsel %vm1636_vm10, %v1653_v56, %v1652_v35  ;;  %v1788_v48 = vsel %vm1636_vm10, %v1787_v58, %v1786_v12  ;;  %v1917_v57 = vsel %vm1636_vm10, %v1916_v61, %v1915_v30  ;;  %v2046_v16 = vsel %vm1636_vm10, %v2045_v25, %v2044_v44 }
 0x2a2   :  { %v1422_v53 = vpop.f32.mrb[24].mxu1 }
 0x2a3   :  { %v1655_v27 = vrot.slane %v1422_v53, 3  ;;  %v1789_v8 = vrot.slane %v1422_v53, 4  ;;  %v1918_v37 = vrot.slane %v1422_v53, 5  ;;  %v2047_v55 = vrot.slane %v1422_v53, 6  ;;  %v8807_v24 = vpop.f32.mrb[25].mxu1 }
 0x2a4   :  { %v1425_v17 = vpop.f32.mrb[26].mxu1 }
 0x2a5   :  { %v8808_v15 = vpop.f32.mrb[27].mxu1  ;;  %v1656_v40 = vsel %vm1639_vm11, %v1655_v27, %v1654_v49  ;;  %v1790_v63 = vsel %vm1639_vm11, %v1789_v8, %v1788_v48  ;;  %v1919_v35 = vsel %vm1639_vm11, %v1918_v37, %v1917_v57  ;;  %v2048_v12 = vsel %vm1639_vm11, %v2047_v55, %v2046_v16 }
 0x2ac   :  { %v1479_v56 = vpop.f32.mrb[40].mxu0 }
 0x2ad   :  { %v1657_v30 = vrot.slane %v1479_v56, 2  ;;  %v1791_v58 = vrot.slane %v1479_v56, 3  ;;  %v1920_v44 = vrot.slane %v1479_v56, 4  ;;  %v2049_v61 = vrot.slane %v1479_v56, 5  ;;  %v8815_v25 = vpop.f32.mrb[41].mxu0 }
 0x2ae   :  { %v1482_v47 = vpop.f32.mrb[42].mxu0 }
 0x2af   :  { %v8816_v41 = vpop.f32.mrb[43].mxu0  ;;  %v1658_v53 = vsel %vm1642_vm12, %v1657_v30, %v1656_v40  ;;  %v1792_v24 = vsel %vm1642_vm12, %v1791_v58, %v1790_v63  ;;  %v1921_v49 = vsel %vm1642_vm12, %v1920_v44, %v1919_v35  ;;  %v2050_v48 = vsel %vm1642_vm12, %v2049_v61, %v2048_v12 }
 0x2b2   :  { %v1536_v27 = vpop.f32.mrb[28].mxu1 }
 0x2b3   :  { %v1659_v57 = vrot.slane %v1536_v27, 1  ;;  %v1793_v8 = vrot.slane %v1536_v27, 2  ;;  %v1922_v16 = vrot.slane %v1536_v27, 3  ;;  %v2051_v37 = vrot.slane %v1536_v27, 4  ;;  %v8823_v55 = vpop.f32.mrb[29].mxu1 }
 0x2b4   :  { %v1539_v17 = vpop.f32.mrb[30].mxu1 }
 0x2b5   :  { %v8824_v15 = vpop.f32.mrb[31].mxu1  ;;  %v1660_v56 = vsel %vm1645_vm13, %v1659_v57, %v1658_v53  ;;  %v1794_v25 = vsel %vm1645_vm13, %v1793_v8, %v1792_v24  ;;  %v1923_v40 = vsel %vm1645_vm13, %v1922_v16, %v1921_v49  ;;  %v2052_v63 = vsel %vm1645_vm13, %v2051_v37, %v2050_v48 }
 0x2bc   :  { %v1593_v30 = vpop.f32.mrb[44].mxu0 }
 0x2bd   :  { %v8831_v35 = vpop.f32.mrb[45].mxu0  ;;  %v1795_v24 = vrot.slane %v1593_v30, 1  ;;  %v1924_v15 = vrot.slane %v1593_v30, 2 }
 0x2be   :  { %v1596_v58 = vpop.f32.mrb[46].mxu0 }
 0x2bf   :  { %v8832_v12 = vpop.f32.mrb[47].mxu0 }
 0x2c2   :  { %v8839_v44 = vpop.f32.mrb[32].mxu1 }
 0x2c3   :  { %v10679_v61 = vadd.f32 %v8839_v44, %v1593_v30  ;;  %v1710_v47 = vpop.f32.mrb[33].mxu1 }
 0x2c4   :  { %v10682_v41 = vadd.f32 %v1710_v47, %v10640_v1  ;;  %v8840_v27 = vpop.f32.mrb[34].mxu1 }
 0x2c5   :  { %v1713_v55 = vpop.f32.mrb[35].mxu1 }
 0x2c6   :  { %v10684_v53 = vadd.f32 %v1713_v55, %v1660_v56  ;;  %v1725_v27 = vsel %vm1724_vm14, %v10682_v41, -inf  ;;  %v2053_v55 = vrot.slane %v1593_v30, 3 }
 0x2c8   :  { %v1728_v30 = vsel %vm1724_vm14, %v10684_v53, -inf }
 0x2cc   :  { %v8847_v57 = vpop.f32.mrb[48].mxu0 }
 0x2cd   :  { %v10686_v49 = vadd.f32 %v8847_v57, %v1795_v24  ;;  %v1845_v48 = vpop.f32.mrb[49].mxu0 }
 0x2ce   :  { %v10689_v8 = vadd.f32 %v1845_v48, %v10643_v59  ;;  %v8848_v16 = vpop.f32.mrb[50].mxu0 }
 0x2cf   :  { %v1848_v37 = vpop.f32.mrb[51].mxu0 }
 0x2d0   :  { %v10691_v17 = vadd.f32 %v1848_v37, %v1794_v25  ;;  %v1859_v1 = vsel %vm1724_vm14, %v10689_v8, -inf }
 0x2d1   :  { %1860 = vmax.xlane.f32.xlu1 %v1859_v1 }
 0x2d2   :  { %v8855_v56 = vpop.f32.mrb[36].mxu1 }
 0x2d3   :  { %v10695_v35 = vadd.f32 %v8855_v56, %v1924_v15  ;;  %v1974_v58 = vpop.f32.mrb[37].mxu1  ;;  %v1865_v56 = vsel %vm1731_vm15, %v10686_v49, -inf }
 0x2d4   :  { %v10698_v12 = vadd.f32 %v1974_v58, %v10646_v31  ;;  %v8856_v44 = vpop.f32.mrb[38].mxu1  ;;  %v1732_v58 = vsel %vm1731_vm15, %v10679_v61, -inf }
 0x2d5   :  { %v1977_v59 = vpop.f32.mrb[39].mxu1  ;;  %v1994_v44 = vsel %vm1731_vm15, %v10695_v35, -inf }
 0x2d6   :  { %v10700_v47 = vadd.f32 %v1977_v59, %v1923_v40  ;;  %v1988_v25 = vsel %vm1724_vm14, %v10698_v12, -inf  ;;  %v1862_v40 = vsel %vm1724_vm14, %v10691_v17, -inf }
 0x2d7   :  { %1989 = vmax.xlane.f32.xlu0 %v1988_v25  ;;  %v4406_v25 = vcombine.high %v10157_v5, %v10157_v5  ;;  %v9732_v5 = vld [vmem:[%s12765_s5] sm:$0xff]  }
 0x2d8   :  { %8866 = vmatpush3.bf16.msra.mxu1 %v9732_v5  ;;  %v4440_v5 = vrot.slane %v10083_v10, %v10000_v29 }
 0x2d9   :  { %8867 = vmatprep.subr.bf16.mxu1 %v12840_v62 }
 0x2db   :  { %1726 = vmax.xlane.f32.xlu0 %v1725_v27  ;;  %v10735_v27 = vpack.c.bf16 %v10041_v51, %v10041_v51  ;;  %v9733_v51 = vld [vmem:[%s12765_s5 + $0xc] sm:$0xff]  }
 0x2dc   :  { %v8863_v24 = vpop.f32.mrb[52].mxu0  ;;  %8874 = vmatpush3.bf16.msra.mxu0 %v9733_v51 }
 0x2dd   :  { %v10706_v57 = vadd.f32 %v8863_v24, %v2053_v55  ;;  %v2103_v48 = vpop.f32.mrb[53].mxu0  ;;  %v4398_v55 = vcombine.high %v10080_v9, %v10080_v9  ;;  %v10744_v24 = vrot.slane %v4406_v25, %v10000_v29  ;;  %v9734_v9 = vld [vmem:[%s12765_s5 + $0x8] ss:$0 sps:$4 sm:$0x11]   ;;  %8875 = vmatprep.subr.bf16.mxu0 %v12840_v62 }
 0x2de   :  { %v10709_v31 = vadd.f32 %v2103_v48, %v10649_v60  ;;  %v8864_v16 = vpop.f32.mrb[54].mxu0  ;;  %v1991_v60 = vsel %vm1724_vm14, %v10700_v47, -inf  ;;  %v12842_v48 = vmov 0  }
 0x2df   :  { %v2106_v37 = vpop.f32.mrb[55].mxu0  ;;  %1863 = vmax.xlane.f32.xlu0 %v1862_v40  ;;  %v2123_v59 = vsel %vm1731_vm15, %v10706_v57, -inf  ;;  %v10759_v16 = vsel %vm507_vm4, 65535, %v12842_v48  ;;  %v4405_v40 = vrot.slane %v4398_v55, %v10000_v29 }
 0x2e0   :  { %v10713_v1 = vadd.f32 %v2106_v37, %v2052_v63  ;;  %v2117_v15 = vsel %vm1724_vm14, %v10709_v31, -inf  ;;  %v9735_v37 = vld [vmem:[%s12765_s5 + $0x14] ss:$0 sps:$4 sm:$0x11]  }
 0x2e1   :  { %2118 = vmax.xlane.f32.xlu1 %v2117_v15  ;;  %v10769_v15 = vcombine.high %v10174_v19, %v10174_v19  ;;  %v4407_v19 = vcombine.high %v4405_v40, %v4405_v40 }
 0x2e2   :  { %v2120_v63 = vsel %vm1724_vm14, %v10713_v1, -inf }
 0x2e3   :  { %1729 = vmax.xlane.f32.xlu0 %v1728_v30  ;;  %v10773_v30 = vcombine.high %v10744_v24, %v10744_v24  ;;  %v10803_v55 = vrot.slane %v4407_v19, %v10000_v29 }
 0x2e5   :  { %1992 = vmax.xlane.f32.xlu1 %v1991_v60  ;;  %v10777_v60 = vand.u32 %v9734_v9, %v10759_v16  ;;  %v4540_v9 = vrot.slane %v10803_v55, %v10009_v39 }
 0x2e7   :  { %1866 = vmax.xlane.f32.xlu0 %v1865_v56  ;;  %12843 = vst [vmem:[#allocation28_spill] sm:$0xff] %v10777_v60  ;;  %v10781_v56 = vand.u32 %v9735_v37, %v10759_v16  ;;  %8868 = vmatpush3.bf16.msra.mxu1 %v10777_v60  ;;  %v4448_v37 = vcombine.high %v4440_v5, %v4440_v5 }
 0x2e8   :  { %8881 = vmatprep.subr.bf16.mxu1 %v12840_v62 }
 0x2e9   :  { %2121 = vmax.xlane.f32.xlu1 %v2120_v63  ;;  %12844 = vst [vmem:[#allocation29_spill] sm:$0xff] %v10781_v56  ;;  %8876 = vmatpush3.bf16.msra.mxu0 %v10781_v56  ;;  %v4524_v63 = vrot.slane %v10744_v24, %v10009_v39  ;;  %v10831_v56 = vrot.slane %v4440_v5, %v10000_v29 }
 0x2ea   :  { %8889 = vmatprep.subr.bf16.mxu0 %v12840_v62 }
 0x2eb   :  { %1733 = vmax.xlane.f32.xlu0 %v1732_v58  ;;  %v4528_v58 = vrot.slane %v10769_v15, %v10009_v39  ;;  %12847 = vst [vmem:[#allocation32_spill] sm:$0xff] %v10831_v56  ;;  %v4552_v60 = vrot.slane %v10831_v56, %v10009_v39  ;;  %v10846_v5 = vcombine.high %v10831_v56, %v10831_v56 }
 0x2ed   :  { %1995 = vmax.xlane.f32.xlu1 %v1994_v44  ;;  %v4532_v44 = vrot.slane %v10773_v30, %v10009_v39  ;;  %12849 = vst [vmem:[#allocation34_spill] sm:$0xff] %v10846_v5 }
 0x2ef   :  { %v9536_v25 = vpack.i.bf16 %v4532_v44, %v4528_v58  ;;  %v4433_v44 = vcombine.high %v10083_v10, %v10083_v10 }
 0x2f1   :  { %2124 = vmax.xlane.f32.xlu1 %v2123_v59  ;;  %v10800_v59 = vrot.slane %v4405_v40, %v10000_v29  ;;  %v10819_v40 = vcombine.high %v10803_v55, %v10803_v55 }
 0x2f3   :  { %v4536_v51 = vrot.slane %v10800_v59, %v10009_v39  ;;  %v10815_v48 = vcombine.high %v10800_v59, %v10800_v59  ;;  %12846 = vst [vmem:[#allocation31_spill] sm:$0xff] %v10819_v40  ;;  %v4548_v58 = vrot.slane %v10819_v40, %v10009_v39 }
 0x2f5   :  { %12845 = vst [vmem:[#allocation30_spill] sm:$0xff] %v10815_v48  ;;  %v9556_v19 = vpack.i.bf16 %v4540_v9, %v4536_v51  ;;  %v4447_v9 = vrot.slane %v4433_v44, %v10000_v29 }
 0x2f7   :  { %v10861_v6 = vrot.slane %v4447_v9, %v10000_v29 }
 0x2f9   :  { %12851 = vst [vmem:[#allocation36_spill] sm:$0xff] %v10861_v6 }
 0x301   :  { %4147 = vrot.lane.b32.xlu0 %v10007_v38, %s9889_s7 }
 0x302   :  { %4149 = vrot.lane.b32.xlu1 %v10735_v27, %s9889_s7 }
 0x305   :  { %4049 = vrot.lane.b32.xlu0 %v10735_v27, %s9888_s30 }
 0x306   :  { %4047 = vrot.lane.b32.xlu1 %v10007_v38, %s9888_s30 }
 0x309   :  { %4249 = vrot.lane.b32.xlu0 %v10735_v27, %s9887_s29 }
 0x30a   :  { %4247 = vrot.lane.b32.xlu1 %v10007_v38, %s9887_s29 }
 0x30d   :  { %4640 = vrot.lane.b32.xlu0 %v4524_v63, %s9889_s7 }
 0x30e   :  { %4589 = vrot.lane.b32.xlu1 %v4524_v63, %s9888_s30 }
 0x311   :  { %9537 = vrot.lane.b32.xlu0 %v9536_v25, %s9888_s30 }
 0x312   :  { %4691 = vrot.lane.b32.xlu1 %v4524_v63, %s9887_s29  ;;  %v4544_v63 = vrot.slane %v10815_v48, %v10009_v39 }
 0x314   :  { %v9566_v51 = vpack.i.bf16 %v4548_v58, %v4544_v63  ;;  %v4449_v63 = vcombine.high %v4447_v9, %v4447_v9  ;;  %v4560_v58 = vrot.slane %v10846_v5, %v10009_v39  ;;  %v10876_v9 = vcombine.high %v10861_v6, %v10861_v6 }
 0x315   :  { %9547 = vrot.lane.b32.xlu0 %v9536_v25, %s9887_s29 }
 0x316   :  { %9542 = vrot.lane.b32.xlu1 %v9536_v25, %s9889_s7  ;;  %v10835_v25 = vrot.slane %v4448_v37, %v10000_v29  ;;  %v10864_v11 = vrot.slane %v4449_v63, %v10000_v29  ;;  %12853 = vst [vmem:[#allocation38_spill] sm:$0xff] %v10876_v9 }
 0x318   :  { %12848 = vst [vmem:[#allocation33_spill] sm:$0xff] %v10835_v25  ;;  %v4556_v10 = vrot.slane %v10835_v25, %v10009_v39  ;;  %v10850_v37 = vcombine.high %v10835_v25, %v10835_v25  ;;  %12852 = vst [vmem:[#allocation37_spill] sm:$0xff] %v10864_v11  ;;  %v10880_v63 = vcombine.high %v10864_v11, %v10864_v11 }
 0x319   :  { %9557 = vrot.lane.b32.xlu0 %v9556_v19, %s9889_s7 }
 0x31a   :  { %9552 = vrot.lane.b32.xlu1 %v9556_v19, %s9888_s30  ;;  %12850 = vst [vmem:[#allocation35_spill] sm:$0xff] %v10850_v37  ;;  %v4564_v44 = vrot.slane %v10850_v37, %v10009_v39  ;;  %12854 = vst [vmem:[#allocation39_spill] sm:$0xff] %v10880_v63 }
 0x31c   :  { %v9596_v28 = vpack.i.bf16 %v4564_v44, %v4560_v58  ;;  %v4576_v58 = vrot.slane %v10876_v9, %v10009_v39  ;;  %v4580_v44 = vrot.slane %v10880_v63, %v10009_v39 }
 0x31d   :  { %9567 = vrot.lane.b32.xlu0 %v9566_v51, %s9888_s30 }
 0x31e   :  { %9562 = vrot.lane.b32.xlu1 %v9556_v19, %s9887_s29  ;;  %v9586_v19 = vpack.i.bf16 %v4556_v10, %v4552_v60  ;;  %v4488_v60 = vrot.slane %v10121_v32, %v10000_v29  ;;  %v4572_v10 = vrot.slane %v10864_v11, %v10009_v39  ;;  %v9626_v37 = vpack.i.bf16 %v4580_v44, %v4576_v58 }
 0x320   :  { %v4489_v32 = vcombine.high %v4488_v60, %v4488_v60 }
 0x321   :  { %9577 = vrot.lane.b32.xlu0 %v9566_v51, %s9887_s29 }
 0x322   :  { %9572 = vrot.lane.b32.xlu1 %v9566_v51, %s9889_s7  ;;  %v4568_v51 = vrot.slane %v10861_v6, %v10009_v39  ;;  %v10891_v6 = vrot.slane %v4488_v60, %v10000_v29  ;;  %v10894_v11 = vrot.slane %v4489_v32, %v10000_v29 }
 0x324   :  { %12855 = vst [vmem:[#allocation40_spill] sm:$0xff] %v10891_v6  ;;  %12856 = vst [vmem:[#allocation41_spill] sm:$0xff] %v10894_v11 }
 0x325   :  { %9587 = vrot.lane.b32.xlu0 %v9586_v19, %s9889_s7 }
 0x326   :  { %9582 = vrot.lane.b32.xlu1 %v9586_v19, %s9888_s30 }
 0x329   :  { %9597 = vrot.lane.b32.xlu0 %v9596_v28, %s9888_s30 }
 0x32a   :  { %9592 = vrot.lane.b32.xlu1 %v9586_v19, %s9887_s29  ;;  %v9616_v19 = vpack.i.bf16 %v4572_v10, %v4568_v51  ;;  %v4588_v51 = vrot.slane %v10894_v11, %v10009_v39  ;;  %v5572_v10 = vshrl.u32 %v10125_v34, 16 }
 0x32d   :  { %9607 = vrot.lane.b32.xlu0 %v9596_v28, %s9887_s29 }
 0x32e   :  { %9602 = vrot.lane.b32.xlu1 %v9596_v28, %s9889_s7  ;;  %v4584_v28 = vrot.slane %v10891_v6, %v10009_v39 }
 0x330   :  { %v9646_v60 = vpack.i.bf16 %v4588_v51, %v4584_v28 }
 0x331   :  { %9617 = vrot.lane.b32.xlu0 %v9616_v19, %s9889_s7 }
 0x332   :  { %9612 = vrot.lane.b32.xlu1 %v9616_v19, %s9888_s30 }
 0x335   :  { %9627 = vrot.lane.b32.xlu0 %v9626_v37, %s9888_s30 }
 0x336   :  { %9622 = vrot.lane.b32.xlu1 %v9616_v19, %s9887_s29 }
 0x339   :  { %9637 = vrot.lane.b32.xlu0 %v9626_v37, %s9887_s29 }
 0x33a   :  { %9632 = vrot.lane.b32.xlu1 %v9626_v37, %s9889_s7  ;;  %v10921_v37 = vshrl.u32 %v10136_v42, 16 }
 0x33c   :  { %12857 = vst [vmem:[#allocation42_spill] sm:$0xff] %v10921_v37 }
 0x33d   :  { %9647 = vrot.lane.b32.xlu0 %v9646_v60, %s9889_s7 }
 0x33e   :  { %9642 = vrot.lane.b32.xlu1 %v9646_v60, %s9888_s30 }
 0x341   :  { %5574 = vrot.lane.b32.xlu0 %v10166_v13, %s9890_s8 }
 0x342   :  { %9652 = vrot.lane.b32.xlu1 %v9646_v60, %s9887_s29 }
 0x345   :  { %5576 = vrot.lane.b32.xlu0 %v5572_v10, %s9890_s8 }
 0x346   :  { %5721 = vrot.lane.b32.xlu1 %v10166_v13, %s9891_s9 }
 0x349   :  { %5850 = vrot.lane.b32.xlu0 %v10166_v13, %s9892_s10 }
 0x34a   :  { %5723 = vrot.lane.b32.xlu1 %v5572_v10, %s9891_s9 }
 0x34d   :  { %5979 = vrot.lane.b32.xlu0 %v10166_v13, %s9893_s11 }
 0x34e   :  { %5717 = vrot.lane.b32.xlu1 %v10177_v26, %s9888_s30 }
 0x351   :  { %5852 = vrot.lane.b32.xlu0 %v5572_v10, %s9892_s10 }
 0x352   :  { %5719 = vrot.lane.b32.xlu1 %v10921_v37, %s9888_s30 }
 0x355   :  { %5846 = vrot.lane.b32.xlu0 %v10177_v26, %s9889_s7 }
 0x356   :  { %5981 = vrot.lane.b32.xlu1 %v5572_v10, %s9893_s11 }
 0x359   :  { %5975 = vrot.lane.b32.xlu0 %v10177_v26, %s9887_s29 }
 0x35a   :  { %5848 = vrot.lane.b32.xlu1 %v10921_v37, %s9889_s7 }
 0x35e   :  { %5977 = vrot.lane.b32.xlu1 %v10921_v37, %s9887_s29  ;;  %v1861_v34 = vpop.xlane.xlu1 %1860 }
 0x35f   :  { %v1868_v42 = vsub.f32 %v10689_v8, %v1861_v34 }
 0x361   :  { %v1871_v13 = vmul.f32 1.442695, %v1868_v42 }
 0x363   :  { %9770 = vpow2.f32 %v1871_v13 }
 0x364   :  { %v1990_v32 = vpop.xlane.xlu0 %1989 }
 0x365   :  { %v1997_v19 = vsub.f32 %v10698_v12, %v1990_v32 }
 0x367   :  { %v2000_v58 = vmul.f32 1.442695, %v1997_v19 }
 0x368   :  { %v1727_v44 = vpop.xlane.xlu0 %1726 }
 0x369   :  { %9772 = vpow2.f32 %v2000_v58  ;;  %v1735_v28 = vsub.f32 %v10682_v41, %v1727_v44  ;;  %v9738_v44 = vld [vmem:[%s12765_s5 + $0x20] ss:$0 sps:$4 sm:$0x11]  }
 0x36a   :  { %v10967_v63 = vand.u32 %v9738_v44, %v10759_v16 }
 0x36b   :  { %v1738_v51 = vmul.f32 1.442695, %v1735_v28 }
 0x36c   :  { %v1864_v34 = vpop.xlane.xlu0 %1863 }
 0x36d   :  { %v10938_v60 = vpop.eup %9770  ;;  %9774 = vpow2.f32 %v1738_v51  ;;  %v1869_v32 = vsub.f32 %v10691_v17, %v1864_v34  ;;  %v9739_v17 = vld [vmem:[%s12765_s5 + $0x2c] ss:$0 sps:$4 sm:$0x11]  }
 0x36e   :  { %v2119_v10 = vpop.xlane.xlu1 %2118  ;;  %v2288_v8 = vrot.slane %v10938_v60, %v10000_v29  ;;  %v2281_v58 = vcombine.high %v10938_v60, %v10938_v60 }
 0x36f   :  { %v2126_v37 = vsub.f32 %v10709_v31, %v2119_v10  ;;  %v1873_v51 = vmul.f32 1.442695, %v1869_v32  ;;  %v10971_v32 = vand.u32 %v9739_v17, %v10759_v16 }
 0x370   :  { %v2296_v12 = vcombine.high %v2288_v8, %v2288_v8  ;;  %v2304_v31 = vrot.slane %v2288_v8, %v10000_v29  ;;  %v1730_v34 = vpop.xlane.xlu0 %1729  ;;  %v10963_v8 = vrot.slane %v2281_v58, %v10000_v29 }
 0x371   :  { %v2129_v42 = vmul.f32 1.442695, %v2126_v37  ;;  %v1736_v58 = vsub.f32 %v10684_v53, %v1730_v34 }
 0x372   :  { %v1993_v19 = vpop.xlane.xlu1 %1992  ;;  %v2318_v28 = vrot.slane %v2296_v12, %v10000_v29  ;;  %v2326_v12 = vcombine.high %v2304_v31, %v2304_v31  ;;  %v10985_v25 = vrot.slane %v10963_v8, %v10000_v29 }
 0x373   :  { %v10943_v13 = vpop.eup %9772  ;;  %9776 = vpow2.f32 %v2129_v42  ;;  %v1998_v26 = vsub.f32 %v10700_v47, %v1993_v19  ;;  %v2626_v19 = vrot.slane %v2304_v31, %v10009_v39 }
 0x374   :  { %v2403_v41 = vrot.slane %v10943_v13, %v10000_v29  ;;  %v2328_v5 = vcombine.high %v2318_v28, %v2318_v28  ;;  %v2396_v54 = vcombine.high %v10943_v13, %v10943_v13  ;;  %9778 = vpow2.f32 %v1873_v51 }
 0x375   :  { %v2002_v3 = vmul.f32 1.442695, %v1998_v26  ;;  %v2630_v51 = vrot.slane %v2318_v28, %v10009_v39  ;;  %v2634_v31 = vrot.slane %v2326_v12, %v10009_v39 }
 0x376   :  { %v2411_v42 = vcombine.high %v2403_v41, %v2403_v41  ;;  %v2122_v11 = vpop.xlane.xlu1 %2121  ;;  %v2419_v9 = vrot.slane %v2403_v41, %v10000_v29 }
 0x377   :  { %v10954_v37 = vpop.eup %9774  ;;  %v2127_v44 = vsub.f32 %v10713_v1, %v2122_v11  ;;  %v2638_v11 = vrot.slane %v2328_v5, %v10009_v39  ;;  %v10996_v1 = vrot.slane %v2396_v54, %v10000_v29  ;;  %9780 = vpow2.f32 %v2002_v3 }
 0x378   :  { %v2156_v10 = vrot.slane %v10954_v37, %v10000_v29  ;;  %v2433_v17 = vrot.slane %v2411_v42, %v10000_v29  ;;  %v2441_v52 = vcombine.high %v2419_v9, %v2419_v9 }
 0x379   :  { %v2131_v56 = vmul.f32 1.442695, %v2127_v44 }
 0x37a   :  { %v2164_v6 = vcombine.high %v2156_v10, %v2156_v10  ;;  %v2172_v47 = vrot.slane %v2156_v10, %v10000_v29  ;;  %v2711_v10 = vrot.slane %v2419_v9, %v10009_v39  ;;  %v2715_v28 = vrot.slane %v2433_v17, %v10009_v39  ;;  %v9736_v9 = vld [vmem:[%s12765_s5 + $0x18] sm:$0xff]  }
 0x37b   :  { %9782 = vpow2.f32 %v2131_v56 }
 0x37c   :  { %v2186_v41 = vrot.slane %v2164_v6, %v10000_v29  ;;  %v2149_v6 = vcombine.high %v10954_v37, %v10954_v37  ;;  %v2878_v26 = vsel %vm507_vm4, %v2172_v47, %v2626_v19  ;;  %v2194_v20 = vcombine.high %v2172_v47, %v2172_v47 }
 0x37d   :  { %v10978_v18 = vpop.eup %9776  ;;  %v2895_v2 = vsel %vm525_vm5, %v2878_v26, %v2711_v10  ;;  %v2443_v19 = vcombine.high %v2433_v17, %v2433_v17  ;;  %v2719_v10 = vrot.slane %v2441_v52, %v10009_v39  ;;  %v9737_v26 = vld [vmem:[%s12765_s5 + $0x24] sm:$0xff]  }
 0x37e   :  { %v2518_v53 = vrot.slane %v10978_v18, %v10000_v29  ;;  %v2879_v12 = vsel %vm507_vm4, %v2186_v41, %v2630_v51  ;;  %v2511_v54 = vcombine.high %v10978_v18, %v10978_v18  ;;  %v2196_v43 = vcombine.high %v2186_v41, %v2186_v41  ;;  %v11017_v17 = vpop.eup %9778 }
 0x37f   :  { %v2163_v47 = vrot.slane %v2149_v6, %v10000_v29  ;;  %v2880_v51 = vsel %vm507_vm4, %v2194_v20, %v2634_v31  ;;  %v2896_v48 = vsel %vm525_vm5, %v2879_v12, %v2715_v28  ;;  %v1740_v6 = vmul.f32 1.442695, %v1736_v58 }
 0x380   :  { %v2534_v34 = vrot.slane %v2518_v53, %v10000_v29  ;;  %v2526_v42 = vcombine.high %v2518_v53, %v2518_v53  ;;  %v2525_v41 = vrot.slane %v2511_v54, %v10000_v29  ;;  %v2897_v52 = vsel %vm525_vm5, %v2880_v51, %v2719_v10  ;;  %v9741_v10 = vld [vmem:[%s12765_s5 + $0x3c] sm:$0xff]  }
 0x381   :  { %v2723_v31 = vrot.slane %v2443_v19, %v10009_v39  ;;  %v2881_v58 = vsel %vm507_vm4, %v2196_v43, %v2638_v11  ;;  %v11040_v28 = vrot.slane %v10996_v1, %v10000_v29  ;;  %v2412_v43 = vcombine.high %v10996_v1, %v10996_v1  ;;  %v9742_v1 = vld [vmem:[%s12765_s5 + $0x38] ss:$0 sps:$4 sm:$0x11]  }
 0x382   :  { %v2796_v5 = vrot.slane %v2534_v34, %v10009_v39  ;;  %v2548_v36 = vrot.slane %v2526_v42, %v10000_v29  ;;  %v2556_v40 = vcombine.high %v2534_v34, %v2534_v34  ;;  %v2527_v3 = vcombine.high %v2525_v41, %v2525_v41 }
 0x383   :  { %v2541_v56 = vrot.slane %v2525_v41, %v10000_v29  ;;  %9784 = vpow2.f32 %v1740_v6  ;;  %v2898_v54 = vsel %vm525_vm5, %v2881_v58, %v2723_v31  ;;  %v2642_v19 = vrot.slane %v10985_v25, %v10009_v39  ;;  %v9743_v41 = vld [vmem:[%s12765_s5 + $0x44] ss:$0 sps:$4 sm:$0x11]  }
 0x384   :  { %v2912_v44 = vsel %vm543_vm6, %v2895_v2, %v2796_v5  ;;  %v2800_v53 = vrot.slane %v2548_v36, %v10009_v39  ;;  %v2558_v34 = vcombine.high %v2548_v36, %v2548_v36  ;;  %v2804_v5 = vrot.slane %v2556_v40, %v10009_v39 }
 0x385   :  { %v2929_v42 = vpack.c.bf16 %v2912_v44, %v2912_v44  ;;  %v2297_v36 = vcombine.high %v10963_v8, %v10963_v8  ;;  %v11034_v40 = vrot.slane %v2163_v47, %v10000_v29  ;;  %v2165_v8 = vcombine.high %v2163_v47, %v2163_v47  ;;  %v9740_v47 = vld [vmem:[%s12765_s5 + $0x30] sm:$0xff]  }
 0x386   :  { %v2913_v2 = vsel %vm543_vm6, %v2896_v48, %v2800_v53  ;;  %v2808_v48 = vrot.slane %v2558_v34, %v10009_v39  ;;  %v2914_v11 = vsel %vm543_vm6, %v2897_v52, %v2804_v5  ;;  %v11067_v53 = vrot.slane %v2527_v3, %v10000_v29  ;;  %v11110_v3 = vpop.eup %9780 }
 0x387   :  { %8870 = vmatmul.mubr.msk.bf16.vlgmr.msra.gmra.mrb[40].mxu1 %vm1724_vm14, %v2929_v42  ;;  %v2930_v20 = vpack.c.bf16 %v2913_v2, %v2913_v2  ;;  %v11049_v12 = vrot.slane %v2297_v36, %v10000_v29  ;;  %v2931_v51 = vpack.c.bf16 %v2914_v11, %v2914_v11  ;;  %v2882_v34 = vsel %vm507_vm4, %v11034_v40, %v2642_v19  ;;  %v11120_v19 = vpop.eup %9782 }
 0x388   :  { %8882 = vmatpush3.bf16.msra.mxu1 %v9736_v9  ;;  %8885 = vmatprep.mubr.msk.bf16.mxu1 %vm9886_vm2, %v12840_v62  ;;  %v2915_v44 = vsel %vm543_vm6, %v2898_v54, %v2808_v48  ;;  %v11064_v9 = vrot.slane %v2165_v8, %v10000_v29  ;;  %v11073_v42 = vrot.slane %v2412_v43, %v10000_v29  ;;  %v9746_v48 = vld [vmem:[%s12765_s5 + $0x50] ss:$0 sps:$4 sm:$0x11]  }
 0x389   :  { %8878 = vmatmul.mubr.msk.bf16.vlgmr.msra.gmra.mrb[56].mxu0 %vm1724_vm14, %v2930_v20  ;;  %8883 = vmatprep.subr.bf16.mxu1 %v12840_v62  ;;  %v2727_v6 = vrot.slane %v11040_v28, %v10009_v39  ;;  %v2812_v2 = vrot.slane %v2541_v56, %v10009_v39  ;;  %v2932_v5 = vpack.c.bf16 %v2915_v44, %v2915_v44 }
 0x38a   :  { %8890 = vmatpush3.bf16.msra.mxu0 %v9737_v26  ;;  %8893 = vmatprep.mubr.msk.bf16.mxu0 %vm9886_vm2, %v12840_v62  ;;  %v2646_v26 = vrot.slane %v11049_v12, %v10009_v39  ;;  %v11090_v36 = vand.u32 %v9742_v1, %v10759_v16  ;;  %v2327_v20 = vcombine.high %v10985_v25, %v10985_v25 }
 0x38b   :  { %8891 = vmatprep.subr.bf16.mxu0 %v12840_v62  ;;  %v2899_v52 = vsel %vm525_vm5, %v2882_v34, %v2727_v6  ;;  %v2816_v31 = vrot.slane %v11067_v53, %v10009_v39  ;;  %v2731_v25 = vrot.slane %v11073_v42, %v10009_v39  ;;  %v2195_v8 = vcombine.high %v11034_v40, %v11034_v40 }
 0x38c   :  { %8884 = vmatpush3.bf16.msra.mxu1 %v10967_v63  ;;  %v2883_v58 = vsel %vm507_vm4, %v11064_v9, %v2646_v26  ;;  %v2557_v43 = vcombine.high %v2541_v56, %v2541_v56  ;;  %v11113_v11 = vand.u32 %v9743_v41, %v10759_v16  ;;  %v2916_v54 = vsel %vm543_vm6, %v2899_v52, %v2812_v2  ;;  %v9747_v56 = vld [vmem:[%s12765_s5 + $0x5c] ss:$0 sps:$4 sm:$0x11]  }
 0x38d   :  { %8897 = vmatprep.subr.bf16.mxu1 %v12840_v62  ;;  %v2329_v1 = vcombine.high %v11049_v12, %v11049_v12  ;;  %v2900_v40 = vsel %vm525_vm5, %v2883_v58, %v2731_v25  ;;  %v2650_v44 = vrot.slane %v2327_v20, %v10009_v39  ;;  %v9744_v12 = vld [vmem:[%s12765_s5 + $0x48] sm:$0xff]   ;;  %v11136_v34 = vand.u32 %v9746_v48, %v10759_v16 }
 0x38e   :  { %8892 = vmatpush3.bf16.msra.mxu0 %v10971_v32  ;;  %v2559_v41 = vcombine.high %v11067_v53, %v11067_v53  ;;  %v2933_v6 = vpack.c.bf16 %v2916_v54, %v2916_v54  ;;  %v2820_v2 = vrot.slane %v2557_v43, %v10009_v39  ;;  %v2337_v20 = vrot.slane %v11017_v17, %v10000_v29 }
 0x38f   :  { %8886 = vmatmul.mubr.msk.bf16.vlgmr.msra.gmra.mrb[44].mxu1 %vm1724_vm14, %v2931_v51  ;;  %8905 = vmatprep.subr.bf16.mxu0 %v12840_v62  ;;  %v2917_v51 = vsel %vm543_vm6, %v2900_v40, %v2816_v31  ;;  %v2884_v26 = vsel %vm507_vm4, %v2195_v8, %v2650_v44  ;;  %v2654_v53 = vrot.slane %v2329_v1, %v10009_v39 }
 0x390   :  { %8898 = vmatpush3.bf16.msra.mxu1 %v9740_v47  ;;  %8901 = vmatprep.mubr.msk.bf16.mxu1 %vm9886_vm2, %v12840_v62  ;;  %v2442_v47 = vcombine.high %v11040_v28, %v11040_v28  ;;  %v11142_v28 = vpop.eup %9784  ;;  %v2452_v52 = vrot.slane %v11110_v3, %v10000_v29  ;;  %v11160_v31 = vrot.slane %v11120_v19, %v10000_v29 }
 0x391   :  { %8894 = vmatmul.mubr.msk.bf16.vlgmr.msra.gmra.mrb[60].mxu0 %vm1724_vm14, %v2932_v5  ;;  %8899 = vmatprep.subr.bf16.mxu1 %v12840_v62  ;;  %v2444_v5 = vcombine.high %v11073_v42, %v11073_v42  ;;  %v2934_v42 = vpack.c.bf16 %v2917_v51, %v2917_v51  ;;  %v11165_v58 = vand.u32 %v9747_v56, %v10759_v16  ;;  %v9750_v51 = vld [vmem:[%s12765_s5 + $0x68] ss:$0 sps:$4 sm:$0x11]  }
 0x392   :  { %8906 = vmatpush3.bf16.msra.mxu0 %v9741_v10  ;;  %8909 = vmatprep.mubr.msk.bf16.mxu0 %vm9886_vm2, %v12840_v62  ;;  %v2197_v10 = vcombine.high %v11064_v9, %v11064_v9  ;;  %v9745_v9 = vld [vmem:[%s12765_s5 + $0x54] sm:$0xff]   ;;  %v2735_v48 = vrot.slane %v2442_v47, %v10009_v39  ;;  %v2824_v25 = vrot.slane %v2559_v41, %v10009_v39 }
 0x393   :  { %8907 = vmatprep.subr.bf16.mxu0 %v12840_v62  ;;  %v2205_v43 = vrot.slane %v11142_v28, %v10000_v29  ;;  %v2739_v1 = vrot.slane %v2444_v5, %v10009_v39  ;;  %v11179_v40 = vrot.slane %v2452_v52, %v10000_v29  ;;  %v11185_v47 = vrot.slane %v2337_v20, %v10000_v29  ;;  %v9749_v5 = vld [vmem:[%s12765_s5 + $0x6c] sm:$0xff]  }
 0x394   :  { %8900 = vmatpush3.bf16.msra.mxu1 %v11090_v36  ;;  %v2885_v8 = vsel %vm507_vm4, %v2197_v10, %v2654_v53  ;;  %v2901_v54 = vsel %vm525_vm5, %v2884_v26, %v2735_v48  ;;  %v11189_v44 = vrot.slane %v11160_v31, %v10000_v29  ;;  %v9748_v10 = vld [vmem:[%s12765_s5 + $0x60] sm:$0xff]   ;;  %v2345_v48 = vcombine.high %v2337_v20, %v2337_v20 }
 0x395   :  { %8913 = vmatprep.subr.bf16.mxu1 %v12840_v62  ;;  %v2918_v56 = vsel %vm543_vm6, %v2901_v54, %v2820_v2  ;;  %v2743_v26 = vrot.slane %v11179_v40, %v10009_v39  ;;  %v2658_v53 = vrot.slane %v11185_v47, %v10009_v39 }
 0x396   :  { %8908 = vmatpush3.bf16.msra.mxu0 %v11113_v11  ;;  %v2935_v2 = vpack.c.bf16 %v2918_v56, %v2918_v56  ;;  %v2460_v56 = vcombine.high %v2452_v52, %v2452_v52 }
 0x397   :  { %8902 = vmatmul.mubr.msk.bf16.vlgmr.msra.gmra.mrb[48].mxu1 %vm1724_vm14, %v2933_v6  ;;  %8921 = vmatprep.subr.bf16.mxu0 %v12840_v62  ;;  %v11202_v6 = vrot.slane %v2205_v43, %v10000_v29 }
 0x398   :  { %8914 = vmatpush3.bf16.msra.mxu1 %v9744_v12  ;;  %8917 = vmatprep.mubr.msk.bf16.mxu1 %vm9886_vm2, %v12840_v62  ;;  %v2902_v12 = vsel %vm525_vm5, %v2885_v8, %v2739_v1  ;;  %v11221_v8 = vand.u32 %v9750_v51, %v10759_v16  ;;  %v2213_v1 = vcombine.high %v2205_v43, %v2205_v43  ;;  %v9754_v43 = vld [vmem:[%s12765_s5 + $0x80] ss:$0 sps:$4 sm:$0x11]  }
 0x399   :  { %8910 = vmatmul.mubr.msk.bf16.vlgmr.msra.gmra.mrb[64].mxu0 %vm1724_vm14, %v2934_v42  ;;  %8915 = vmatprep.subr.bf16.mxu1 %v12840_v62  ;;  %v2919_v41 = vsel %vm543_vm6, %v2902_v12, %v2824_v25  ;;  %v2828_v42 = vrot.slane %v11189_v44, %v10009_v39  ;;  %v2886_v54 = vsel %vm507_vm4, %v11202_v6, %v2658_v53 }
 0x39a   :  { %8922 = vmatpush3.bf16.msra.mxu0 %v9745_v9  ;;  %8925 = vmatprep.mubr.msk.bf16.mxu0 %vm9886_vm2, %v12840_v62  ;;  %v9751_v9 = vld [vmem:[%s12765_s5 + $0x74] ss:$0 sps:$4 sm:$0x11]   ;;  %v2936_v25 = vpack.c.bf16 %v2919_v41, %v2919_v41  ;;  %v2903_v20 = vsel %vm525_vm5, %v2886_v54, %v2743_v26  ;;  %v2482_v52 = vrot.slane %v2460_v56, %v10000_v29  ;;  %v9752_v41 = vld [vmem:[%s12765_s5 + $0x78] sm:$0xff]  }
 0x39b   :  { %8923 = vmatprep.subr.bf16.mxu0 %v12840_v62  ;;  %v11231_v12 = vand.u32 %v9751_v9, %v10759_v16  ;;  %v2920_v51 = vsel %vm543_vm6, %v2903_v20, %v2828_v42  ;;  %v2575_v26 = vcombine.high %v11160_v31, %v11160_v31  ;;  %v2375_v54 = vcombine.high %v11185_v47, %v11185_v47  ;;  %v9755_v47 = vld [vmem:[%s12765_s5 + $0x8c] ss:$0 sps:$4 sm:$0x11]  }
 0x39c   :  { %8916 = vmatpush3.bf16.msra.mxu1 %v11136_v34  ;;  %v2747_v42 = vrot.slane %v2482_v52, %v10009_v39  ;;  %v2490_v56 = vcombine.high %v11179_v40, %v11179_v40 }
 0x39d   :  { %8929 = vmatprep.subr.bf16.mxu1 %v12840_v62  ;;  %v2597_v9 = vrot.slane %v2575_v26, %v10000_v29  ;;  %v2666_v40 = vrot.slane %v2375_v54, %v10009_v39 }
 0x39e   :  { %8924 = vmatpush3.bf16.msra.mxu0 %v11165_v58 }
 0x39f   :  { %8918 = vmatmul.mubr.msk.bf16.vlgmr.msra.gmra.mrb[52].mxu1 %vm1724_vm14, %v2935_v2  ;;  %8937 = vmatprep.subr.bf16.mxu0 %v12840_v62  ;;  %v2235_v2 = vrot.slane %v2213_v1, %v10000_v29  ;;  %v2832_v31 = vrot.slane %v2597_v9, %v10009_v39 }
 0x3a0   :  { %8930 = vmatpush3.bf16.msra.mxu1 %v9748_v10  ;;  %8933 = vmatprep.mubr.msk.bf16.mxu1 %vm9886_vm2, %v12840_v62  ;;  %v2367_v10 = vrot.slane %v2345_v48, %v10000_v29  ;;  %v11256_v48 = vand.u32 %v9754_v43, %v10759_v16  ;;  %v2243_v43 = vcombine.high %v11202_v6, %v11202_v6 }
 0x3a1   :  { %8926 = vmatmul.mubr.msk.bf16.vlgmr.msra.gmra.mrb[68].mxu0 %vm1724_vm14, %v2936_v25  ;;  %8931 = vmatprep.subr.bf16.mxu1 %v12840_v62  ;;  %v11287_v6 = vand.u32 %v9755_v47, %v10759_v16  ;;  %v9758_v47 = vld [vmem:[%s12765_s5 + $0x98] ss:$0 sps:$4 sm:$0x11]  }
 0x3a2   :  { %8938 = vmatpush3.bf16.msra.mxu0 %v9749_v5  ;;  %8941 = vmatprep.mubr.msk.bf16.mxu0 %vm9886_vm2, %v12840_v62  ;;  %v2937_v5 = vpack.c.bf16 %v2920_v51, %v2920_v51  ;;  %v2662_v53 = vrot.slane %v2367_v10, %v10009_v39  ;;  %v9753_v51 = vld [vmem:[%s12765_s5 + $0x84] sm:$0xff]  }
 0x3a3   :  { %8939 = vmatprep.subr.bf16.mxu0 %v12840_v62  ;;  %12858 = vst [vmem:[#allocation43_spill] sm:$0xff] %v11287_v6 }
 0x3a4   :  { %8932 = vmatpush3.bf16.msra.mxu1 %v11221_v8  ;;  %v2887_v25 = vsel %vm507_vm4, %v2235_v2, %v2662_v53 }
 0x3a5   :  { %8945 = vmatprep.subr.bf16.mxu1 %v12840_v62  ;;  %v2904_v1 = vsel %vm525_vm5, %v2887_v25, %v2747_v42  ;;  %v1867_v42 = vpop.xlane.xlu0 %1866 }
 0x3a6   :  { %8940 = vmatpush3.bf16.msra.mxu0 %v11231_v12  ;;  %v2921_v20 = vsel %vm543_vm6, %v2904_v1, %v2832_v31  ;;  %v1996_v31 = vpop.xlane.xlu1 %1995  ;;  %v9756_v1 = vld [vmem:[%s12765_s5 + $0x90] sm:$0xff]  }
 0x3a7   :  { %8934 = vmatmul.mubr.msk.bf16.vlgmr.msra.gmra.mrb[56].mxu1 %vm1724_vm14, %v2937_v5  ;;  %8953 = vmatprep.subr.bf16.mxu0 %v12840_v62  ;;  %v2938_v26 = vpack.c.bf16 %v2921_v20, %v2921_v20  ;;  %v2751_v5 = vrot.slane %v2490_v56, %v10009_v39  ;;  %v2377_v56 = vcombine.high %v2367_v10, %v2367_v10 }
 0x3a8   :  { %8946 = vmatpush3.bf16.msra.mxu1 %v9752_v41  ;;  %8949 = vmatprep.mubr.msk.bf16.mxu1 %vm9886_vm2, %v12840_v62  ;;  %v2605_v41 = vcombine.high %v11189_v44, %v11189_v44  ;;  %v2888_v44 = vsel %vm507_vm4, %v2243_v43, %v2666_v40  ;;  %v2492_v20 = vcombine.high %v2482_v52, %v2482_v52 }
 0x3a9   :  { %8947 = vmatprep.subr.bf16.mxu1 %v12840_v62  ;;  %8942 = vmatmul.mubr.msk.bf16.vlgmr.msra.gmra.mrb[72].mxu0 %vm1724_vm14, %v2938_v26  ;;  %v2905_v25 = vsel %vm525_vm5, %v2888_v44, %v2751_v5  ;;  %v1870_v26 = vsub.f32 %v10686_v49, %v1867_v42  ;;  %v1734_v40 = vpop.xlane.xlu0 %1733  ;;  %v2670_v5 = vrot.slane %v2377_v56, %v10009_v39  ;;  %v9759_v44 = vld [vmem:[%s12765_s5 + $0xa4] ss:$0 sps:$4 sm:$0x11]  }
 0x3aa   :  { %v2836_v53 = vrot.slane %v2605_v41, %v10009_v39  ;;  %8954 = vmatpush3.bf16.msra.mxu0 %v9753_v51  ;;  %8957 = vmatprep.mubr.msk.bf16.mxu0 %vm9886_vm2, %v12840_v62  ;;  %v2607_v51 = vcombine.high %v2597_v9, %v2597_v9  ;;  %v2245_v41 = vcombine.high %v2235_v2, %v2235_v2  ;;  %v2125_v2 = vpop.xlane.xlu1 %2124 }
 0x3ab   :  { %8955 = vmatprep.subr.bf16.mxu0 %v12840_v62  ;;  %v2755_v10 = vrot.slane %v2492_v20, %v10009_v39  ;;  %v11309_v9 = vand.u32 %v9758_v47, %v10759_v16  ;;  %v1737_v49 = vsub.f32 %v10679_v61, %v1734_v40  ;;  %v1999_v56 = vsub.f32 %v10695_v35, %v1996_v31  ;;  %v9757_v61 = vld [vmem:[%s12765_s5 + $0x9c] sm:$0xff]  }
 0x3ac   :  { %8948 = vmatpush3.bf16.msra.mxu1 %v11256_v48  ;;  %v2922_v54 = vsel %vm543_vm6, %v2905_v25, %v2836_v53  ;;  %v2840_v52 = vrot.slane %v2607_v51, %v10009_v39  ;;  %v2889_v53 = vsel %vm507_vm4, %v2245_v41, %v2670_v5  ;;  %v2198_v25 = vcombine.high %v11142_v28, %v11142_v28 }
 0x3ad   :  { %8961 = vmatprep.subr.bf16.mxu1 %v12840_v62  ;;  %v2939_v43 = vpack.c.bf16 %v2922_v54, %v2922_v54  ;;  %v2906_v42 = vsel %vm525_vm5, %v2889_v53, %v2755_v10  ;;  %v2330_v54 = vcombine.high %v11017_v17, %v11017_v17  ;;  %v2128_v51 = vsub.f32 %v10706_v57, %v2125_v2 }
 0x3ae   :  { %8956 = vmatpush3.bf16.msra.mxu0 %v11287_v6  ;;  %v2923_v20 = vsel %vm543_vm6, %v2906_v42, %v2840_v52  ;;  %v2445_v35 = vcombine.high %v11110_v3, %v11110_v3  ;;  %v2560_v31 = vcombine.high %v11120_v19, %v11120_v19  ;;  %v11340_v57 = vand.u32 %v9759_v44, %v10759_v16 }
 0x3af   :  { %8950 = vmatmul.mubr.msk.bf16.vlgmr.msra.gmra.mrb[60].mxu1 %vm1724_vm14, %v2939_v43  ;;  %8969 = vmatprep.subr.bf16.mxu0 %v12840_v62  ;;  %v2940_v47 = vpack.c.bf16 %v2923_v20, %v2923_v20  ;;  %v2212_v43 = vrot.slane %v2198_v25, %v10000_v29  ;;  %v2344_v41 = vrot.slane %v2330_v54, %v10000_v29  ;;  %v2004_v5 = vmul.f32 1.442695, %v1999_v56 }
 0x3b0   :  { %8962 = vmatpush3.bf16.msra.mxu1 %v9756_v1  ;;  %8965 = vmatprep.mubr.msk.bf16.mxu1 %vm9886_vm2, %v12840_v62  ;;  %v1875_v1 = vmul.f32 1.442695, %v1870_v26  ;;  %v1742_v26 = vmul.f32 1.442695, %v1737_v49  ;;  %12859 = vst [vmem:[#allocation44_spill] sm:$0xff] %v11340_v57  ;;  %v2459_v10 = vrot.slane %v2445_v35, %v10000_v29  ;;  %v2574_v52 = vrot.slane %v2560_v31, %v10000_v29 }
 0x3b1   :  { %8963 = vmatprep.subr.bf16.mxu1 %v12840_v62  ;;  %8958 = vmatmul.mubr.msk.bf16.vlgmr.msra.gmra.mrb[76].mxu0 %vm1724_vm14, %v2940_v47  ;;  %v2360_v40 = vrot.slane %v2344_v41, %v10000_v29  ;;  %v2133_v2 = vmul.f32 1.442695, %v2128_v51  ;;  %v2228_v53 = vrot.slane %v2212_v43, %v10000_v29  ;;  %v2214_v49 = vcombine.high %v2212_v43, %v2212_v43 }
 0x3b2   :  { %9786 = vpow2.f32 %v1875_v1  ;;  %8970 = vmatpush3.bf16.msra.mxu0 %v9757_v61  ;;  %8973 = vmatprep.mubr.msk.bf16.mxu0 %vm9886_vm2, %v12840_v62  ;;  %v2346_v42 = vcombine.high %v2344_v41, %v2344_v41  ;;  %v2475_v44 = vrot.slane %v2459_v10, %v10000_v29  ;;  %v2590_v25 = vrot.slane %v2574_v52, %v10000_v29 }
 0x3b3   :  { %8971 = vmatprep.subr.bf16.mxu0 %v12840_v62  ;;  %v2461_v54 = vcombine.high %v2459_v10, %v2459_v10  ;;  %v2576_v1 = vcombine.high %v2574_v52, %v2574_v52  ;;  %9788 = vpow2.f32 %v1742_v26  ;;  %v2674_v56 = vrot.slane %v2360_v40, %v10009_v39  ;;  %v9762_v26 = vld [vmem:[%s12765_s5 + $0xb0] ss:$0 sps:$4 sm:$0x11]   ;;  %v9763_v10 = vld [vmem:[%s12765_s5 + $0xbc] ss:$0 sps:$4 sm:$0x11]  }
 0x3b4   :  { %8964 = vmatpush3.bf16.msra.mxu1 %v11309_v9  ;;  %v2242_v20 = vrot.slane %v2214_v49, %v10000_v29  ;;  %v2374_v61 = vrot.slane %v2346_v42, %v10000_v29  ;;  %v2759_v51 = vrot.slane %v2475_v44, %v10009_v39  ;;  %v2844_v47 = vrot.slane %v2590_v25, %v10009_v39 }
 0x3b5   :  { %8977 = vmatprep.subr.bf16.mxu1 %v12840_v62  ;;  %v2489_v43 = vrot.slane %v2461_v54, %v10000_v29  ;;  %v2604_v41 = vrot.slane %v2576_v1, %v10000_v29  ;;  %9790 = vpow2.f32 %v2004_v5  ;;  %v2890_v35 = vsel %vm507_vm4, %v2228_v53, %v2674_v56  ;;  %v9760_v54 = vld [vmem:[%s12765_s5 + $0xa8] sm:$0xff]  }
 0x3b6   :  { %8972 = vmatpush3.bf16.msra.mxu0 %v11340_v57  ;;  %v2678_v31 = vrot.slane %v2374_v61, %v10009_v39  ;;  %9792 = vpow2.f32 %v2133_v2  ;;  %v2907_v52 = vsel %vm525_vm5, %v2890_v35, %v2759_v51  ;;  %v9761_v2 = vld [vmem:[%s12765_s5 + $0xb4] sm:$0xff]   ;;  %v11382_v51 = vand.u32 %v9762_v26, %v10759_v16 }
 0x3b7   :  { %8985 = vmatprep.subr.bf16.mxu0 %v12840_v62  ;;  %v2763_v49 = vrot.slane %v2489_v43, %v10009_v39  ;;  %v2848_v5 = vrot.slane %v2604_v41, %v10009_v39  ;;  %v2924_v42 = vsel %vm543_vm6, %v2907_v52, %v2844_v47  ;;  %v11385_v47 = vand.u32 %v9763_v10, %v10759_v16 }
 0x3b8   :  { %v2891_v1 = vsel %vm507_vm4, %v2242_v20, %v2678_v31  ;;  %v2941_v56 = vpack.c.bf16 %v2924_v42, %v2924_v42  ;;  %v2244_v52 = vcombine.high %v2228_v53, %v2228_v53  ;;  %v2376_v42 = vcombine.high %v2360_v40, %v2360_v40 }
 0x3b9   :  { %v2908_v57 = vsel %vm525_vm5, %v2891_v1, %v2763_v49  ;;  %v2491_v49 = vcombine.high %v2475_v44, %v2475_v44  ;;  %v2378_v1 = vcombine.high %v2374_v61, %v2374_v61  ;;  %v2608_v53 = vcombine.high %v2604_v41, %v2604_v41 }
 0x3ba   :  { %v2925_v6 = vsel %vm543_vm6, %v2908_v57, %v2848_v5  ;;  %8966 = vmatmul.mubr.msk.bf16.vlgmr.msra.gmra.mrb[64].mxu1 %vm1724_vm14, %v2941_v56  ;;  %v2606_v57 = vcombine.high %v2590_v25, %v2590_v25  ;;  %v2246_v5 = vcombine.high %v2242_v20, %v2242_v20  ;;  %v2682_v26 = vrot.slane %v2376_v42, %v10009_v39 }
 0x3bb   :  { %v2942_v31 = vpack.c.bf16 %v2925_v6, %v2925_v6  ;;  %8978 = vmatpush3.bf16.msra.mxu1 %v9760_v54  ;;  %8981 = vmatprep.mubr.msk.bf16.mxu1 %vm9886_vm2, %v12840_v62  ;;  %v2767_v10 = vrot.slane %v2491_v49, %v10009_v39  ;;  %v2493_v56 = vcombine.high %v2489_v43, %v2489_v43  ;;  %v9765_v49 = vld [vmem:[%s12765_s5 + $0xc8] ss:$0 sps:$4 sm:$0x11]  }
 0x3bc   :  { %v11387_v35 = vpop.eup %9786  ;;  %8979 = vmatprep.subr.bf16.mxu1 %v12840_v62  ;;  %v2852_v40 = vrot.slane %v2606_v57, %v10009_v39  ;;  %v2686_v44 = vrot.slane %v2378_v1, %v10009_v39  ;;  %v2892_v25 = vsel %vm507_vm4, %v2244_v52, %v2682_v26  ;;  %v2856_v54 = vrot.slane %v2608_v53, %v10009_v39  ;;  %v9764_v52 = vld [vmem:[%s12765_s5 + $0xc0] sm:$0xff]   ;;  %v4150_v1 = vpop.permute.xlu1 %4149 }
 0x3bd   :  { %8974 = vmatmul.mubr.msk.bf16.vlgmr.msra.gmra.mrb[80].mxu0 %vm1724_vm14, %v2942_v31  ;;  %v11396_v6 = vpop.eup %9788  ;;  %v2771_v20 = vrot.slane %v2493_v56, %v10009_v39  ;;  %v2909_v43 = vsel %vm525_vm5, %v2892_v25, %v2767_v10  ;;  %v3989_v56 = vand.u32 %v10759_v16, %v10735_v27  ;;  %v1753_v25 = vpack.c.bf16 %v11142_v28, %v10954_v37 }
 0x3be   :  { %8986 = vmatpush3.bf16.msra.mxu0 %v9761_v2  ;;  %8989 = vmatprep.mubr.msk.bf16.mxu0 %vm9886_vm2, %v12840_v62  ;;  %v2893_v2 = vsel %vm507_vm4, %v2246_v5, %v2686_v44  ;;  %v2926_v41 = vsel %vm543_vm6, %v2909_v43, %v2852_v40  ;;  %v2253_v10 = vrot.slane %v11396_v6, %v10000_v29  ;;  %v4148_v43 = vpop.permute.xlu0 %4147 }
 0x3bf   :  { %8987 = vmatprep.subr.bf16.mxu0 %v12840_v62  ;;  %v11405_v61 = vpop.eup %9790  ;;  %8980 = vmatpush3.bf16.msra.mxu1 %v11382_v51  ;;  %v2910_v42 = vsel %vm525_vm5, %v2893_v2, %v2771_v20  ;;  %v2943_v57 = vpack.c.bf16 %v2926_v41, %v2926_v41  ;;  %v2385_v40 = vrot.slane %v11387_v35, %v10000_v29 }
 0x3c0   :  { %v11411_v31 = vpop.eup %9792  ;;  %8993 = vmatprep.subr.bf16.mxu1 %v12840_v62  ;;  %v2927_v5 = vsel %vm543_vm6, %v2910_v42, %v2856_v54  ;;  %v2500_v53 = vrot.slane %v11405_v61, %v10000_v29  ;;  %v11440_v20 = vand.u32 %v9765_v49, %v10759_v16  ;;  %v2260_v27 = vrot.slane %v2253_v10, %v10000_v29  ;;  %v4048_v49 = vpop.permute.xlu1 %4047 }
 0x3c1   :  { %v2944_v26 = vpack.c.bf16 %v2927_v5, %v2927_v5  ;;  %v2615_v44 = vrot.slane %v11411_v31, %v10000_v29  ;;  %v2392_v54 = vrot.slane %v2385_v40, %v10000_v29 }
 0x3c2   :  { %8988 = vmatpush3.bf16.msra.mxu0 %v11385_v47  ;;  %8982 = vmatmul.mubr.msk.bf16.vlgmr.msra.gmra.mrb[68].mxu1 %vm1724_vm14, %v2943_v57  ;;  %v2507_v2 = vrot.slane %v2500_v53, %v10000_v29  ;;  %v4050_v10 = vpop.permute.xlu0 %4049  ;;  %v2015_v53 = vpack.c.bf16 %v11110_v3, %v10943_v13 }
 0x3c3   :  { %9001 = vmatprep.subr.bf16.mxu0 %v10007_v38  ;;  %8994 = vmatpush3.bf16.msra.mxu1 %v9764_v52  ;;  %v2622_v41 = vrot.slane %v2615_v44, %v10000_v29  ;;  %v2690_v52 = vrot.slane %v2392_v54, %v10009_v39  ;;  %v4191_v44 = vand.u32 %v4150_v1, %v10759_v16 }
 0x3c4   :  { %8995 = vmatprep.subr.bf16.mxu1 %v12840_v62  ;;  %8997 = vmatprep.mubr.msk.bf16.mxu1 %vm9886_vm2, %v12840_v62  ;;  %v2775_v42 = vrot.slane %v2507_v2, %v10009_v39  ;;  %v4248_v1 = vpop.permute.xlu1 %4247  ;;  %v2016_v54 = vpack.c.bf16 %v11405_v61, %v11405_v61 }
 0x3c5   :  { %8990 = vmatmul.mubr.msk.bf16.vlgmr.msra.gmra.mrb[84].mxu0 %vm1724_vm14, %v2944_v26  ;;  %v2894_v57 = vsel %vm507_vm4, %v2260_v27, %v2690_v52  ;;  %v1754_v26 = vpack.c.bf16 %v11396_v6, %v11396_v6  ;;  %v4091_v27 = vand.u32 %v4050_v10, %v10759_v16 }
 0x3c6   :  { %9002 = vmatpush3.bf16.msra.mxu0 %v10007_v38  ;;  %9005 = vmatprep.mubr.msk.bf16.mxu0 %vm1724_vm14, %v1753_v25  ;;  %v2860_v38 = vrot.slane %v2622_v41, %v10009_v39  ;;  %v2911_v5 = vsel %vm525_vm5, %v2894_v57, %v2775_v42  ;;  %v4250_v2 = vpop.permute.xlu0 %4249  ;;  %v2144_v41 = vpack.c.bf16 %v11120_v19, %v10978_v18 }
 0x3c7   :  { %9003 = vmatprep.subr.bf16.mxu0 %v3989_v56  ;;  %8996 = vmatpush3.bf16.msra.mxu1 %v11440_v20  ;;  %v4291_v52 = vand.u32 %v4250_v2, %v10759_v16 }
 0x3c8   :  { %9009 = vmatprep.subr.bf16.mxu1 %v4048_v49  ;;  %v2928_v40 = vsel %vm543_vm6, %v2911_v5, %v2860_v38  ;;  %v4590_v42 = vpop.permute.xlu1 %4589  ;;  %v2145_v38 = vpack.c.bf16 %v11411_v31, %v11411_v31 }
 0x3c9   :  { %v2945_v25 = vpack.c.bf16 %v2928_v40, %v2928_v40  ;;  %v4742_v5 = vsel %vm507_vm4, %v10744_v24, %v4590_v42 }
 0x3ca   :  { %9004 = vmatpush3.bf16.msra.mxu0 %v3989_v56  ;;  %v1886_v56 = vpack.c.bf16 %v11017_v17, %v10938_v60 }
 0x3cb   :  { %9017 = vmatprep.subr.bf16.mxu0 %v4148_v43  ;;  %8998 = vmatmul.mubr.msk.bf16.vlgmr.msra.gmra.mrb[72].mxu1 %vm1724_vm14, %v2945_v25 }
 0x3cc   :  { %9010 = vmatpush3.bf16.msra.mxu1 %v4048_v49  ;;  %9013 = vmatprep.mubr.msk.bf16.mxu1 %vm1724_vm14, %v1886_v56  ;;  %v4641_v49 = vpop.permute.xlu0 %4640  ;;  %v4692_v57 = vpop.permute.xlu1 %4691 }
 0x3cd   :  { %9006 = vmatmul.mubr.msk.bf16.vlgmr.msra.gmra.mrb[88].mxu0 %vm1724_vm14, %v1754_v26  ;;  %9011 = vmatprep.subr.bf16.mxu1 %v4091_v27  ;;  %v4759_v26 = vsel %vm525_vm5, %v4742_v5, %v4641_v49 }
 0x3ce   :  { %9018 = vmatpush3.bf16.msra.mxu0 %v4148_v43  ;;  %9021 = vmatprep.mubr.msk.bf16.mxu0 %vm1724_vm14, %v2015_v53  ;;  %v1887_v43 = vpack.c.bf16 %v11387_v35, %v11387_v35  ;;  %v4776_v10 = vsel %vm543_vm6, %v4759_v26, %v4692_v57 }
 0x3cf   :  { %9019 = vmatprep.subr.bf16.mxu0 %v4191_v44 }
 0x3d0   :  { %9012 = vmatpush3.bf16.msra.mxu1 %v4091_v27  ;;  %v9543_v40 = vpop.permute.xlu1 %9542 }
 0x3d1   :  { %9025 = vmatprep.subr.bf16.mxu1 %v4248_v1  ;;  %v9544_v25 = vunpack.i.l.bf16 %v9543_v40 }
 0x3d2   :  { %9020 = vmatpush3.bf16.msra.mxu0 %v4191_v44  ;;  %v4793_v44 = vpack.c.bf16 %v4776_v10, %v4776_v10 }
 0x3d3   :  { %9033 = vmatprep.subr.bf16.mxu0 %v12840_v62  ;;  %9014 = vmatmul.mubr.msk.bf16.vlgmr.msra.gmra.mrb[76].mxu1 %vm1724_vm14, %v1887_v43 }
 0x3d4   :  { %9026 = vmatpush3.bf16.msra.mxu1 %v4248_v1  ;;  %9029 = vmatprep.mubr.msk.bf16.mxu1 %vm1724_vm14, %v2144_v41  ;;  %v9545_v1 = vunpack.i.h.bf16 %v9543_v40  ;;  %v9553_v43 = vpop.permute.xlu1 %9552 }
 0x3d5   :  { %9022 = vmatmul.mubr.msk.bf16.vlgmr.msra.gmra.mrb[92].mxu0 %vm1724_vm14, %v2016_v54  ;;  %9027 = vmatprep.subr.bf16.mxu1 %v4291_v52  ;;  %v9555_v57 = vunpack.i.h.bf16 %v9553_v43 }
 0x3d6   :  { %9037 = vmatprep.mubr.msk.bf16.mxu0 %vm9886_vm2, %v12840_v62 }
 0x3d8   :  { %9028 = vmatpush3.bf16.msra.mxu1 %v4291_v52  ;;  %v9563_v42 = vpop.permute.xlu1 %9562 }
 0x3d9   :  { %9041 = vmatprep.subr.bf16.mxu1 %v12840_v62  ;;  %v9564_v49 = vunpack.i.l.bf16 %v9563_v42  ;;  %v9565_v26 = vunpack.i.h.bf16 %v9563_v42  ;;  %v12864_v42 = vld [vmem:[#allocation8_spill] sm:$0xff] }
 0x3db   :  { %9034 = vmatpush3.bf16.xpose.msra.mxu0 %v9986_v21  ;;  %9030 = vmatmul.mubr.msk.bf16.vlgmr.msra.gmra.mrb[80].mxu1 %vm1724_vm14, %v2145_v38  ;;  %v9538_v21 = vpop.permute.xlu0 %9537 }
 0x3dc   :  { %9035 = vmatprep.subr.bf16.mxu0 %v12840_v62  ;;  %9045 = vmatprep.mubr.msk.bf16.mxu1 %vm9886_vm2, %v12840_v62  ;;  %v9539_v53 = vunpack.i.l.bf16 %v9538_v21 }
 0x3df   :  { %v9548_v56 = vpop.permute.xlu0 %9547 }
 0x3e0   :  { %v9549_v27 = vunpack.i.l.bf16 %v9548_v56  ;;  %v9550_v41 = vunpack.i.h.bf16 %v9548_v56 }
 0x3e1   :  { %9042 = vmatpush3.bf16.xpose.msra.mxu1 %v9993_v23  ;;  %v9540_v23 = vunpack.i.h.bf16 %v9538_v21 }
 0x3e2   :  { %9043 = vmatprep.subr.bf16.mxu1 %v12840_v62 }
 0x3e3   :  { %9036 = vmatpush3.bf16.xpose.msra.mxu0 %v9990_v22  ;;  %v4743_v22 = vsel %vm507_vm4, %v10769_v15, %v9539_v53  ;;  %v4744_v15 = vsel %vm507_vm4, %v10773_v30, %v9540_v23  ;;  %v9554_v30 = vunpack.i.l.bf16 %v9553_v43  ;;  %v9558_v38 = vpop.permute.xlu0 %9557  ;;  %v12861_v23 = vld [vmem:[#allocation6_spill] sm:$0xff] }
 0x3e4   :  { %9049 = vmatprep.subr.bf16.mxu0 %v12840_v62  ;;  %v4760_v24 = vsel %vm525_vm5, %v4743_v22, %v9544_v25  ;;  %v12860_v22 = vld [vmem:[#allocation30_spill] sm:$0xff] }
 0x3e5   :  { %v4777_v54 = vsel %vm543_vm6, %v4760_v24, %v9549_v27 }
 0x3e6   :  { %v4794_v2 = vpack.c.bf16 %v4777_v54, %v4777_v54  ;;  %v12862_v54 = vld [vmem:[#allocation5_spill] sm:$0xff] }
 0x3e7   :  { %v9568_v40 = vpop.permute.xlu0 %9567 }
 0x3e8   :  { %v9570_v27 = vunpack.i.h.bf16 %v9568_v40 }
 0x3e9   :  { %9044 = vmatpush3.bf16.xpose.msra.mxu1 %v10023_v45 }
 0x3ea   :  { %9038 = vmatmul.mubr.msk.bf16.vlgmr.msra.gmra.mrb[96].mxu0 %vm637_vm1, %v4793_v44  ;;  %9057 = vmatprep.subr.bf16.mxu1 %v12840_v62  ;;  %v9573_v44 = vpop.permute.xlu1 %9572 }
 0x3eb   :  { %9050 = vmatpush3.bf16.xpose.msra.mxu0 %v10238_v7  ;;  %9053 = vmatprep.mubr.msk.bf16.mxu0 %vm9886_vm2, %v12840_v62  ;;  %v4761_v7 = vsel %vm525_vm5, %v4744_v15, %v9545_v1  ;;  %v9578_v56 = vpop.permute.xlu0 %9577  ;;  %v9575_v15 = vunpack.i.h.bf16 %v9573_v44 }
 0x3ec   :  { %9051 = vmatprep.subr.bf16.mxu0 %v12840_v62  ;;  %v4778_v45 = vsel %vm543_vm6, %v4761_v7, %v9550_v41  ;;  %v9579_v1 = vunpack.i.l.bf16 %v9578_v56 }
 0x3ed   :  { %v4795_v52 = vpack.c.bf16 %v4778_v45, %v4778_v45 }
 0x3f0   :  { %9046 = vmatmul.mubr.msk.bf16.vlgmr.msra.gmra.mrb[84].mxu1 %vm637_vm1, %v4794_v2  ;;  %v12863_v2 = vld [vmem:[#allocation31_spill] sm:$0xff] }
 0x3f1   :  { %9058 = vmatpush3.bf16.xpose.msra.mxu1 %v10256_v50  ;;  %9061 = vmatprep.mubr.msk.bf16.mxu1 %vm9886_vm2, %v12840_v62  ;;  %v9559_v50 = vunpack.i.l.bf16 %v9558_v38  ;;  %v4748_v43 = vsel %vm507_vm4, %v12863_v2, %v9570_v27 }
 0x3f2   :  { %9059 = vmatprep.subr.bf16.mxu1 %v12840_v62  ;;  %v4765_v41 = vsel %vm525_vm5, %v4748_v43, %v9575_v15 }
 0x3f3   :  { %9052 = vmatpush3.bf16.xpose.msra.mxu0 %v10260_v0  ;;  %v4745_v0 = vsel %vm507_vm4, %v10800_v59, %v9554_v30  ;;  %v4746_v59 = vsel %vm507_vm4, %v10803_v55, %v9555_v57  ;;  %v9569_v55 = vunpack.i.l.bf16 %v9568_v40  ;;  %v9583_v30 = vpop.permute.xlu1 %9582 }
 0x3f4   :  { %9065 = vmatprep.subr.bf16.mxu0 %v12840_v62  ;;  %v4762_v5 = vsel %vm525_vm5, %v4745_v0, %v9559_v50  ;;  %v12865_v0 = vld [vmem:[#allocation7_spill] sm:$0xff]  ;;  %v9585_v40 = vunpack.i.h.bf16 %v9583_v30 }
 0x3f5   :  { %v4779_v21 = vsel %vm543_vm6, %v4762_v5, %v9564_v49  ;;  %v4747_v24 = vsel %vm507_vm4, %v12860_v22, %v9569_v55  ;;  %v9584_v49 = vunpack.i.l.bf16 %v9583_v30  ;;  %v9588_v5 = vpop.permute.xlu0 %9587  ;;  %v12869_v55 = vld [vmem:[#allocation33_spill] sm:$0xff]  ;;  %v12873_v30 = vld [vmem:[#allocation14_spill] sm:$0xff] }
 0x3f6   :  { %v4796_v10 = vpack.c.bf16 %v4779_v21, %v4779_v21  ;;  %v12866_v21 = vld [vmem:[#allocation32_spill] sm:$0xff] }
 0x3f7   :  { %v9593_v57 = vpop.permute.xlu1 %9592 }
 0x3f9   :  { %9060 = vmatpush3.bf16.xpose.msra.mxu1 %v10279_v4 }
 0x3fa   :  { %9054 = vmatmul.mubr.msk.bf16.vlgmr.msra.gmra.mrb[100].mxu0 %vm637_vm1, %v4795_v52  ;;  %9073 = vmatprep.subr.bf16.mxu1 %v12840_v62  ;;  %v9580_v52 = vunpack.i.h.bf16 %v9578_v56  ;;  %v9590_v56 = vunpack.i.h.bf16 %v9588_v5 }
 0x3fb   :  { %9066 = vmatpush3.bf16.xpose.msra.mxu0 %v10284_v14  ;;  %9069 = vmatprep.mubr.msk.bf16.mxu0 %vm9886_vm2, %v12840_v62  ;;  %v9560_v14 = vunpack.i.h.bf16 %v9558_v38 }
 0x3fc   :  { %9067 = vmatprep.subr.bf16.mxu0 %v12840_v62  ;;  %v4782_v38 = vsel %vm543_vm6, %v4765_v41, %v9580_v52  ;;  %v12872_v41 = vld [vmem:[#allocation34_spill] sm:$0xff] }
 0x3fd   :  { %v4763_v53 = vsel %vm525_vm5, %v4746_v59, %v9560_v14  ;;  %v4799_v50 = vpack.c.bf16 %v4782_v38, %v4782_v38  ;;  %v4749_v59 = vsel %vm507_vm4, %v12866_v21, %v9584_v49  ;;  %v12867_v14 = vld [vmem:[#allocation10_spill] sm:$0xff] }
 0x3fe   :  { %v4780_v4 = vsel %vm543_vm6, %v4763_v53, %v9565_v26  ;;  %v9594_v26 = vunpack.i.l.bf16 %v9593_v57  ;;  %v12868_v53 = vld [vmem:[#allocation9_spill] sm:$0xff] }
 0x3ff   :  { %v4797_v25 = vpack.c.bf16 %v4780_v4, %v4780_v4 }
 0x400   :  { %9062 = vmatmul.mubr.msk.bf16.vlgmr.msra.gmra.mrb[88].mxu1 %vm637_vm1, %v4796_v10  ;;  %v9589_v10 = vunpack.i.l.bf16 %v9588_v5 }
 0x401   :  { %9074 = vmatpush3.bf16.xpose.msra.mxu1 %v10302_v33  ;;  %9077 = vmatprep.mubr.msk.bf16.mxu1 %vm9886_vm2, %v12840_v62 }
 0x402   :  { %9075 = vmatprep.subr.bf16.mxu1 %v12840_v62  ;;  %v4766_v4 = vsel %vm525_vm5, %v4749_v59, %v9589_v10  ;;  %v12876_v10 = vld [vmem:[#allocation16_spill] sm:$0xff] }
 0x403   :  { %9068 = vmatpush3.bf16.xpose.msra.mxu0 %v10306_v46  ;;  %v9574_v46 = vunpack.i.l.bf16 %v9573_v44  ;;  %v4783_v44 = vsel %vm543_vm6, %v4766_v4, %v9594_v26 }
 0x404   :  { %9081 = vmatprep.subr.bf16.mxu0 %v12840_v62  ;;  %v4800_v22 = vpack.c.bf16 %v4783_v44, %v4783_v44 }
 0x405   :  { %v4764_v33 = vsel %vm525_vm5, %v4747_v24, %v9574_v46  ;;  %v9595_v46 = vunpack.i.h.bf16 %v9593_v57  ;;  %v12870_v24 = vld [vmem:[#allocation12_spill] sm:$0xff]  ;;  %v12875_v57 = vld [vmem:[#allocation35_spill] sm:$0xff] }
 0x406   :  { %v4781_v7 = vsel %vm543_vm6, %v4764_v33, %v9579_v1  ;;  %v9603_v1 = vpop.permute.xlu1 %9602 }
 0x407   :  { %v4798_v45 = vpack.c.bf16 %v4781_v7, %v4781_v7  ;;  %v9604_v2 = vunpack.i.l.bf16 %v9603_v1  ;;  %v9605_v49 = vunpack.i.h.bf16 %v9603_v1 }
 0x409   :  { %9076 = vmatpush3.bf16.xpose.msra.mxu1 %v12862_v54  ;;  %v12871_v54 = vld [vmem:[#allocation11_spill] sm:$0xff] }
 0x40a   :  { %9070 = vmatmul.mubr.msk.bf16.vlgmr.msra.gmra.mrb[104].mxu0 %vm637_vm1, %v4797_v25  ;;  %9089 = vmatprep.subr.bf16.mxu1 %v12840_v62  ;;  %v4750_v25 = vsel %vm507_vm4, %v12869_v55, %v9585_v40  ;;  %v9613_v26 = vpop.permute.xlu1 %9612 }
 0x40b   :  { %9082 = vmatpush3.bf16.xpose.msra.mxu0 %v12861_v23  ;;  %9085 = vmatprep.mubr.msk.bf16.mxu0 %vm9886_vm2, %v12840_v62  ;;  %v9598_v23 = vpop.permute.xlu0 %9597  ;;  %v4767_v33 = vsel %vm525_vm5, %v4750_v25, %v9590_v56  ;;  %v9614_v4 = vunpack.i.l.bf16 %v9613_v26 }
 0x40c   :  { %9083 = vmatprep.subr.bf16.mxu0 %v12840_v62  ;;  %v4784_v27 = vsel %vm543_vm6, %v4767_v33, %v9595_v46  ;;  %v9599_v15 = vunpack.i.l.bf16 %v9598_v23  ;;  %v12878_v46 = vld [vmem:[#allocation36_spill] sm:$0xff]  ;;  %v9615_v33 = vunpack.i.h.bf16 %v9613_v26 }
 0x40d   :  { %v4801_v7 = vpack.c.bf16 %v4784_v27, %v4784_v27  ;;  %v4753_v56 = vsel %vm507_vm4, %v12878_v46, %v9614_v4  ;;  %v12880_v27 = vld [vmem:[#allocation17_spill] sm:$0xff]  ;;  %v12887_v46 = vld [vmem:[#allocation39_spill] sm:$0xff] }
 0x40e   :  { %v9623_v25 = vpop.permute.xlu1 %9622 }
 0x40f   :  { %v9608_v43 = vpop.permute.xlu0 %9607 }
 0x410   :  { %9078 = vmatmul.mubr.msk.bf16.vlgmr.msra.gmra.mrb[92].mxu1 %vm637_vm1, %v4798_v45  ;;  %v4751_v45 = vsel %vm507_vm4, %v12872_v41, %v9599_v15  ;;  %v9609_v38 = vunpack.i.l.bf16 %v9608_v43 }
 0x411   :  { %9090 = vmatpush3.bf16.xpose.msra.mxu1 %v12865_v0  ;;  %9093 = vmatprep.mubr.msk.bf16.mxu1 %vm9886_vm2, %v12840_v62  ;;  %v4768_v52 = vsel %vm525_vm5, %v4751_v45, %v9604_v2  ;;  %v12874_v0 = vld [vmem:[#allocation13_spill] sm:$0xff] }
 0x412   :  { %9091 = vmatprep.subr.bf16.mxu1 %v12840_v62 }
 0x413   :  { %9084 = vmatpush3.bf16.xpose.msra.mxu0 %v12864_v42  ;;  %v9600_v42 = vunpack.i.h.bf16 %v9598_v23  ;;  %v9618_v44 = vpop.permute.xlu0 %9617 }
 0x414   :  { %9097 = vmatprep.subr.bf16.mxu0 %v12840_v62  ;;  %v9619_v23 = vunpack.i.l.bf16 %v9618_v44  ;;  %v9620_v41 = vunpack.i.h.bf16 %v9618_v44 }
 0x415   :  { %v4752_v5 = vsel %vm507_vm4, %v12875_v57, %v9600_v42 }
 0x416   :  { %v4769_v21 = vsel %vm525_vm5, %v4752_v5, %v9605_v49  ;;  %v12883_v49 = vld [vmem:[#allocation19_spill] sm:$0xff] }
 0x417   :  { %v9628_v1 = vpop.permute.xlu0 %9627 }
 0x419   :  { %9092 = vmatpush3.bf16.xpose.msra.mxu1 %v12868_v53  ;;  %v12877_v53 = vld [vmem:[#allocation15_spill] sm:$0xff] }
 0x41a   :  { %9086 = vmatmul.mubr.msk.bf16.vlgmr.msra.gmra.mrb[108].mxu0 %vm637_vm1, %v4799_v50  ;;  %9105 = vmatprep.subr.bf16.mxu1 %v12840_v62  ;;  %v4785_v50 = vsel %vm543_vm6, %v4768_v52, %v9609_v38 }
 0x41b   :  { %9098 = vmatpush3.bf16.xpose.msra.mxu0 %v12867_v14  ;;  %9101 = vmatprep.mubr.msk.bf16.mxu0 %vm9886_vm2, %v12840_v62  ;;  %v4802_v59 = vpack.c.bf16 %v4785_v50, %v4785_v50  ;;  %v9610_v14 = vunpack.i.h.bf16 %v9608_v43  ;;  %v9625_v43 = vunpack.i.h.bf16 %v9623_v25  ;;  %v9638_v52 = vpop.permute.xlu0 %9637  ;;  %v9629_v50 = vunpack.i.l.bf16 %v9628_v1 }
 0x41c   :  { %9099 = vmatprep.subr.bf16.mxu0 %v12840_v62  ;;  %v9639_v4 = vunpack.i.l.bf16 %v9638_v52 }
 0x41d   :  { %v4786_v40 = vsel %vm543_vm6, %v4769_v21, %v9610_v14 }
 0x41e   :  { %v4803_v55 = vpack.c.bf16 %v4786_v40, %v4786_v40  ;;  %v9630_v40 = vunpack.i.h.bf16 %v9628_v1 }
 0x41f   :  { %v11631_v21 = vpop.permute.xlu0 %9647 }
 0x420   :  { %9094 = vmatmul.mubr.msk.bf16.vlgmr.msra.gmra.mrb[96].mxu1 %vm637_vm1, %v4800_v22  ;;  %v9624_v22 = vunpack.i.l.bf16 %v9623_v25 }
 0x421   :  { %9106 = vmatpush3.bf16.xpose.msra.mxu1 %v12871_v54  ;;  %9109 = vmatprep.mubr.msk.bf16.mxu1 %vm9886_vm2, %v12840_v62  ;;  %v4770_v54 = vsel %vm525_vm5, %v4753_v56, %v9619_v23  ;;  %v4756_v56 = vsel %vm507_vm4, %v12887_v46, %v9630_v40 }
 0x422   :  { %9107 = vmatprep.subr.bf16.mxu1 %v12840_v62  ;;  %v4787_v15 = vsel %vm543_vm6, %v4770_v54, %v9624_v22  ;;  %v9640_v54 = vunpack.i.h.bf16 %v9638_v52 }
 0x423   :  { %9100 = vmatpush3.bf16.xpose.msra.mxu0 %v12870_v24  ;;  %v12879_v24 = vld [vmem:[#allocation18_spill] sm:$0xff]  ;;  %v4804_v45 = vpack.c.bf16 %v4787_v15, %v4787_v15  ;;  %v11648_v22 = vpop.permute.xlu0 %5574 }
 0x424   :  { %9113 = vmatprep.subr.bf16.mxu0 %v12840_v62 }
 0x429   :  { %9108 = vmatpush3.bf16.xpose.msra.mxu1 %v12874_v0  ;;  %v9633_v0 = vpop.permute.xlu1 %9632 }
 0x42a   :  { %9102 = vmatmul.mubr.msk.bf16.vlgmr.msra.gmra.mrb[112].mxu0 %vm637_vm1, %v4801_v7  ;;  %9121 = vmatprep.subr.bf16.mxu1 %v12840_v62  ;;  %v12881_v7 = vld [vmem:[#allocation37_spill] sm:$0xff]  ;;  %v9634_v5 = vunpack.i.l.bf16 %v9633_v0  ;;  %v9635_v44 = vunpack.i.h.bf16 %v9633_v0 }
 0x42b   :  { %9114 = vmatpush3.bf16.xpose.msra.mxu0 %v12873_v30  ;;  %9117 = vmatprep.mubr.msk.bf16.mxu0 %vm9886_vm2, %v12840_v62  ;;  %v4754_v2 = vsel %vm507_vm4, %v12881_v7, %v9615_v33  ;;  %v12882_v30 = vld [vmem:[#allocation20_spill] sm:$0xff] }
 0x42c   :  { %9115 = vmatprep.subr.bf16.mxu0 %v12840_v62  ;;  %v4771_v42 = vsel %vm525_vm5, %v4754_v2, %v9620_v41  ;;  %v4773_v23 = vsel %vm525_vm5, %v4756_v56, %v9635_v44  ;;  %v11666_v44 = vpop.permute.xlu0 %5576 }
 0x42d   :  { %v4788_v38 = vsel %vm543_vm6, %v4771_v42, %v9625_v43  ;;  %v11636_v14 = vpop.permute.xlu1 %9642 }
 0x42e   :  { %v4805_v57 = vpack.c.bf16 %v4788_v38, %v4788_v38 }
 0x430   :  { %9110 = vmatmul.mubr.msk.bf16.vlgmr.msra.gmra.mrb[100].mxu1 %vm637_vm1, %v4802_v59  ;;  %v12884_v59 = vld [vmem:[#allocation38_spill] sm:$0xff] }
 0x431   :  { %9122 = vmatpush3.bf16.xpose.msra.mxu1 %v12877_v53  ;;  %9125 = vmatprep.mubr.msk.bf16.mxu1 %vm9886_vm2, %v12840_v62  ;;  %v4755_v26 = vsel %vm507_vm4, %v12884_v59, %v9629_v50  ;;  %v11651_v33 = vpop.permute.xlu1 %9652 }
 0x432   :  { %9123 = vmatprep.subr.bf16.mxu1 %v12840_v62  ;;  %v4772_v53 = vsel %vm525_vm5, %v4755_v26, %v9634_v5  ;;  %v12889_v5 = vld [vmem:[#allocation23_spill] sm:$0xff] }
 0x433   :  { %9116 = vmatpush3.bf16.xpose.msra.mxu0 %v12876_v10  ;;  %v12885_v10 = vld [vmem:[#allocation22_spill] sm:$0xff]  ;;  %v4789_v25 = vsel %vm543_vm6, %v4772_v53, %v9639_v4  ;;  %v9644_v53 = vunpack.i.l.bf16 %v11636_v14 }
 0x434   :  { %9129 = vmatprep.subr.bf16.mxu0 %v12840_v62  ;;  %v4806_v15 = vpack.c.bf16 %v4789_v25, %v4789_v25 }
 0x435   :  { %v11668_v25 = vpop.permute.xlu1 %5721 }
 0x439   :  { %9124 = vmatpush3.bf16.xpose.msra.mxu1 %v12880_v27 }
 0x43a   :  { %9118 = vmatmul.mubr.msk.bf16.vlgmr.msra.gmra.mrb[116].mxu0 %vm637_vm1, %v4803_v55  ;;  %9137 = vmatprep.subr.bf16.mxu1 %v12840_v62  ;;  %v12886_v55 = vld [vmem:[#allocation21_spill] sm:$0xff] }
 0x43b   :  { %9130 = vmatpush3.bf16.xpose.msra.mxu0 %v12879_v24  ;;  %9133 = vmatprep.mubr.msk.bf16.mxu0 %vm9886_vm2, %v12840_v62 }
 0x43c   :  { %9131 = vmatprep.subr.bf16.mxu0 %v12840_v62 }
 0x440   :  { %9126 = vmatmul.mubr.msk.bf16.vlgmr.msra.gmra.mrb[104].mxu1 %vm637_vm1, %v4804_v45  ;;  %v12888_v45 = vld [vmem:[#allocation24_spill] sm:$0xff] }
 0x441   :  { %9138 = vmatpush3.bf16.xpose.msra.mxu1 %v12883_v49  ;;  %9141 = vmatprep.mubr.msk.bf16.mxu1 %vm9886_vm2, %v12840_v62 }
 0x442   :  { %9139 = vmatprep.subr.bf16.mxu1 %v12840_v62 }
 0x443   :  { %9132 = vmatpush3.bf16.xpose.msra.mxu0 %v12882_v30 }
 0x444   :  { %9145 = vmatprep.subr.bf16.mxu0 %v12840_v62 }
 0x449   :  { %9140 = vmatpush3.bf16.xpose.msra.mxu1 %v12886_v55 }
 0x44a   :  { %9134 = vmatmul.mubr.msk.bf16.vlgmr.msra.gmra.mrb[120].mxu0 %vm637_vm1, %v4805_v57  ;;  %9153 = vmatprep.subr.bf16.mxu1 %v12840_v62  ;;  %v4790_v57 = vsel %vm543_vm6, %v4773_v23, %v9640_v54  ;;  %v12890_v54 = vld [vmem:[#allocation40_spill] sm:$0xff] }
 0x44b   :  { %9146 = vmatpush3.bf16.xpose.msra.mxu0 %v12885_v10  ;;  %9149 = vmatprep.mubr.msk.bf16.mxu0 %vm9886_vm2, %v12840_v62  ;;  %v4807_v4 = vpack.c.bf16 %v4790_v57, %v4790_v57 }
 0x44c   :  { %9147 = vmatprep.subr.bf16.mxu0 %v12840_v62 }
 0x450   :  { %9142 = vmatmul.mubr.msk.bf16.vlgmr.msra.gmra.mrb[108].mxu1 %vm637_vm1, %v4806_v15  ;;  %v4757_v15 = vsel %vm507_vm4, %v12890_v54, %v9644_v53  ;;  %v11697_v54 = vpop.permute.xlu0 %5850 }
 0x451   :  { %9154 = vmatpush3.bf16.xpose.msra.mxu1 %v12889_v5  ;;  %9157 = vmatprep.mubr.msk.bf16.mxu1 %vm9886_vm2, %v12840_v62 }
 0x452   :  { %9155 = vmatprep.subr.bf16.mxu1 %v12840_v62 }
 0x453   :  { %9148 = vmatpush3.bf16.xpose.msra.mxu0 %v12888_v45 }
 0x454   :  { %9161 = vmatprep.subr.bf16.mxu0 %v12840_v62 }
 0x45a   :  { %v3048_v24 = vpop.f32.mrb[40].mxu1  ;;  %9150 = vmatmul.mubr.msk.bf16.vlgmr.msra.gmra.mrb[124].mxu0 %vm637_vm1, %v4807_v4  ;;  %v12893_v4 = vld [vmem:[#allocation41_spill] sm:$0xff] }
 0x45b   :  { %v4052_v27 = vrot.slane %v3048_v24, 1  ;;  %v8871_v1 = vpop.f32.mrb[41].mxu1  ;;  %v4152_v7 = vrot.slane %v3048_v24, 2  ;;  %v4252_v2 = vrot.slane %v3048_v24, 3  ;;  %9165 = vmatprep.mubr.msk.bf16.mxu0 %vm9886_vm2, %v12840_v62 }
 0x45c   :  { %v3051_v43 = vpop.f32.mrb[42].mxu1  ;;  %v3103_v41 = vpop.f32.mrb[56].mxu0  ;;  %v9645_v1 = vunpack.i.h.bf16 %v11636_v14 }
 0x45d   :  { %v3951_v30 = vrot.slane %v3103_v41, 7  ;;  %v4053_v42 = vsel %vm1627_vm7, %v3103_v41, %v4052_v27  ;;  %v4153_v38 = vrot.slane %v3103_v41, 1  ;;  %v4253_v0 = vrot.slane %v3103_v41, 2  ;;  %v8872_v49 = vpop.f32.mrb[43].mxu1  ;;  %v8879_v50 = vpop.f32.mrb[57].mxu0  ;;  %v12891_v41 = vld [vmem:[#allocation26_spill] sm:$0xff] }
 0x45e   :  { %v3106_v52 = vpop.f32.mrb[58].mxu0  ;;  %9162 = vmatpush3.bf16.xpose.msra.mxu0 %v12891_v41  ;;  %v9649_v50 = vunpack.i.l.bf16 %v11631_v21  ;;  %v11700_v41 = vpop.permute.xlu1 %5723 }
 0x45f   :  { %v3952_v59 = vsel %vm1627_vm7, %v3951_v30, %v3048_v24  ;;  %v8880_v26 = vpop.f32.mrb[59].mxu0  ;;  %v4154_v10 = vsel %vm1627_vm7, %v4153_v38, %v4152_v7  ;;  %v4254_v40 = vsel %vm1627_vm7, %v4253_v0, %v4252_v2  ;;  %v9654_v7 = vunpack.i.l.bf16 %v11651_v33  ;;  %9163 = vmatprep.subr.bf16.mxu0 %v12840_v62 }
 0x460   :  { %v12892_v26 = vld [vmem:[#allocation25_spill] sm:$0xff] }
 0x461   :  { %9156 = vmatpush3.bf16.xpose.msra.mxu1 %v12892_v26  ;;  %v5633_v26 = vsel %vm637_vm1, %v11648_v22, 0 }
 0x462   :  { %v3158_v55 = vpop.f32.mrb[44].mxu1  ;;  %9397 = vmatprep.subr.msk.bf16.mxu1 %vm637_vm1, %v11648_v22 }
 0x463   :  { %v3953_v46 = vrot.slane %v3158_v55, 6  ;;  %v4054_v56 = vrot.slane %v3158_v55, 7  ;;  %v4155_v23 = vsel %vm1630_vm8, %v3158_v55, %v4154_v10  ;;  %v4255_v24 = vrot.slane %v3158_v55, 1  ;;  %v8887_v27 = vpop.f32.mrb[45].mxu1 }
 0x464   :  { %v3161_v2 = vpop.f32.mrb[46].mxu1  ;;  %v3213_v43 = vpop.f32.mrb[60].mxu0  ;;  %v4758_v55 = vsel %vm507_vm4, %v12893_v4, %v9645_v1 }
 0x465   :  { %v3954_v45 = vsel %vm1630_vm8, %v3953_v46, %v3952_v59  ;;  %v4055_v30 = vsel %vm1630_vm8, %v4054_v56, %v4053_v42  ;;  %v3955_v38 = vrot.slane %v3213_v43, 5  ;;  %v4056_v0 = vrot.slane %v3213_v43, 6  ;;  %v8888_v14 = vpop.f32.mrb[47].mxu1  ;;  %v8895_v49 = vpop.f32.mrb[61].mxu0 }
 0x466   :  { %v4156_v57 = vrot.slane %v3213_v43, 7  ;;  %v4256_v52 = vsel %vm1630_vm8, %v4255_v24, %v4254_v40  ;;  %v3216_v5 = vpop.f32.mrb[62].mxu0  ;;  %v9655_v46 = vunpack.i.h.bf16 %v11651_v33  ;;  %v4774_v56 = vsel %vm525_vm5, %v4757_v15, %v9649_v50 }
 0x467   :  { %v3956_v59 = vsel %vm1633_vm9, %v3955_v38, %v3954_v45  ;;  %v4057_v42 = vsel %vm1633_vm9, %v4056_v0, %v4055_v30  ;;  %v4257_v10 = vsel %vm1633_vm9, %v3213_v43, %v4256_v52  ;;  %v8896_v53 = vpop.f32.mrb[63].mxu0  ;;  %v9650_v24 = vunpack.i.h.bf16 %v11631_v21  ;;  %v12894_v21 = vld [vmem:[#allocation27_spill] sm:$0xff] }
 0x468   :  { %v4157_v40 = vsel %vm1633_vm9, %v4156_v57, %v4155_v23  ;;  %v4791_v27 = vsel %vm543_vm6, %v4774_v56, %v9654_v7  ;;  %9164 = vmatpush3.bf16.xpose.msra.mxu0 %v12894_v21  ;;  %v12895_v56 = vld [vmem:[#allocation2_spill] sm:$0xff]  ;;  %v5636_v21 = vsel %vm637_vm1, %v11666_v44, 0 }
 0x469   :  { %v4775_v43 = vsel %vm525_vm5, %v4758_v55, %v9650_v24  ;;  %v4808_v38 = vpack.c.bf16 %v4791_v27, %v4791_v27  ;;  %9399 = vmatprep.subr.msk.bf16.mxu0 %vm637_vm1, %v11668_v25 }
 0x46a   :  { %v3268_v2 = vpop.f32.mrb[48].mxu1  ;;  %v4792_v30 = vsel %vm543_vm6, %v4775_v43, %v9655_v46 }
 0x46b   :  { %v3957_v1 = vrot.slane %v3268_v2, 4  ;;  %v4058_v33 = vrot.slane %v3268_v2, 5  ;;  %v4158_v45 = vrot.slane %v3268_v2, 6  ;;  %v8903_v15 = vpop.f32.mrb[49].mxu1  ;;  %v4258_v0 = vrot.slane %v3268_v2, 7  ;;  %9158 = vmatmul.mubr.msk.bf16.vlgmr.msra.gmra.mrb[112].mxu1 %vm637_vm1, %v4808_v38 }
 0x46c   :  { %v3271_v23 = vpop.f32.mrb[50].mxu1  ;;  %v3323_v14 = vpop.f32.mrb[64].mxu0  ;;  %9170 = vmatpush3.bf16.xpose.msra.mxu1 %v5633_v26  ;;  %9173 = vmatprep.mubr.msk.bf16.mxu1 %vm637_vm1, %v12895_v56  ;;  %v4809_v43 = vpack.c.bf16 %v4792_v30, %v4792_v30 }
 0x46d   :  { %v3959_v7 = vrot.slane %v3323_v14, 3  ;;  %v4060_v49 = vrot.slane %v3323_v14, 4  ;;  %v4160_v50 = vrot.slane %v3323_v14, 5  ;;  %v4260_v57 = vrot.slane %v3323_v14, 6  ;;  %v8904_v52 = vpop.f32.mrb[51].mxu1  ;;  %v8911_v5 = vpop.f32.mrb[65].mxu0  ;;  %9398 = vmatprep.subr.msk.bf16.mxu1 %vm637_vm1, %v11666_v44 }
 0x46e   :  { %v3326_v53 = vpop.f32.mrb[66].mxu0  ;;  %v3958_v4 = vsel %vm1636_vm10, %v3957_v1, %v3956_v59  ;;  %v4059_v55 = vsel %vm1636_vm10, %v4058_v33, %v4057_v42  ;;  %v4159_v46 = vsel %vm1636_vm10, %v4158_v45, %v4157_v40  ;;  %v4259_v59 = vsel %vm1636_vm10, %v4258_v0, %v4257_v10  ;;  %v11721_v40 = vpop.permute.xlu0 %5979 }
 0x46f   :  { %v8912_v24 = vpop.f32.mrb[67].mxu0  ;;  %v3960_v27 = vsel %vm1639_vm11, %v3959_v7, %v3958_v4  ;;  %v4061_v22 = vsel %vm1639_vm11, %v4060_v49, %v4059_v55  ;;  %v4161_v2 = vsel %vm1639_vm11, %v4160_v50, %v4159_v46  ;;  %v4261_v42 = vsel %vm1639_vm11, %v4260_v57, %v4259_v59  ;;  %v5718_v33 = vpop.permute.xlu1 %5717  ;;  %9166 = vmatmul.mubr.msk.bf16.vlgmr.msra.gmra.mrb[128].mxu0 %vm637_vm1, %v4809_v43 }
 0x470   :  { %v5764_v7 = vsel %vm637_vm1, %v11668_v25, 0  ;;  %9181 = vmatprep.mubr.msk.bf16.mxu0 %vm637_vm1, %v5718_v33 }
 0x471   :  { %9178 = vmatpush3.bf16.xpose.msra.mxu0 %v5764_v7 }
 0x472   :  { %v3378_v1 = vpop.f32.mrb[52].mxu1  ;;  %9400 = vmatprep.subr.msk.bf16.mxu0 %vm637_vm1, %v11700_v41 }
 0x473   :  { %v3961_v45 = vrot.slane %v3378_v1, 2  ;;  %v4062_v15 = vrot.slane %v3378_v1, 3  ;;  %v4162_v38 = vrot.slane %v3378_v1, 4  ;;  %v4262_v23 = vrot.slane %v3378_v1, 5  ;;  %v8919_v14 = vpop.f32.mrb[53].mxu1 }
 0x474   :  { %v3381_v10 = vpop.f32.mrb[54].mxu1  ;;  %v3433_v0 = vpop.f32.mrb[68].mxu0  ;;  %9172 = vmatpush3.bf16.xpose.msra.mxu1 %v5636_v21 }
 0x475   :  { %v3963_v30 = vrot.slane %v3433_v0, 1  ;;  %v4064_v49 = vrot.slane %v3433_v0, 2  ;;  %v4164_v50 = vrot.slane %v3433_v0, 3  ;;  %v4264_v57 = vrot.slane %v3433_v0, 4  ;;  %v8920_v52 = vpop.f32.mrb[55].mxu1  ;;  %v8927_v5 = vpop.f32.mrb[69].mxu0  ;;  %9401 = vmatprep.subr.msk.bf16.mxu1 %vm637_vm1, %v11697_v54 }
 0x476   :  { %v3436_v44 = vpop.f32.mrb[70].mxu0  ;;  %v3962_v26 = vsel %vm1642_vm12, %v3961_v45, %v3960_v27  ;;  %v4063_v25 = vsel %vm1642_vm12, %v4062_v15, %v4061_v22  ;;  %v4163_v53 = vsel %vm1642_vm12, %v4162_v38, %v4161_v2  ;;  %v4263_v4 = vsel %vm1642_vm12, %v4262_v23, %v4261_v42  ;;  %v5853_v27 = vpop.permute.xlu0 %5852  ;;  %v12896_v38 = vld [vmem:[#allocation42_spill] sm:$0xff] }
 0x477   :  { %v8928_v55 = vpop.f32.mrb[71].mxu0  ;;  %v11736_v46 = vsel %vm1645_vm13, %v3963_v30, %v3962_v26  ;;  %v11739_v56 = vsel %vm1645_vm13, %v4064_v49, %v4063_v25  ;;  %v11742_v24 = vsel %vm1645_vm13, %v4164_v50, %v4163_v53  ;;  %v11745_v59 = vsel %vm1645_vm13, %v4264_v57, %v4263_v4  ;;  %v5720_v23 = vpop.permute.xlu1 %5719 }
 0x478   :  { %v5767_v42 = vsel %vm637_vm1, %v11700_v41, 0  ;;  %v5893_v45 = vsel %vm637_vm1, %v11697_v54, 0  ;;  %v6022_v44 = vsel %vm637_vm1, %v11721_v40, 0  ;;  %v5896_v53 = vsel %vm637_vm1, %v5853_v27, 0 }
 0x479   :  { %9180 = vmatpush3.bf16.xpose.msra.mxu0 %v5767_v42 }
 0x47a   :  { %v3488_v22 = vpop.f32.mrb[56].mxu1  ;;  %v5847_v15 = vpop.permute.xlu0 %5846  ;;  %9403 = vmatprep.subr.msk.bf16.mxu0 %vm637_vm1, %v11721_v40 }
 0x47b   :  { %v8935_v2 = vpop.f32.mrb[57].mxu1  ;;  %v4066_v1 = vrot.slane %v3488_v22, 1  ;;  %9174 = vmatmul.mubr.msk.bf16.vlgmr.msra.gmra.mrb[116].mxu1 %vm637_vm1, %v12896_v38  ;;  %v4166_v41 = vrot.slane %v3488_v22, 2  ;;  %v4266_v14 = vrot.slane %v3488_v22, 3  ;;  %v5982_v25 = vpop.permute.xlu1 %5981 }
 0x47c   :  { %v3491_v43 = vpop.f32.mrb[58].mxu1  ;;  %9186 = vmatpush3.bf16.xpose.msra.mxu1 %v5893_v45  ;;  %9189 = vmatprep.mubr.msk.bf16.mxu1 %vm637_vm1, %v5847_v15  ;;  %v3543_v21 = vpop.f32.mrb[72].mxu0  ;;  %v6025_v15 = vsel %vm637_vm1, %v5982_v25, 0 }
 0x47d   :  { %v8936_v33 = vpop.f32.mrb[59].mxu1  ;;  %9402 = vmatprep.subr.msk.bf16.mxu1 %vm637_vm1, %v5853_v27  ;;  %v3965_v7 = vrot.slane %v3543_v21, 7  ;;  %v4067_v10 = vsel %vm1627_vm7, %v3543_v21, %v4066_v1  ;;  %v4167_v54 = vrot.slane %v3543_v21, 1  ;;  %v4267_v0 = vrot.slane %v3543_v21, 2  ;;  %v8943_v30 = vpop.f32.mrb[73].mxu0 }
 0x47e   :  { %v3546_v49 = vpop.f32.mrb[74].mxu0  ;;  %v5976_v26 = vpop.permute.xlu0 %5975 }
 0x47f   :  { %v3966_v50 = vsel %vm1627_vm7, %v3965_v7, %v3488_v22  ;;  %v8944_v57 = vpop.f32.mrb[75].mxu0  ;;  %v4168_v52 = vsel %vm1627_vm7, %v4167_v54, %v4166_v41  ;;  %v4268_v5 = vsel %vm1627_vm7, %v4267_v0, %v4266_v14  ;;  %v5849_v38 = vpop.permute.xlu1 %5848 }
 0x480   :  { %9182 = vmatmul.mubr.msk.bf16.vlgmr.msra.gmra.mrb[132].mxu0 %vm637_vm1, %v5720_v23 }
 0x481   :  { %9194 = vmatpush3.bf16.xpose.msra.mxu0 %v6022_v44  ;;  %9197 = vmatprep.mubr.msk.bf16.mxu0 %vm637_vm1, %v5976_v26  ;;  %v9867_v44 = vld [vmem:[%s12765_s5 + $0x18] sm:$0xff]  }
 0x482   :  { %9404 = vmatprep.subr.msk.bf16.mxu0 %vm637_vm1, %v5982_v25  ;;  %v3598_v4 = vpop.f32.mrb[60].mxu1 }
 0x483   :  { %v3967_v55 = vrot.slane %v3598_v4, 6  ;;  %v4068_v22 = vrot.slane %v3598_v4, 7  ;;  %v4169_v2 = vsel %vm1630_vm8, %v3598_v4, %v4168_v52  ;;  %v4269_v42 = vrot.slane %v3598_v4, 1  ;;  %v8951_v43 = vpop.f32.mrb[61].mxu1  ;;  %v5978_v52 = vpop.permute.xlu1 %5977 }
 0x484   :  { %9188 = vmatpush3.bf16.xpose.msra.mxu1 %v5896_v53  ;;  %v3601_v40 = vpop.f32.mrb[62].mxu1  ;;  %v3653_v23 = vpop.f32.mrb[76].mxu0 }
 0x485   :  { %9201 = vmatprep.subr.bf16.mxu1 %v12840_v62  ;;  %v3968_v1 = vsel %vm1630_vm8, %v3967_v55, %v3966_v50  ;;  %v4069_v33 = vsel %vm1630_vm8, %v4068_v22, %v4067_v10  ;;  %v4270_v45 = vsel %vm1630_vm8, %v4269_v42, %v4268_v5  ;;  %v8952_v27 = vpop.f32.mrb[63].mxu1  ;;  %v3969_v41 = vrot.slane %v3653_v23, 5  ;;  %v8959_v54 = vpop.f32.mrb[77].mxu0  ;;  %v9866_v10 = vld [vmem:[%s12765_s5] sm:$0xff]   ;;  %v12897_v5 = vld [vmem:[#allocation28_spill] sm:$0xff] }
 0x486   :  { %v4070_v14 = vrot.slane %v3653_v23, 6  ;;  %v4170_v21 = vrot.slane %v3653_v23, 7  ;;  %v4271_v7 = vsel %vm1633_vm9, %v3653_v23, %v4270_v45  ;;  %v3656_v0 = vpop.f32.mrb[78].mxu0 }
 0x487   :  { %v3970_v30 = vsel %vm1633_vm9, %v3969_v41, %v3968_v1  ;;  %v8960_v57 = vpop.f32.mrb[79].mxu0 }
 0x488   :  { %v4071_v49 = vsel %vm1633_vm9, %v4070_v14, %v4069_v33  ;;  %v4171_v50 = vsel %vm1633_vm9, %v4170_v21, %v4169_v2 }
 0x489   :  { %9196 = vmatpush3.bf16.xpose.msra.mxu0 %v6025_v15 }
 0x48a   :  { %9217 = vmatprep.subr.bf16.mxu0 %v12840_v62 }
 0x48b   :  { %9190 = vmatmul.mubr.msk.bf16.vlgmr.msra.gmra.mrb[120].mxu1 %vm637_vm1, %v5849_v38 }
 0x48c   :  { %9202 = vmatpush3.bf16.msra.mxu1 %v9866_v10  ;;  %9205 = vmatprep.mubr.msk.bf16.mxu1 %vm9886_vm2, %v12840_v62 }
 0x48d   :  { %9203 = vmatprep.subr.bf16.mxu1 %v12840_v62  ;;  %v3708_v26 = vpop.f32.mrb[64].mxu1 }
 0x48e   :  { %v3971_v25 = vrot.slane %v3708_v26, 4  ;;  %v4072_v53 = vrot.slane %v3708_v26, 5  ;;  %v4172_v4 = vrot.slane %v3708_v26, 6  ;;  %v4272_v55 = vrot.slane %v3708_v26, 7  ;;  %v8967_v22 = vpop.f32.mrb[65].mxu1 }
 0x48f   :  { %v3711_v2 = vpop.f32.mrb[66].mxu1 }
 0x490   :  { %9204 = vmatpush3.bf16.msra.mxu1 %v12897_v5  ;;  %9198 = vmatmul.mubr.msk.bf16.vlgmr.msra.gmra.mrb[136].mxu0 %vm637_vm1, %v5978_v52  ;;  %v3763_v42 = vpop.f32.mrb[80].mxu0  ;;  %v8968_v45 = vpop.f32.mrb[67].mxu1  ;;  %v3972_v38 = vsel %vm1636_vm10, %v3971_v25, %v3970_v30  ;;  %v4073_v23 = vsel %vm1636_vm10, %v4072_v53, %v4071_v49  ;;  %v4173_v41 = vsel %vm1636_vm10, %v4172_v4, %v4171_v50 }
 0x491   :  { %9209 = vmatprep.subr.bf16.mxu1 %v12840_v62  ;;  %9218 = vmatpush3.bf16.msra.mxu0 %v9867_v44  ;;  %v3973_v43 = vrot.slane %v3763_v42, 3  ;;  %v4074_v40 = vrot.slane %v3763_v42, 4  ;;  %v4174_v1 = vrot.slane %v3763_v42, 5  ;;  %v4274_v33 = vrot.slane %v3763_v42, 6  ;;  %v8975_v27 = vpop.f32.mrb[81].mxu0 }
 0x492   :  { %9221 = vmatprep.mubr.msk.bf16.mxu0 %vm9886_vm2, %v12840_v62  ;;  %9219 = vmatprep.subr.bf16.mxu0 %v12840_v62  ;;  %v3766_v15 = vpop.f32.mrb[82].mxu0  ;;  %v4273_v14 = vsel %vm1636_vm10, %v4272_v55, %v4271_v7 }
 0x493   :  { %v3974_v21 = vsel %vm1639_vm11, %v3973_v43, %v3972_v38  ;;  %v4075_v54 = vsel %vm1639_vm11, %v4074_v40, %v4073_v23  ;;  %v4175_v0 = vsel %vm1639_vm11, %v4174_v1, %v4173_v41  ;;  %v4275_v10 = vsel %vm1639_vm11, %v4274_v33, %v4273_v14 }
 0x495   :  { %9220 = vmatpush3.bf16.msra.mxu0 %v10967_v63  ;;  %v8976_v63 = vpop.f32.mrb[83].mxu0  ;;  %v3818_v57 = vpop.f32.mrb[68].mxu1 }
 0x496   :  { %9233 = vmatprep.subr.bf16.mxu0 %v12840_v62  ;;  %v3975_v52 = vrot.slane %v3818_v57, 2  ;;  %v4076_v5 = vrot.slane %v3818_v57, 3  ;;  %v4176_v44 = vrot.slane %v3818_v57, 4  ;;  %v4276_v30 = vrot.slane %v3818_v57, 5  ;;  %v8983_v26 = vpop.f32.mrb[69].mxu1 }
 0x497   :  { %v3821_v25 = vpop.f32.mrb[70].mxu1 }
 0x498   :  { %v3873_v49 = vpop.f32.mrb[84].mxu0  ;;  %v8984_v22 = vpop.f32.mrb[71].mxu1  ;;  %v3976_v42 = vsel %vm1642_vm12, %v3975_v52, %v3974_v21  ;;  %v4077_v43 = vsel %vm1642_vm12, %v4076_v5, %v4075_v54  ;;  %v4177_v40 = vsel %vm1642_vm12, %v4176_v44, %v4175_v0  ;;  %v4277_v1 = vsel %vm1642_vm12, %v4276_v30, %v4275_v10 }
 0x499   :  { %v3977_v50 = vrot.slane %v3873_v49, 1  ;;  %v4078_v53 = vrot.slane %v3873_v49, 2  ;;  %v4178_v7 = vrot.slane %v3873_v49, 3  ;;  %v4278_v4 = vrot.slane %v3873_v49, 4  ;;  %v8991_v55 = vpop.f32.mrb[85].mxu0 }
 0x49a   :  { %v3876_v2 = vpop.f32.mrb[86].mxu0 }
 0x49b   :  { %v8992_v33 = vpop.f32.mrb[87].mxu0  ;;  %v3978_v45 = vsel %vm1645_vm13, %v3977_v50, %v3976_v42  ;;  %v4079_v27 = vsel %vm1645_vm13, %v4078_v53, %v4077_v43  ;;  %v4179_v15 = vsel %vm1645_vm13, %v4178_v7, %v4177_v40  ;;  %v4279_v38 = vsel %vm1645_vm13, %v4278_v4, %v4277_v1 }
 0x49e   :  { %v3928_v14 = vpop.f32.mrb[72].mxu1 }
 0x49f   :  { %v8999_v54 = vpop.f32.mrb[73].mxu1  ;;  %v4180_v44 = vrot.slane %v3928_v14, 2  ;;  %v4080_v26 = vrot.slane %v3928_v14, 1  ;;  %v4280_v1 = vrot.slane %v3928_v14, 3 }
 0x4a0   :  { %v9007_v23 = vpop.f32.mrb[88].mxu0  ;;  %v3931_v57 = vpop.f32.mrb[74].mxu1 }
 0x4a1   :  { %v4025_v41 = vpop.f32.mrb[89].mxu0  ;;  %v11817_v0 = vadd.f32 %v9007_v23, %v3928_v14  ;;  %v9000_v5 = vpop.f32.mrb[75].mxu1 }
 0x4a2   :  { %v11815_v63 = vadd.f32 %v4025_v41, %v11736_v46  ;;  %v9008_v21 = vpop.f32.mrb[90].mxu0 }
 0x4a3   :  { %12899 = vst [vmem:[#allocation6_spill] sm:$0xff] %v11817_v0  ;;  %v4028_v10 = vpop.f32.mrb[91].mxu0 }
 0x4a4   :  { %12898 = vst [vmem:[#allocation30_spill] sm:$0xff] %v11815_v63  ;;  %v11819_v52 = vadd.f32 %v4028_v10, %v3978_v45 }
 0x4a6   :  { %12900 = vst [vmem:[#allocation5_spill] sm:$0xff] %v11819_v52  ;;  %v9015_v50 = vpop.f32.mrb[76].mxu1 }
 0x4a7   :  { %v11826_v7 = vadd.f32 %v9015_v50, %v4080_v26  ;;  %v4127_v4 = vpop.f32.mrb[77].mxu1 }
 0x4a8   :  { %v9023_v30 = vpop.f32.mrb[92].mxu0  ;;  %v11829_v22 = vadd.f32 %v4127_v4, %v11739_v56  ;;  %v9016_v2 = vpop.f32.mrb[78].mxu1 }
 0x4a9   :  { %v11821_v49 = vadd.f32 %v9023_v30, %v4180_v44  ;;  %v4227_v25 = vpop.f32.mrb[93].mxu0  ;;  %12902 = vst [vmem:[#allocation8_spill] sm:$0xff] %v11826_v7  ;;  %v4130_v43 = vpop.f32.mrb[79].mxu1 }
 0x4aa   :  { %v11824_v53 = vadd.f32 %v4227_v25, %v11742_v24  ;;  %v9024_v46 = vpop.f32.mrb[94].mxu0  ;;  %v11833_v40 = vadd.f32 %v4130_v43, %v4079_v27 }
 0x4ab   :  { %12901 = vst [vmem:[#allocation31_spill] sm:$0xff] %v11821_v49  ;;  %v4230_v55 = vpop.f32.mrb[95].mxu0 }
 0x4ac   :  { %v11831_v42 = vadd.f32 %v4230_v55, %v4179_v15 }
 0x4ae   :  { %v9031_v33 = vpop.f32.mrb[80].mxu1 }
 0x4af   :  { %v11835_v45 = vadd.f32 %v9031_v33, %v4280_v1  ;;  %v4327_v24 = vpop.f32.mrb[81].mxu1 }
 0x4b0   :  { %v11838_v23 = vadd.f32 %v4327_v24, %v11745_v59  ;;  %v9032_v41 = vpop.f32.mrb[82].mxu1 }
 0x4b1   :  { %12903 = vst [vmem:[#allocation7_spill] sm:$0xff] %v11835_v45  ;;  %v4330_v21 = vpop.f32.mrb[83].mxu1 }
 0x4b2   :  { %12904 = vst [vmem:[#allocation32_spill] sm:$0xff] %v11838_v23  ;;  %v11840_v54 = vadd.f32 %v4330_v21, %v4279_v38 }
 0x4b4   :  { %12905 = vst [vmem:[#allocation10_spill] sm:$0xff] %v11840_v54 }
 0x4bd   :  { %v4847_v56 = vpop.f32.mrb[96].mxu0 }
 0x4be   :  { %v9039_v10 = vpop.f32.mrb[97].mxu0  ;;  %v5725_v5 = vrot.slane %v4847_v56, 1  ;;  %v5854_v44 = vrot.slane %v4847_v56, 2  ;;  %v5983_v27 = vrot.slane %v4847_v56, 3 }
 0x4bf   :  { %v4850_v57 = vpop.f32.mrb[98].mxu0 }
 0x4c0   :  { %v9040_v15 = vpop.f32.mrb[99].mxu0 }
 0x4c3   :  { %v4890_v30 = vpop.f32.mrb[84].mxu1 }
 0x4c4   :  { %v5595_v14 = vrot.slane %v4890_v30, 7  ;;  %v5726_v26 = vsel %vm1627_vm7, %v4890_v30, %v5725_v5  ;;  %v5855_v25 = vrot.slane %v4890_v30, 1  ;;  %v5984_v50 = vrot.slane %v4890_v30, 2  ;;  %v9047_v46 = vpop.f32.mrb[85].mxu1 }
 0x4c5   :  { %v4893_v59 = vpop.f32.mrb[86].mxu1 }
 0x4c6   :  { %v5596_v4 = vsel %vm1627_vm7, %v5595_v14, %v4847_v56  ;;  %v9048_v55 = vpop.f32.mrb[87].mxu1  ;;  %v5856_v38 = vsel %vm1627_vm7, %v5855_v25, %v5854_v44  ;;  %v5985_v2 = vsel %vm1627_vm7, %v5984_v50, %v5983_v27 }
 0x4cd   :  { %v4933_v43 = vpop.f32.mrb[100].mxu0 }
 0x4ce   :  { %v5597_v1 = vrot.slane %v4933_v43, 6  ;;  %v5727_v33 = vrot.slane %v4933_v43, 7  ;;  %v5857_v24 = vsel %vm1630_vm8, %v4933_v43, %v5856_v38  ;;  %v5986_v41 = vrot.slane %v4933_v43, 1  ;;  %v9055_v21 = vpop.f32.mrb[101].mxu0 }
 0x4cf   :  { %v4936_v10 = vpop.f32.mrb[102].mxu0 }
 0x4d0   :  { %v5598_v57 = vsel %vm1630_vm8, %v5597_v1, %v5596_v4  ;;  %v5728_v15 = vsel %vm1630_vm8, %v5727_v33, %v5726_v26  ;;  %v9056_v5 = vpop.f32.mrb[103].mxu0  ;;  %v5987_v56 = vsel %vm1630_vm8, %v5986_v41, %v5985_v2 }
 0x4d3   :  { %v4976_v30 = vpop.f32.mrb[88].mxu1 }
 0x4d4   :  { %v5599_v14 = vrot.slane %v4976_v30, 5  ;;  %v5729_v44 = vrot.slane %v4976_v30, 6  ;;  %v5858_v25 = vrot.slane %v4976_v30, 7  ;;  %v5988_v27 = vsel %vm1633_vm9, %v4976_v30, %v5987_v56  ;;  %v9063_v50 = vpop.f32.mrb[89].mxu1 }
 0x4d5   :  { %v4979_v46 = vpop.f32.mrb[90].mxu1 }
 0x4d6   :  { %v5600_v59 = vsel %vm1633_vm9, %v5599_v14, %v5598_v57  ;;  %v5730_v55 = vsel %vm1633_vm9, %v5729_v44, %v5728_v15  ;;  %v5859_v38 = vsel %vm1633_vm9, %v5858_v25, %v5857_v24  ;;  %v9064_v4 = vpop.f32.mrb[91].mxu1 }
 0x4dd   :  { %v5019_v43 = vpop.f32.mrb[104].mxu0 }
 0x4de   :  { %v5601_v26 = vrot.slane %v5019_v43, 4  ;;  %v5731_v1 = vrot.slane %v5019_v43, 5  ;;  %v5860_v33 = vrot.slane %v5019_v43, 6  ;;  %v5989_v2 = vrot.slane %v5019_v43, 7  ;;  %v9071_v41 = vpop.f32.mrb[105].mxu0 }
 0x4df   :  { %v5022_v21 = vpop.f32.mrb[106].mxu0 }
 0x4e0   :  { %v9072_v10 = vpop.f32.mrb[107].mxu0  ;;  %v5602_v5 = vsel %vm1636_vm10, %v5601_v26, %v5600_v59  ;;  %v5732_v56 = vsel %vm1636_vm10, %v5731_v1, %v5730_v55  ;;  %v5861_v30 = vsel %vm1636_vm10, %v5860_v33, %v5859_v38  ;;  %v5990_v57 = vsel %vm1636_vm10, %v5989_v2, %v5988_v27 }
 0x4e3   :  { %v5062_v15 = vpop.f32.mrb[92].mxu1 }
 0x4e4   :  { %v5603_v14 = vrot.slane %v5062_v15, 3  ;;  %v5733_v24 = vrot.slane %v5062_v15, 4  ;;  %v5862_v44 = vrot.slane %v5062_v15, 5  ;;  %v5991_v25 = vrot.slane %v5062_v15, 6  ;;  %v9079_v50 = vpop.f32.mrb[93].mxu1 }
 0x4e5   :  { %v5065_v46 = vpop.f32.mrb[94].mxu1 }
 0x4e6   :  { %v9080_v4 = vpop.f32.mrb[95].mxu1  ;;  %v5604_v43 = vsel %vm1639_vm11, %v5603_v14, %v5602_v5  ;;  %v5734_v41 = vsel %vm1639_vm11, %v5733_v24, %v5732_v56  ;;  %v5863_v59 = vsel %vm1639_vm11, %v5862_v44, %v5861_v30  ;;  %v5992_v55 = vsel %vm1639_vm11, %v5991_v25, %v5990_v57 }
 0x4ed   :  { %v5105_v26 = vpop.f32.mrb[108].mxu0 }
 0x4ee   :  { %v5605_v38 = vrot.slane %v5105_v26, 2  ;;  %v5735_v1 = vrot.slane %v5105_v26, 3  ;;  %v5864_v27 = vrot.slane %v5105_v26, 4  ;;  %v5993_v33 = vrot.slane %v5105_v26, 5  ;;  %v9087_v2 = vpop.f32.mrb[109].mxu0 }
 0x4ef   :  { %v5108_v21 = vpop.f32.mrb[110].mxu0 }
 0x4f0   :  { %v9088_v10 = vpop.f32.mrb[111].mxu0  ;;  %v5606_v15 = vsel %vm1642_vm12, %v5605_v38, %v5604_v43  ;;  %v5736_v50 = vsel %vm1642_vm12, %v5735_v1, %v5734_v41  ;;  %v5865_v5 = vsel %vm1642_vm12, %v5864_v27, %v5863_v59  ;;  %v5994_v56 = vsel %vm1642_vm12, %v5993_v33, %v5992_v55 }
 0x4f3   :  { %v5148_v14 = vpop.f32.mrb[96].mxu1 }
 0x4f4   :  { %v5607_v30 = vrot.slane %v5148_v14, 1  ;;  %v5737_v24 = vrot.slane %v5148_v14, 2  ;;  %v5866_v57 = vrot.slane %v5148_v14, 3  ;;  %v5995_v44 = vrot.slane %v5148_v14, 4  ;;  %v9095_v25 = vpop.f32.mrb[97].mxu1 }
 0x4f5   :  { %v5151_v46 = vpop.f32.mrb[98].mxu1 }
 0x4f6   :  { %v9096_v4 = vpop.f32.mrb[99].mxu1  ;;  %v11867_v26 = vsel %vm1645_vm13, %v5607_v30, %v5606_v15  ;;  %v11870_v2 = vsel %vm1645_vm13, %v5737_v24, %v5736_v50  ;;  %v11873_v43 = vsel %vm1645_vm13, %v5866_v57, %v5865_v5  ;;  %v11876_v41 = vsel %vm1645_vm13, %v5995_v44, %v5994_v56 }
 0x4fd   :  { %v5191_v59 = vpop.f32.mrb[112].mxu0 }
 0x4fe   :  { %v9103_v55 = vpop.f32.mrb[113].mxu0  ;;  %v5739_v27 = vrot.slane %v5191_v59, 1  ;;  %v5868_v33 = vrot.slane %v5191_v59, 2  ;;  %v5997_v21 = vrot.slane %v5191_v59, 3 }
 0x4ff   :  { %v5194_v38 = vpop.f32.mrb[114].mxu0 }
 0x500   :  { %v9104_v1 = vpop.f32.mrb[115].mxu0 }
 0x503   :  { %v5234_v10 = vpop.f32.mrb[100].mxu1 }
 0x504   :  { %v5609_v14 = vrot.slane %v5234_v10, 7  ;;  %v5740_v15 = vsel %vm1627_vm7, %v5234_v10, %v5739_v27  ;;  %v5869_v30 = vrot.slane %v5234_v10, 1  ;;  %v5998_v50 = vrot.slane %v5234_v10, 2  ;;  %v9111_v24 = vpop.f32.mrb[101].mxu1 }
 0x505   :  { %v5237_v25 = vpop.f32.mrb[102].mxu1 }
 0x506   :  { %v5610_v5 = vsel %vm1627_vm7, %v5609_v14, %v5191_v59  ;;  %v9112_v57 = vpop.f32.mrb[103].mxu1  ;;  %v5870_v56 = vsel %vm1627_vm7, %v5869_v30, %v5868_v33  ;;  %v5999_v44 = vsel %vm1627_vm7, %v5998_v50, %v5997_v21 }
 0x50d   :  { %v5277_v46 = vpop.f32.mrb[116].mxu0 }
 0x50e   :  { %v5611_v4 = vrot.slane %v5277_v46, 6  ;;  %v5741_v55 = vrot.slane %v5277_v46, 7  ;;  %v5871_v38 = vsel %vm1630_vm8, %v5277_v46, %v5870_v56  ;;  %v6000_v1 = vrot.slane %v5277_v46, 1  ;;  %v9119_v49 = vpop.f32.mrb[117].mxu0 }
 0x50f   :  { %v5280_v52 = vpop.f32.mrb[118].mxu0 }
 0x510   :  { %v5612_v27 = vsel %vm1630_vm8, %v5611_v4, %v5610_v5  ;;  %v5742_v10 = vsel %vm1630_vm8, %v5741_v55, %v5740_v15  ;;  %v9120_v24 = vpop.f32.mrb[119].mxu0  ;;  %v6001_v59 = vsel %vm1630_vm8, %v6000_v1, %v5999_v44 }
 0x513   :  { %v5320_v14 = vpop.f32.mrb[104].mxu1 }
 0x514   :  { %v5613_v25 = vrot.slane %v5320_v14, 5  ;;  %v5743_v33 = vrot.slane %v5320_v14, 6  ;;  %v5872_v30 = vrot.slane %v5320_v14, 7  ;;  %v6002_v21 = vsel %vm1633_vm9, %v5320_v14, %v6001_v59  ;;  %v9127_v50 = vpop.f32.mrb[105].mxu1 }
 0x515   :  { %v5323_v57 = vpop.f32.mrb[106].mxu1 }
 0x516   :  { %v5614_v56 = vsel %vm1633_vm9, %v5613_v25, %v5612_v27  ;;  %v5744_v49 = vsel %vm1633_vm9, %v5743_v33, %v5742_v10  ;;  %v5873_v52 = vsel %vm1633_vm9, %v5872_v30, %v5871_v38  ;;  %v9128_v5 = vpop.f32.mrb[107].mxu1 }
 0x51d   :  { %v5363_v46 = vpop.f32.mrb[120].mxu0 }
 0x51e   :  { %v5615_v15 = vrot.slane %v5363_v46, 4  ;;  %v5745_v4 = vrot.slane %v5363_v46, 5  ;;  %v5874_v55 = vrot.slane %v5363_v46, 6  ;;  %v6003_v44 = vrot.slane %v5363_v46, 7  ;;  %v9135_v1 = vpop.f32.mrb[121].mxu0 }
 0x51f   :  { %v5366_v24 = vpop.f32.mrb[122].mxu0 }
 0x520   :  { %v9136_v63 = vpop.f32.mrb[123].mxu0  ;;  %v5616_v0 = vsel %vm1636_vm10, %v5615_v15, %v5614_v56  ;;  %v5746_v59 = vsel %vm1636_vm10, %v5745_v4, %v5744_v49  ;;  %v5875_v14 = vsel %vm1636_vm10, %v5874_v55, %v5873_v52  ;;  %v6004_v27 = vsel %vm1636_vm10, %v6003_v44, %v6002_v21 }
 0x523   :  { %v5406_v10 = vpop.f32.mrb[108].mxu1 }
 0x524   :  { %v5617_v25 = vrot.slane %v5406_v10, 3  ;;  %v5747_v38 = vrot.slane %v5406_v10, 4  ;;  %v5876_v33 = vrot.slane %v5406_v10, 5  ;;  %v6005_v30 = vrot.slane %v5406_v10, 6  ;;  %v9143_v50 = vpop.f32.mrb[109].mxu1 }
 0x525   :  { %v5409_v57 = vpop.f32.mrb[110].mxu1 }
 0x526   :  { %v9144_v5 = vpop.f32.mrb[111].mxu1  ;;  %v5618_v46 = vsel %vm1639_vm11, %v5617_v25, %v5616_v0  ;;  %v5748_v63 = vsel %vm1639_vm11, %v5747_v38, %v5746_v59  ;;  %v5877_v56 = vsel %vm1639_vm11, %v5876_v33, %v5875_v14  ;;  %v6006_v49 = vsel %vm1639_vm11, %v6005_v30, %v6004_v27 }
 0x52d   :  { %v5449_v15 = vpop.f32.mrb[124].mxu0 }
 0x52e   :  { %v5619_v52 = vrot.slane %v5449_v15, 2  ;;  %v5749_v4 = vrot.slane %v5449_v15, 3  ;;  %v5878_v21 = vrot.slane %v5449_v15, 4  ;;  %v6007_v55 = vrot.slane %v5449_v15, 5  ;;  %v9151_v44 = vpop.f32.mrb[125].mxu0 }
 0x52f   :  { %v5452_v1 = vpop.f32.mrb[126].mxu0 }
 0x530   :  { %v9152_v24 = vpop.f32.mrb[127].mxu0  ;;  %v5620_v10 = vsel %vm1642_vm12, %v5619_v52, %v5618_v46  ;;  %v5750_v50 = vsel %vm1642_vm12, %v5749_v4, %v5748_v63  ;;  %v5879_v0 = vsel %vm1642_vm12, %v5878_v21, %v5877_v56  ;;  %v6008_v59 = vsel %vm1642_vm12, %v6007_v55, %v6006_v49 }
 0x53e   :  { %v5492_v25 = vpop.f32.mrb[112].mxu1 }
 0x53f   :  { %v5621_v14 = vrot.slane %v5492_v25, 1  ;;  %v5751_v38 = vrot.slane %v5492_v25, 2  ;;  %v5880_v27 = vrot.slane %v5492_v25, 3  ;;  %v6009_v33 = vrot.slane %v5492_v25, 4  ;;  %v9159_v30 = vpop.f32.mrb[113].mxu1 }
 0x540   :  { %v5495_v57 = vpop.f32.mrb[114].mxu1 }
 0x541   :  { %v9160_v5 = vpop.f32.mrb[115].mxu1  ;;  %v5622_v15 = vsel %vm1645_vm13, %v5621_v14, %v5620_v10  ;;  %v5752_v44 = vsel %vm1645_vm13, %v5751_v38, %v5750_v50  ;;  %v5881_v46 = vsel %vm1645_vm13, %v5880_v27, %v5879_v0  ;;  %v6010_v63 = vsel %vm1645_vm13, %v6009_v33, %v6008_v59 }
 0x542   :  { %v5535_v52 = vpop.f32.mrb[128].mxu0 }
 0x543   :  { %v9167_v56 = vpop.f32.mrb[129].mxu0  ;;  %v5753_v50 = vrot.slane %v5535_v52, 1 }
 0x544   :  { %v5538_v4 = vpop.f32.mrb[130].mxu0 }
 0x545   :  { %v9168_v49 = vpop.f32.mrb[131].mxu0 }
 0x54e   :  { %v9175_v21 = vpop.f32.mrb[116].mxu1 }
 0x54f   :  { %v11906_v55 = vadd.f32 %v9175_v21, %v5535_v52  ;;  %v5672_v1 = vpop.f32.mrb[117].mxu1 }
 0x550   :  { %v11909_v24 = vadd.f32 %v5672_v1, %v11867_v26  ;;  %v9176_v25 = vpop.f32.mrb[118].mxu1 }
 0x551   :  { %v5675_v30 = vpop.f32.mrb[119].mxu1 }
 0x552   :  { %v11911_v10 = vadd.f32 %v5675_v30, %v5622_v15  ;;  %v5686_v5 = vsel %vm1724_vm14, %v11909_v24, -inf  ;;  %v5882_v15 = vrot.slane %v5535_v52, 2  ;;  %v6011_v30 = vrot.slane %v5535_v52, 3 }
 0x553   :  { %v9183_v14 = vpop.f32.mrb[132].mxu0 }
 0x554   :  { %v11913_v0 = vadd.f32 %v9183_v14, %v5753_v50  ;;  %v5803_v59 = vpop.f32.mrb[133].mxu0  ;;  %v5689_v52 = vsel %vm1724_vm14, %v11911_v10, -inf }
 0x555   :  { %v11916_v38 = vadd.f32 %v5803_v59, %v11870_v2  ;;  %v9184_v27 = vpop.f32.mrb[134].mxu0 }
 0x556   :  { %v5806_v33 = vpop.f32.mrb[135].mxu0 }
 0x557   :  { %v11918_v57 = vadd.f32 %v5806_v33, %v5752_v44  ;;  %v5817_v26 = vsel %vm1724_vm14, %v11916_v38, -inf }
 0x558   :  { %5818 = vmax.xlane.f32.xlu0 %v5817_v26 }
 0x559   :  { %v5820_v27 = vsel %vm1724_vm14, %v11918_v57, -inf }
 0x55c   :  { %5687 = vmax.xlane.f32.xlu0 %v5686_v5 }
 0x55e   :  { %v9191_v56 = vpop.f32.mrb[120].mxu1 }
 0x55f   :  { %v11924_v4 = vadd.f32 %v9191_v56, %v5882_v15  ;;  %v5932_v49 = vpop.f32.mrb[121].mxu1  ;;  %v5692_v56 = vsel %vm1731_vm15, %v11906_v55, -inf }
 0x560   :  { %v11927_v2 = vadd.f32 %v5932_v49, %v11873_v43  ;;  %v9192_v21 = vpop.f32.mrb[122].mxu1 }
 0x561   :  { %v5935_v1 = vpop.f32.mrb[123].mxu1  ;;  %v5952_v49 = vsel %vm1731_vm15, %v11924_v4, -inf }
 0x562   :  { %v11929_v44 = vadd.f32 %v5935_v1, %v5881_v46  ;;  %v5946_v25 = vsel %vm1724_vm14, %v11927_v2, -inf  ;;  %v12906_v1 = vld [vmem:[#allocation4_spill] sm:$0xff] }
 0x563   :  { %5947 = vmax.xlane.f32.xlu1 %v5946_v25  ;;  %v9199_v50 = vpop.f32.mrb[136].mxu0  ;;  %v12907_v25 = vld [vmem:[#allocation3_spill] sm:$0xff] }
 0x564   :  { %v11933_v14 = vadd.f32 %v9199_v50, %v6011_v30  ;;  %v6061_v59 = vpop.f32.mrb[137].mxu0  ;;  %v5949_v15 = vsel %vm1724_vm14, %v11929_v44, -inf  ;;  %v11965_v30 = vshrl.u32 %v12907_v25, 16  ;;  %v1877_v50 = vsel %vm1724_vm14, %v10938_v60, 0.0 }
 0x565   :  { %v11938_v33 = vadd.f32 %v6061_v59, %v11876_v41  ;;  %v9200_v43 = vpop.f32.mrb[138].mxu0  ;;  %v5823_v41 = vsel %vm1731_vm15, %v11913_v0, -inf  ;;  %v1880_v59 = vsel %vm1724_vm14, %v11017_v17, 0.0  ;;  %v1883_v60 = vsel %vm1731_vm15, %v11387_v35, 0.0 }
 0x566   :  { %v6064_v26 = vpop.f32.mrb[139].mxu0  ;;  %v6081_v21 = vsel %vm1731_vm15, %v11933_v14, -inf  ;;  %v2135_v43 = vsel %vm1724_vm14, %v10978_v18, 0.0  ;;  %v2138_v17 = vsel %vm1724_vm14, %v11120_v19, 0.0 }
 0x567   :  { %5821 = vmax.xlane.f32.xlu1 %v5820_v27  ;;  %v11940_v46 = vadd.f32 %v6064_v26, %v6010_v63  ;;  %v6075_v5 = vsel %vm1724_vm14, %v11938_v33, -inf  ;;  %v2006_v27 = vsel %vm1724_vm14, %v10943_v13, 0.0  ;;  %v2009_v26 = vsel %vm1724_vm14, %v11110_v3, 0.0 }
 0x568   :  { %6076 = vmax.xlane.f32.xlu0 %v6075_v5  ;;  %v2012_v13 = vsel %vm1731_vm15, %v11405_v61, 0.0 }
 0x569   :  { %v6078_v63 = vsel %vm1724_vm14, %v11940_v46, -inf }
 0x56b   :  { %5690 = vmax.xlane.f32.xlu1 %v5689_v52 }
 0x56c   :  { %5950 = vmax.xlane.f32.xlu0 %v5949_v15 }
 0x56f   :  { %5824 = vmax.xlane.f32.xlu1 %v5823_v41 }
 0x570   :  { %6079 = vmax.xlane.f32.xlu0 %v6078_v63 }
 0x573   :  { %5693 = vmax.xlane.f32.xlu1 %v5692_v56 }
 0x574   :  { %5953 = vmax.xlane.f32.xlu0 %v5952_v49 }
 0x578   :  { %6082 = vmax.xlane.f32.xlu0 %v6081_v21 }
 0x584   :  { %7761 = vrot.lane.b32.xlu1 %v12906_v1, %s9888_s30 }
 0x588   :  { %7861 = vrot.lane.b32.xlu1 %v12906_v1, %s9889_s7 }
 0x58c   :  { %7961 = vrot.lane.b32.xlu1 %v12906_v1, %s9887_s29 }
 0x58e   :  { %7763 = vrot.lane.b32.xlu0 %v11965_v30, %s9888_s30 }
 0x590   :  { %7963 = vrot.lane.b32.xlu1 %v11965_v30, %s9887_s29 }
 0x592   :  { %7863 = vrot.lane.b32.xlu0 %v11965_v30, %s9889_s7 }
 0x5b1   :  { %1878 = vadd.xlane.f32.xlu0 %v1877_v50 }
 0x5b4   :  { %1881 = vadd.xlane.f32.xlu1 %v1880_v59 }
 0x5b5   :  { %2007 = vadd.xlane.f32.xlu0 %v2006_v27 }
 0x5b8   :  { %2136 = vadd.xlane.f32.xlu1 %v2135_v43 }
 0x5b9   :  { %2010 = vadd.xlane.f32.xlu0 %v2009_v26 }
 0x5bc   :  { %1884 = vadd.xlane.f32.xlu1 %v1883_v60 }
 0x5bd   :  { %2139 = vadd.xlane.f32.xlu0 %v2138_v17 }
 0x5c1   :  { %2013 = vadd.xlane.f32.xlu0 %v2012_v13 }
 0x5e5   :  { %v5819_v5 = vpop.xlane.xlu0 %5818 }
 0x5e6   :  { %v5826_v18 = vsub.f32 %v11916_v38, %v5819_v5 }
 0x5e8   :  { %v5829_v52 = vmul.f32 1.442695, %v5826_v18 }
 0x5e9   :  { %v5688_v15 = vpop.xlane.xlu0 %5687 }
 0x5ea   :  { %9794 = vpow2.f32 %v5829_v52  ;;  %v5695_v3 = vsub.f32 %v11909_v24, %v5688_v15 }
 0x5ec   :  { %v5698_v41 = vmul.f32 1.442695, %v5695_v3 }
 0x5ee   :  { %9796 = vpow2.f32 %v5698_v41 }
 0x5f0   :  { %v5948_v35 = vpop.xlane.xlu1 %5947 }
 0x5f1   :  { %v5955_v63 = vsub.f32 %v11927_v2, %v5948_v35 }
 0x5f3   :  { %v5958_v56 = vmul.f32 1.442695, %v5955_v63 }
 0x5f4   :  { %v5822_v19 = vpop.xlane.xlu1 %5821  ;;  %v11992_v49 = vpop.eup %9794 }
 0x5f5   :  { %9798 = vpow2.f32 %v5958_v56  ;;  %v5827_v61 = vsub.f32 %v11918_v57, %v5822_v19  ;;  %v6077_v21 = vpop.xlane.xlu0 %6076  ;;  %v5835_v38 = vsel %vm1724_vm14, %v11992_v49, 0.0  ;;  %v6246_v25 = vrot.slane %v11992_v49, %v10000_v29 }
 0x5f6   :  { %v6084_v50 = vsub.f32 %v11938_v33, %v6077_v21  ;;  %5836 = vadd.xlane.f32.xlu1 %v5835_v38  ;;  %v6239_v5 = vcombine.high %v11992_v49, %v11992_v49 }
 0x5f7   :  { %v5831_v24 = vmul.f32 1.442695, %v5827_v61  ;;  %v6262_v2 = vrot.slane %v6246_v25, %v10000_v29  ;;  %v6254_v27 = vcombine.high %v6246_v25, %v6246_v25 }
 0x5f8   :  { %v5691_v59 = vpop.xlane.xlu1 %5690  ;;  %v12001_v43 = vpop.eup %9796  ;;  %v6087_v26 = vmul.f32 1.442695, %v6084_v50 }
 0x5f9   :  { %9800 = vpow2.f32 %v5831_v24  ;;  %v5696_v57 = vsub.f32 %v11911_v10, %v5691_v59  ;;  %v5951_v60 = vpop.xlane.xlu0 %5950  ;;  %v6114_v17 = vrot.slane %v12001_v43, %v10000_v29  ;;  %v6284_v13 = vcombine.high %v6262_v2, %v6262_v2 }
 0x5fa   :  { %9802 = vpow2.f32 %v6087_v26  ;;  %v5956_v33 = vsub.f32 %v11929_v44, %v5951_v60  ;;  %v12010_v18 = vrot.slane %v6254_v27, %v10000_v29  ;;  %v6107_v52 = vcombine.high %v12001_v43, %v12001_v43 }
 0x5fb   :  { %v5700_v15 = vmul.f32 1.442695, %v5696_v57  ;;  %v6130_v3 = vrot.slane %v6114_v17, %v10000_v29  ;;  %v6122_v63 = vcombine.high %v6114_v17, %v6114_v17  ;;  %v6584_v19 = vrot.slane %v6262_v2, %v10009_v39 }
 0x5fc   :  { %v5825_v10 = vpop.xlane.xlu1 %5824  ;;  %v5960_v35 = vmul.f32 1.442695, %v5956_v33  ;;  %v6592_v61 = vrot.slane %v6284_v13, %v10009_v39  ;;  %v12019_v44 = vrot.slane %v6239_v5, %v10000_v29  ;;  %v6588_v25 = vrot.slane %v12010_v18, %v10009_v39 }
 0x5fd   :  { %v5828_v41 = vsub.f32 %v11913_v0, %v5825_v10  ;;  %v6080_v56 = vpop.xlane.xlu0 %6079  ;;  %v12027_v0 = vrot.slane %v6107_v52, %v10000_v29  ;;  %v6152_v59 = vcombine.high %v6130_v3, %v6130_v3  ;;  %v12034_v57 = vrot.slane %v6122_v63, %v10000_v29 }
 0x5fe   :  { %9804 = vpow2.f32 %v5960_v35  ;;  %v6085_v38 = vsub.f32 %v11940_v46, %v6080_v56  ;;  %v6836_v17 = vsel %vm507_vm4, %v6130_v3, %v6584_v19  ;;  %v12042_v5 = vrot.slane %v12019_v44, %v10000_v29 }
 0x5ff   :  { %v12021_v21 = vpop.eup %9798  ;;  %9806 = vpow2.f32 %v5700_v15  ;;  %v5833_v2 = vmul.f32 1.442695, %v5828_v41  ;;  %v12051_v10 = vrot.slane %v12027_v0, %v10000_v29 }
 0x600   :  { %v5964_v24 = vsel %vm1724_vm14, %v12021_v21, 0.0  ;;  %v6361_v50 = vrot.slane %v12021_v21, %v10000_v29  ;;  %v6089_v27 = vmul.f32 1.442695, %v6085_v38  ;;  %v6354_v46 = vcombine.high %v12021_v21, %v12021_v21  ;;  %v12046_v52 = vpop.xlane.xlu1 %5693 }
 0x601   :  { %5965 = vadd.xlane.f32.xlu1 %v5964_v24  ;;  %v5954_v26 = vpop.xlane.xlu0 %5953  ;;  %v6838_v38 = vsel %vm507_vm4, %v6152_v59, %v6592_v61  ;;  %v6837_v24 = vsel %vm507_vm4, %v12034_v57, %v6588_v25 }
 0x602   :  { %v6377_v60 = vrot.slane %v6361_v50, %v10000_v29  ;;  %v6369_v13 = vcombine.high %v6361_v50, %v6361_v50  ;;  %9808 = vpow2.f32 %v6089_v27  ;;  %v5957_v15 = vsub.f32 %v11924_v4, %v5954_v26 }
 0x603   :  { %v12044_v33 = vpop.eup %9800  ;;  %v12054_v41 = vrot.slane %v6354_v46, %v10000_v29  ;;  %9810 = vpow2.f32 %v5833_v2  ;;  %v5697_v50 = vsub.f32 %v11906_v55, %v12046_v52 }
 0x604   :  { %v5838_v3 = vsel %vm1724_vm14, %v12044_v33, 0.0  ;;  %v6669_v35 = vrot.slane %v6377_v60, %v10009_v39  ;;  %v6399_v63 = vcombine.high %v6377_v60, %v6377_v60  ;;  %v6391_v56 = vrot.slane %v6369_v13, %v10000_v29  ;;  %v12060_v19 = vpop.eup %9802 }
 0x605   :  { %5839 = vadd.xlane.f32.xlu0 %v5838_v3  ;;  %v5962_v4 = vmul.f32 1.442695, %v5957_v15  ;;  %v6083_v27 = vpop.xlane.xlu0 %6082  ;;  %v6476_v46 = vrot.slane %v12060_v19, %v10000_v29  ;;  %v6600_v60 = vrot.slane %v12042_v5, %v10009_v39  ;;  %v12076_v61 = vrot.slane %v12054_v41, %v10000_v29 }
 0x606   :  { %v6677_v26 = vrot.slane %v6399_v63, %v10009_v39  ;;  %v6086_v2 = vsub.f32 %v11933_v14, %v6083_v27  ;;  %v6673_v13 = vrot.slane %v6391_v56, %v10009_v39  ;;  %v6469_v55 = vcombine.high %v12060_v19, %v12060_v19 }
 0x607   :  { %v6492_v25 = vrot.slane %v6476_v46, %v10000_v29  ;;  %v6853_v59 = vsel %vm525_vm5, %v6836_v17, %v6669_v35  ;;  %v6484_v52 = vcombine.high %v6476_v46, %v6476_v46  ;;  %v6840_v15 = vsel %vm507_vm4, %v12051_v10, %v6600_v60 }
 0x608   :  { %v12084_v3 = vpop.eup %9804  ;;  %9812 = vpow2.f32 %v5962_v4  ;;  %v6091_v14 = vmul.f32 1.442695, %v6086_v2  ;;  %v6855_v63 = vsel %vm525_vm5, %v6838_v38, %v6677_v26  ;;  %v12088_v27 = vrot.slane %v6469_v55, %v10000_v29 }
 0x609   :  { %v12090_v45 = vpop.eup %9806  ;;  %v5967_v7 = vsel %vm1724_vm14, %v12084_v3, 0.0  ;;  %v6754_v17 = vrot.slane %v6492_v25, %v10009_v39  ;;  %v6514_v35 = vcombine.high %v6492_v25, %v6492_v25  ;;  %v6506_v46 = vrot.slane %v6484_v52, %v10000_v29 }
 0x60a   :  { %9814 = vpow2.f32 %v6091_v14  ;;  %5968 = vadd.xlane.f32.xlu0 %v5967_v7  ;;  %v6854_v4 = vsel %vm525_vm5, %v6837_v24, %v6673_v13  ;;  %v6499_v38 = vrot.slane %v12088_v27, %v10000_v29  ;;  %v6685_v26 = vrot.slane %v12076_v61, %v10009_v39 }
 0x60b   :  { %v6870_v60 = vsel %vm543_vm6, %v6853_v59, %v6754_v17  ;;  %v6762_v2 = vrot.slane %v6514_v35, %v10009_v39  ;;  %v6758_v55 = vrot.slane %v6506_v46, %v10009_v39  ;;  %v6286_v25 = vcombine.high %v12010_v18, %v12010_v18 }
 0x60c   :  { %v12106_v52 = vpop.eup %9808  ;;  %v6887_v7 = vpack.c.bf16 %v6870_v60, %v6870_v60  ;;  %v6770_v24 = vrot.slane %v6499_v38, %v10009_v39  ;;  %v6401_v13 = vcombine.high %v6391_v56, %v6391_v56  ;;  %v6516_v14 = vcombine.high %v6506_v46, %v6506_v46  ;;  %v9868_v46 = vld [vmem:[%s12765_s5 + $0xc] sm:$0xff]  }
 0x60d   :  { %v6093_v54 = vsel %vm1724_vm14, %v12060_v19, 0.0  ;;  %v6096_v59 = vsel %vm1724_vm14, %v12106_v52, 0.0  ;;  %v6872_v17 = vsel %vm543_vm6, %v6855_v63, %v6762_v2  ;;  %v6871_v35 = vsel %vm543_vm6, %v6854_v4, %v6758_v55  ;;  %v12115_v23 = vpop.eup %9810 }
 0x60e   :  { %9206 = vmatmul.mubr.msk.bf16.vlgmr.msra.gmra.mrb[124].mxu1 %vm1724_vm14, %v6887_v7  ;;  %6094 = vadd.xlane.f32.xlu0 %v6093_v54  ;;  %v6889_v18 = vpack.c.bf16 %v6872_v17, %v6872_v17  ;;  %v6857_v60 = vsel %vm525_vm5, %v6840_v15, %v6685_v26  ;;  %v6154_v56 = vcombine.high %v12034_v57, %v12034_v57  ;;  %v5702_v2 = vmul.f32 1.442695, %v5697_v50  ;;  %v9869_v26 = vld [vmem:[%s12765_s5 + $0x30] sm:$0xff]  }
 0x60f   :  { %9210 = vmatpush3.bf16.msra.mxu1 %v9868_v46  ;;  %6097 = vadd.xlane.f32.xlu1 %v6096_v59  ;;  %v6874_v63 = vsel %vm543_vm6, %v6857_v60, %v6770_v24  ;;  %v6681_v4 = vrot.slane %v6401_v13, %v10009_v39  ;;  %v6888_v54 = vpack.c.bf16 %v6871_v35, %v6871_v35  ;;  %v5841_v55 = vsel %vm1731_vm15, %v12115_v23, 0.0  ;;  %v12908_v35 = vld [vmem:[#allocation29_spill] sm:$0xff] }
 0x610   :  { %9222 = vmatmul.mubr.msk.bf16.vlgmr.msra.gmra.mrb[140].mxu0 %vm1724_vm14, %v6889_v18  ;;  %9211 = vmatprep.subr.bf16.mxu1 %v12840_v62  ;;  %v6596_v15 = vrot.slane %v6286_v25, %v10009_v39  ;;  %v6766_v57 = vrot.slane %v6516_v14, %v10009_v39  ;;  %v6891_v50 = vpack.c.bf16 %v6874_v63, %v6874_v63  ;;  %v2141_v13 = vsel %vm1731_vm15, %v11411_v31, 0.0 }
 0x611   :  { %9234 = vmatpush3.bf16.msra.mxu0 %v9869_v26  ;;  %9213 = vmatprep.mubr.msk.bf16.mxu1 %vm9886_vm2, %v12840_v62  ;;  %v6153_v7 = vcombine.high %v12051_v10, %v12051_v10  ;;  %v6285_v25 = vcombine.high %v12042_v5, %v12042_v5  ;;  %v6400_v59 = vcombine.high %v12076_v61, %v12076_v61  ;;  %9816 = vpow2.f32 %v5702_v2 }
 0x612   :  { %v12141_v24 = vpop.eup %9812  ;;  %5842 = vadd.xlane.f32.xlu0 %v5841_v55  ;;  %9235 = vmatprep.subr.bf16.mxu0 %v12840_v62  ;;  %v6839_v14 = vsel %vm507_vm4, %v6154_v56, %v6596_v15  ;;  %v6515_v17 = vcombine.high %v6499_v38, %v6499_v38  ;;  %v6123_v18 = vcombine.high %v12027_v0, %v12027_v0  ;;  %v9870_v15 = vld [vmem:[%s12765_s5 + $0x24] sm:$0xff]  }
 0x613   :  { %9212 = vmatpush3.bf16.msra.mxu1 %v12908_v35  ;;  %2142 = vadd.xlane.f32.xlu1 %v2141_v13  ;;  %v6856_v10 = vsel %vm525_vm5, %v6839_v14, %v6681_v4  ;;  %v6608_v5 = vrot.slane %v6285_v25, %v10009_v39  ;;  %v6693_v31 = vrot.slane %v6400_v59, %v10009_v39  ;;  %v5970_v4 = vsel %vm1731_vm15, %v12141_v24, 0.0 }
 0x614   :  { %v12154_v60 = vpop.eup %9814  ;;  %9225 = vmatprep.subr.bf16.mxu1 %v12840_v62  ;;  %9237 = vmatprep.mubr.msk.bf16.mxu0 %vm9886_vm2, %v12840_v62  ;;  %v6778_v61 = vrot.slane %v6515_v17, %v10009_v39  ;;  %v6255_v38 = vcombine.high %v12019_v44, %v12019_v44  ;;  %v6873_v56 = vsel %vm543_vm6, %v6856_v10, %v6766_v57  ;;  %v1747_v25 = vsel %vm1724_vm14, %v11142_v28, 0.0 }
 0x615   :  { %9236 = vmatpush3.bf16.msra.mxu0 %v11090_v36  ;;  %v6099_v0 = vsel %vm1731_vm15, %v12154_v60, 0.0  ;;  %v6842_v46 = vsel %vm507_vm4, %v6153_v7, %v6608_v5  ;;  %v6370_v63 = vcombine.high %v12054_v41, %v12054_v41  ;;  %v12174_v44 = vrot.slane %v6123_v18, %v10000_v29  ;;  %v9871_v7 = vld [vmem:[%s12765_s5 + $0x48] sm:$0xff]  }
 0x616   :  { %9214 = vmatmul.mubr.msk.bf16.vlgmr.msra.gmra.mrb[128].mxu1 %vm1724_vm14, %v6888_v54  ;;  %6100 = vadd.xlane.f32.xlu0 %v6099_v0  ;;  %v12177_v36 = vrot.slane %v6255_v38, %v10000_v29  ;;  %v6485_v2 = vcombine.high %v12088_v27, %v12088_v27  ;;  %v6859_v41 = vsel %vm525_vm5, %v6842_v46, %v6693_v31  ;;  %v1744_v59 = vsel %vm1724_vm14, %v10954_v37, 0.0 }
 0x617   :  { %9226 = vmatpush3.bf16.msra.mxu1 %v9870_v15  ;;  %5971 = vadd.xlane.f32.xlu1 %v5970_v4  ;;  %v6398_v54 = vrot.slane %v6370_v63, %v10000_v29  ;;  %v12188_v57 = vrot.slane %v12090_v45, %v10000_v29  ;;  %v6890_v26 = vpack.c.bf16 %v6873_v56, %v6873_v56  ;;  %v9872_v15 = vld [vmem:[%s12765_s5 + $0x3c] sm:$0xff]  }
 0x618   :  { %9249 = vmatprep.subr.bf16.mxu0 %v12840_v62  ;;  %9238 = vmatmul.mubr.msk.bf16.vlgmr.msra.gmra.mrb[144].mxu0 %vm1724_vm14, %v6891_v50  ;;  %v6876_v27 = vsel %vm543_vm6, %v6859_v41, %v6778_v61  ;;  %v6513_v55 = vrot.slane %v6485_v2, %v10000_v29  ;;  %v6604_v13 = vrot.slane %v12177_v36, %v10009_v39  ;;  %v5707_v61 = vsel %vm1724_vm14, %v12090_v45, 0.0 }
 0x619   :  { %9250 = vmatpush3.bf16.msra.mxu0 %v9871_v7  ;;  %9227 = vmatprep.subr.bf16.mxu1 %v12840_v62  ;;  %v6689_v50 = vrot.slane %v6398_v54, %v10009_v39  ;;  %v12205_v14 = vrot.slane %v12044_v33, %v10000_v29  ;;  %v12213_v28 = vrot.slane %v12188_v57, %v10000_v29 }
 0x61a   :  { %1748 = vadd.xlane.f32.xlu0 %v1747_v25  ;;  %9251 = vmatprep.subr.bf16.mxu0 %v12840_v62  ;;  %v6774_v17 = vrot.slane %v6513_v55, %v10009_v39  ;;  %v12217_v35 = vrot.slane %v12084_v3, %v10000_v29  ;;  %v6841_v10 = vsel %vm507_vm4, %v12174_v44, %v6604_v13  ;;  %v9873_v25 = vld [vmem:[%s12765_s5 + $0x60] sm:$0xff]  }
 0x61b   :  { %9228 = vmatpush3.bf16.msra.mxu1 %v10971_v32  ;;  %1745 = vadd.xlane.f32.xlu1 %v1744_v59  ;;  %v6311_v37 = vrot.slane %v12205_v14, %v10000_v29  ;;  %v12226_v5 = vrot.slane %v12106_v52, %v10000_v29  ;;  %v6893_v18 = vpack.c.bf16 %v6876_v27, %v6876_v27  ;;  %v12243_v46 = vpop.eup %9816 }
 0x61c   :  { %9229 = vmatprep.mubr.msk.bf16.mxu1 %vm9886_vm2, %v12840_v62  ;;  %9241 = vmatprep.subr.bf16.mxu1 %v12840_v62  ;;  %v6858_v31 = vsel %vm525_vm5, %v6841_v10, %v6689_v50  ;;  %v6426_v32 = vrot.slane %v12217_v35, %v10000_v29  ;;  %v6287_v4 = vcombine.high %v12177_v36, %v12177_v36 }
 0x61d   :  { %9252 = vmatpush3.bf16.msra.mxu0 %v11136_v34  ;;  %9253 = vmatprep.mubr.msk.bf16.mxu0 %vm9886_vm2, %v12840_v62  ;;  %v6875_v38 = vsel %vm543_vm6, %v6858_v31, %v6774_v17  ;;  %v6541_v0 = vrot.slane %v12226_v5, %v10000_v29  ;;  %v6616_v56 = vrot.slane %v6311_v37, %v10009_v39  ;;  %v5704_v34 = vsel %vm1724_vm14, %v12001_v43, 0.0 }
 0x61e   :  { %9230 = vmatmul.mubr.msk.bf16.vlgmr.msra.gmra.mrb[132].mxu1 %vm1724_vm14, %v6890_v26  ;;  %5708 = vadd.xlane.f32.xlu0 %v5707_v61  ;;  %v6701_v63 = vrot.slane %v6426_v32, %v10009_v39  ;;  %v6402_v2 = vcombine.high %v6398_v54, %v6398_v54  ;;  %v6517_v27 = vcombine.high %v6513_v55, %v6513_v55  ;;  %v5710_v55 = vsel %vm1731_vm15, %v12243_v46, 0.0 }
 0x61f   :  { %9242 = vmatpush3.bf16.msra.mxu1 %v9872_v15  ;;  %5705 = vadd.xlane.f32.xlu1 %v5704_v34  ;;  %v6786_v41 = vrot.slane %v6541_v0, %v10009_v39  ;;  %v6844_v26 = vsel %vm507_vm4, %v12213_v28, %v6616_v56  ;;  %v6892_v7 = vpack.c.bf16 %v6875_v38, %v6875_v38  ;;  %v1750_v17 = vsel %vm1731_vm15, %v11396_v6, 0.0 }
 0x620   :  { %9265 = vmatprep.subr.bf16.mxu0 %v12840_v62  ;;  %9254 = vmatmul.mubr.msk.bf16.vlgmr.msra.gmra.mrb[148].mxu0 %vm1724_vm14, %v6893_v18  ;;  %v6861_v36 = vsel %vm525_vm5, %v6844_v26, %v6701_v63  ;;  %v6155_v54 = vcombine.high %v12174_v44, %v12174_v44  ;;  %v6612_v50 = vrot.slane %v6287_v4, %v10009_v39  ;;  %v9875_v26 = vld [vmem:[%s12765_s5 + $0x78] sm:$0xff]  }
 0x621   :  { %9266 = vmatpush3.bf16.msra.mxu0 %v9873_v25  ;;  %9243 = vmatprep.subr.bf16.mxu1 %v12840_v62  ;;  %v6878_v13 = vsel %vm543_vm6, %v6861_v36, %v6786_v41  ;;  %v6697_v59 = vrot.slane %v6402_v2, %v10009_v39  ;;  %v6782_v44 = vrot.slane %v6517_v27, %v10009_v39 }
 0x622   :  { %5711 = vadd.xlane.f32.xlu0 %v5710_v55  ;;  %9267 = vmatprep.subr.bf16.mxu0 %v12840_v62  ;;  %v6201_v10 = vcombine.high %v12213_v28, %v12213_v28  ;;  %v6333_v18 = vcombine.high %v6311_v37, %v6311_v37  ;;  %v6895_v31 = vpack.c.bf16 %v6878_v13, %v6878_v13 }
 0x623   :  { %9244 = vmatpush3.bf16.msra.mxu1 %v11113_v11  ;;  %1751 = vadd.xlane.f32.xlu1 %v1750_v17  ;;  %v6448_v61 = vcombine.high %v6426_v32, %v6426_v32  ;;  %v6563_v38 = vcombine.high %v6541_v0, %v6541_v0  ;;  %v6843_v6 = vsel %vm507_vm4, %v6155_v54, %v6612_v50 }
 0x624   :  { %9245 = vmatprep.mubr.msk.bf16.mxu1 %vm9886_vm2, %v12840_v62  ;;  %9257 = vmatprep.subr.bf16.mxu1 %v12840_v62  ;;  %v6624_v56 = vrot.slane %v6333_v18, %v10009_v39  ;;  %v6171_v34 = vcombine.high %v12188_v57, %v12188_v57  ;;  %v6860_v11 = vsel %vm525_vm5, %v6843_v6, %v6697_v59  ;;  %v9874_v57 = vld [vmem:[%s12765_s5 + $0x54] sm:$0xff]  }
 0x625   :  { %9268 = vmatpush3.bf16.msra.mxu0 %v11221_v8  ;;  %9269 = vmatprep.mubr.msk.bf16.mxu0 %vm9886_vm2, %v12840_v62  ;;  %v6709_v28 = vrot.slane %v6448_v61, %v10009_v39  ;;  %v6794_v37 = vrot.slane %v6563_v38, %v10009_v39  ;;  %v6877_v32 = vsel %vm543_vm6, %v6860_v11, %v6782_v44  ;;  %v9876_v11 = vld [vmem:[%s12765_s5 + $0x6c] sm:$0xff]  }
 0x626   :  { %9246 = vmatmul.mubr.msk.bf16.vlgmr.msra.gmra.mrb[136].mxu1 %vm1724_vm14, %v6892_v7  ;;  %9281 = vmatprep.subr.bf16.mxu0 %v12840_v62  ;;  %v6846_v0 = vsel %vm507_vm4, %v6201_v10, %v6624_v56  ;;  %v6303_v8 = vcombine.high %v12205_v14, %v12205_v14  ;;  %v12303_v63 = vrot.slane %v6171_v34, %v10000_v29  ;;  %v12323_v7 = vpop.permute.xlu1 %7761 }
 0x627   :  { %9258 = vmatpush3.bf16.msra.mxu1 %v9874_v57  ;;  %9261 = vmatprep.mubr.msk.bf16.mxu1 %vm9886_vm2, %v12840_v62  ;;  %v6418_v4 = vcombine.high %v12217_v35, %v12217_v35  ;;  %v6533_v2 = vcombine.high %v12226_v5, %v12226_v5  ;;  %v6863_v14 = vsel %vm525_vm5, %v6846_v0, %v6709_v28 }
 0x628   :  { %9270 = vmatmul.mubr.msk.bf16.vlgmr.msra.gmra.mrb[152].mxu0 %vm1724_vm14, %v6895_v31  ;;  %9259 = vmatprep.subr.bf16.mxu1 %v12840_v62  ;;  %v6325_v15 = vrot.slane %v6303_v8, %v10000_v29  ;;  %v6156_v41 = vcombine.high %v12090_v45, %v12090_v45  ;;  %v6880_v35 = vsel %vm543_vm6, %v6863_v14, %v6794_v37 }
 0x629   :  { %9282 = vmatpush3.bf16.msra.mxu0 %v9875_v26  ;;  %9285 = vmatprep.mubr.msk.bf16.mxu0 %vm9886_vm2, %v12840_v62  ;;  %v6440_v5 = vrot.slane %v6418_v4, %v10000_v29  ;;  %v6555_v27 = vrot.slane %v6533_v2, %v10000_v29  ;;  %v6288_v25 = vcombine.high %v12044_v33, %v12044_v33  ;;  %v9877_v2 = vld [vmem:[%s12765_s5 + $0x90] sm:$0xff]  }
 0x62a   :  { %9283 = vmatprep.subr.bf16.mxu0 %v12840_v62  ;;  %v6620_v36 = vrot.slane %v6325_v15, %v10009_v39  ;;  %v12328_v54 = vrot.slane %v6156_v41, %v10000_v29  ;;  %v6403_v55 = vcombine.high %v12084_v3, %v12084_v3  ;;  %v6894_v13 = vpack.c.bf16 %v6877_v32, %v6877_v32  ;;  %v12371_v0 = vpop.permute.xlu1 %7861 }
 0x62b   :  { %9260 = vmatpush3.bf16.msra.mxu1 %v11165_v58  ;;  %v6705_v50 = vrot.slane %v6440_v5, %v10009_v39  ;;  %v6790_v59 = vrot.slane %v6555_v27, %v10009_v39  ;;  %v6518_v17 = vcombine.high %v12106_v52, %v12106_v52  ;;  %v6897_v44 = vpack.c.bf16 %v6880_v35, %v6880_v35 }
 0x62c   :  { %9273 = vmatprep.subr.bf16.mxu1 %v12840_v62  ;;  %v6845_v10 = vsel %vm507_vm4, %v12303_v63, %v6620_v36  ;;  %v12343_v18 = vrot.slane %v6288_v25, %v10000_v29  ;;  %v12346_v31 = vrot.slane %v6403_v55, %v10000_v29  ;;  %v6186_v61 = vrot.slane %v12328_v54, %v10000_v29  ;;  %v12389_v25 = vpop.permute.xlu0 %7763 }
 0x62d   :  { %9284 = vmatpush3.bf16.msra.mxu0 %v11256_v48  ;;  %v6862_v58 = vsel %vm525_vm5, %v6845_v10, %v6705_v50  ;;  %v12353_v38 = vrot.slane %v6518_v17, %v10000_v29  ;;  %v6450_v6 = vcombine.high %v6440_v5, %v6440_v5  ;;  %v6335_v48 = vcombine.high %v6325_v15, %v6325_v15 }
 0x62e   :  { %9262 = vmatmul.mubr.msk.bf16.vlgmr.msra.gmra.mrb[140].mxu1 %vm1724_vm14, %v6894_v13  ;;  %9297 = vmatprep.subr.bf16.mxu0 %v12840_v62  ;;  %v6318_v56 = vrot.slane %v12343_v18, %v10000_v29  ;;  %v6433_v34 = vrot.slane %v12346_v31, %v10000_v29  ;;  %v6879_v28 = vsel %vm543_vm6, %v6862_v58, %v6790_v59  ;;  %v12400_v10 = vpop.permute.xlu1 %7961 }
 0x62f   :  { %9274 = vmatpush3.bf16.msra.mxu1 %v9876_v11  ;;  %9277 = vmatprep.mubr.msk.bf16.mxu1 %vm9886_vm2, %v12840_v62  ;;  %v6548_v37 = vrot.slane %v12353_v38, %v10000_v29  ;;  %v6203_v32 = vcombine.high %v12303_v63, %v12303_v63  ;;  %v6565_v4 = vcombine.high %v6555_v27, %v6555_v27 }
 0x630   :  { %9286 = vmatmul.mubr.msk.bf16.vlgmr.msra.gmra.mrb[156].mxu0 %vm1724_vm14, %v6897_v44  ;;  %9275 = vmatprep.subr.bf16.mxu1 %v12840_v62  ;;  %v6632_v8 = vrot.slane %v6318_v56, %v10009_v39  ;;  %v6717_v57 = vrot.slane %v6433_v34, %v10009_v39  ;;  %v6713_v14 = vrot.slane %v6450_v6, %v10009_v39 }
 0x631   :  { %9298 = vmatpush3.bf16.msra.mxu0 %v9877_v2  ;;  %9301 = vmatprep.mubr.msk.bf16.mxu0 %vm9886_vm2, %v12840_v62  ;;  %v6802_v63 = vrot.slane %v6548_v37, %v10009_v39  ;;  %v6628_v41 = vrot.slane %v6335_v48, %v10009_v39  ;;  %v6334_v26 = vcombine.high %v6318_v56, %v6318_v56  ;;  %v12909_v2 = vld [vmem:[#allocation43_spill] sm:$0xff] }
 0x632   :  { %9299 = vmatprep.subr.bf16.mxu0 %v12840_v62  ;;  %v6848_v15 = vsel %vm507_vm4, %v6186_v61, %v6632_v8  ;;  %v6896_v35 = vpack.c.bf16 %v6879_v28, %v6879_v28  ;;  %v6449_v27 = vcombine.high %v6433_v34, %v6433_v34  ;;  %v6564_v36 = vcombine.high %v6548_v37, %v6548_v37  ;;  %v9879_v28 = vld [vmem:[%s12765_s5 + $0xa8] sm:$0xff]  }
 0x633   :  { %9276 = vmatpush3.bf16.msra.mxu1 %v11231_v12  ;;  %v6865_v5 = vsel %vm525_vm5, %v6848_v15, %v6717_v57  ;;  %v6798_v13 = vrot.slane %v6565_v4, %v10009_v39  ;;  %v6847_v50 = vsel %vm507_vm4, %v6203_v32, %v6628_v41  ;;  %v6202_v59 = vcombine.high %v6186_v61, %v6186_v61  ;;  %v12433_v32 = vpop.permute.xlu0 %7863  ;;  %v12448_v41 = vpop.permute.xlu1 %7963 }
 0x634   :  { %9289 = vmatprep.subr.bf16.mxu1 %v12840_v62  ;;  %v6882_v55 = vsel %vm543_vm6, %v6865_v5, %v6802_v63  ;;  %v6864_v12 = vsel %vm525_vm5, %v6847_v50, %v6713_v14  ;;  %v6640_v17 = vrot.slane %v6334_v26, %v10009_v39  ;;  %v6172_v44 = vcombine.high %v12328_v54, %v12328_v54 }
 0x635   :  { %9300 = vmatpush3.bf16.msra.mxu0 %v11309_v9  ;;  %v6899_v58 = vpack.c.bf16 %v6882_v55, %v6882_v55  ;;  %v6725_v6 = vrot.slane %v6449_v27, %v10009_v39  ;;  %v6304_v61 = vcombine.high %v12343_v18, %v12343_v18  ;;  %v9878_v9 = vld [vmem:[%s12765_s5 + $0x84] sm:$0xff]   ;;  %v6810_v54 = vrot.slane %v6564_v36, %v10009_v39 }
 0x636   :  { %9278 = vmatmul.mubr.msk.bf16.vlgmr.msra.gmra.mrb[144].mxu1 %vm1724_vm14, %v6896_v35  ;;  %9313 = vmatprep.subr.bf16.mxu0 %v12840_v62  ;;  %v6419_v56 = vcombine.high %v12346_v31, %v12346_v31  ;;  %v6534_v34 = vcombine.high %v12353_v38, %v12353_v38  ;;  %v6881_v18 = vsel %vm543_vm6, %v6864_v12, %v6798_v13 }
 0x637   :  { %9290 = vmatpush3.bf16.msra.mxu1 %v9878_v9  ;;  %9293 = vmatprep.mubr.msk.bf16.mxu1 %vm9886_vm2, %v12840_v62  ;;  %v6850_v48 = vsel %vm507_vm4, %v6202_v59, %v6640_v17  ;;  %v12422_v11 = vrot.slane %v6304_v61, %v10000_v29  ;;  %v6211_v37 = vrot.slane %v12243_v46, %v10000_v29 }
 0x638   :  { %9302 = vmatmul.mubr.msk.bf16.vlgmr.msra.gmra.mrb[160].mxu0 %vm1724_vm14, %v6899_v58  ;;  %9291 = vmatprep.subr.bf16.mxu1 %v12840_v62  ;;  %v6447_v31 = vrot.slane %v6419_v56, %v10000_v29  ;;  %v6562_v38 = vrot.slane %v6534_v34, %v10000_v29  ;;  %v6867_v8 = vsel %vm525_vm5, %v6850_v48, %v6725_v6  ;;  %v9881_v56 = vld [vmem:[%s12765_s5 + $0xc0] sm:$0xff]  }
 0x639   :  { %9314 = vmatpush3.bf16.msra.mxu0 %v9879_v28  ;;  %9317 = vmatprep.mubr.msk.bf16.mxu0 %vm9886_vm2, %v12840_v62  ;;  %v6343_v57 = vrot.slane %v12115_v23, %v10000_v29  ;;  %v6458_v4 = vrot.slane %v12141_v24, %v10000_v29  ;;  %v6884_v63 = vsel %vm543_vm6, %v6867_v8, %v6810_v54 }
 0x63a   :  { %9315 = vmatprep.subr.bf16.mxu0 %v12840_v62  ;;  %v12444_v14 = vrot.slane %v6172_v44, %v10000_v29  ;;  %v6573_v15 = vrot.slane %v12154_v60, %v10000_v29  ;;  %v6898_v26 = vpack.c.bf16 %v6881_v18, %v6881_v18  ;;  %v6721_v35 = vrot.slane %v6447_v31, %v10009_v39 }
 0x63b   :  { %9292 = vmatpush3.bf16.msra.mxu1 %v12909_v2  ;;  %v6350_v5 = vrot.slane %v6343_v57, %v10000_v29  ;;  %v6465_v27 = vrot.slane %v6458_v4, %v10000_v29  ;;  %v6636_v36 = vrot.slane %v12422_v11, %v10009_v39  ;;  %v6806_v55 = vrot.slane %v6562_v38, %v10009_v39 }
 0x63c   :  { %9305 = vmatprep.subr.bf16.mxu1 %v12840_v62  ;;  %v6218_v13 = vrot.slane %v6211_v37, %v10000_v29  ;;  %v6580_v50 = vrot.slane %v6573_v15, %v10000_v29  ;;  %v6901_v12 = vpack.c.bf16 %v6884_v63, %v6884_v63  ;;  %v6336_v9 = vcombine.high %v12422_v11, %v12422_v11  ;;  %v12910_v37 = vld [vmem:[#allocation44_spill] sm:$0xff] }
 0x63d   :  { %9316 = vmatpush3.bf16.msra.mxu0 %v11382_v51  ;;  %v6733_v17 = vrot.slane %v6465_v27, %v10009_v39  ;;  %v9880_v51 = vld [vmem:[%s12765_s5 + $0x9c] sm:$0xff]   ;;  %v6849_v29 = vsel %vm507_vm4, %v12444_v14, %v6636_v36  ;;  %v6648_v44 = vrot.slane %v6350_v5, %v10009_v39  ;;  %v6451_v54 = vcombine.high %v6447_v31, %v6447_v31 }
 0x63e   :  { %9294 = vmatmul.mubr.msk.bf16.vlgmr.msra.gmra.mrb[148].mxu1 %vm1724_vm14, %v6898_v26  ;;  %v1879_v59 = vpop.xlane.xlu0 %1878  ;;  %9329 = vmatprep.subr.bf16.mxu0 %v12840_v62  ;;  %v6818_v58 = vrot.slane %v6580_v50, %v10009_v39  ;;  %v6866_v61 = vsel %vm525_vm5, %v6849_v29, %v6721_v35  ;;  %v6566_v48 = vcombine.high %v6562_v38, %v6562_v38 }
 0x63f   :  { %9306 = vmatpush3.bf16.msra.mxu1 %v9880_v51  ;;  %9818 = vrcp.f32 %v1879_v59  ;;  %9309 = vmatprep.mubr.msk.bf16.mxu1 %vm9886_vm2, %v12840_v62  ;;  %v6883_v34 = vsel %vm543_vm6, %v6866_v61, %v6806_v55  ;;  %v6852_v18 = vsel %vm507_vm4, %v6218_v13, %v6648_v44  ;;  %v6102_v31 = vpack.c.bf16 %v12106_v52, %v12060_v19  ;;  %v12912_v51 = vld [vmem:[#allocation10_spill] sm:$0xff] }
 0x640   :  { %9318 = vmatmul.mubr.msk.bf16.vlgmr.msra.gmra.mrb[164].mxu0 %vm1724_vm14, %v6901_v12  ;;  %9307 = vmatprep.subr.bf16.mxu1 %v12840_v62  ;;  %v6869_v11 = vsel %vm525_vm5, %v6852_v18, %v6733_v17  ;;  %v6204_v57 = vcombine.high %v12444_v14, %v12444_v14  ;;  %v6900_v4 = vpack.c.bf16 %v6883_v34, %v6883_v34  ;;  %v9882_v14 = vld [vmem:[%s12765_s5 + $0xb4] sm:$0xff]  }
 0x641   :  { %v1882_v6 = vpop.xlane.xlu1 %1881  ;;  %9330 = vmatpush3.bf16.msra.mxu0 %v9881_v56  ;;  %9333 = vmatprep.mubr.msk.bf16.mxu0 %vm9886_vm2, %v12840_v62  ;;  %v6886_v8 = vsel %vm543_vm6, %v6869_v11, %v6818_v58  ;;  %v6729_v38 = vrot.slane %v6451_v54, %v10009_v39  ;;  %v6644_v2 = vrot.slane %v6336_v9, %v10009_v39  ;;  %v9769_v58 = vld [vmem:[%s12766_s2 + $0x18] sm:$0xff]  }
 0x642   :  { %9820 = vrcp.f32 %v1882_v6  ;;  %v2008_v28 = vpop.xlane.xlu0 %2007  ;;  %9331 = vmatprep.subr.bf16.mxu0 %v12840_v62  ;;  %v6814_v63 = vrot.slane %v6566_v48, %v10009_v39  ;;  %v6903_v15 = vpack.c.bf16 %v6886_v8, %v6886_v8  ;;  %v7805_v26 = vand.u32 %v12389_v25, %v10759_v16  ;;  %v12914_v8 = vld [vmem:[#allocation7_spill] sm:$0xff] }
 0x643   :  { %9308 = vmatpush3.bf16.msra.mxu1 %v12910_v37  ;;  %9822 = vrcp.f32 %v2008_v28  ;;  %v6851_v39 = vsel %vm507_vm4, %v6204_v57, %v6644_v2  ;;  %v7905_v17 = vand.u32 %v12433_v32, %v10759_v16 }
 0x644   :  { %9321 = vmatprep.subr.bf16.mxu1 %v12840_v62  ;;  %v6868_v35 = vsel %vm525_vm5, %v6851_v39, %v6729_v38  ;;  %vm4390_vm5 = vcmask 392192  }
 0x645   :  { %9332 = vmatpush3.bf16.msra.mxu0 %v11440_v20  ;;  %v2137_v19 = vpop.xlane.xlu1 %2136  ;;  %v5844_v20 = vpack.c.bf16 %v12044_v33, %v11992_v49  ;;  %v6885_v49 = vsel %vm543_vm6, %v6868_v35, %v6814_v63 }
 0x646   :  { %9345 = vmatprep.subr.bf16.mxu0 %v12323_v7  ;;  %9310 = vmatmul.mubr.msk.bf16.vlgmr.msra.gmra.mrb[152].mxu1 %vm1724_vm14, %v6900_v4  ;;  %v2011_v52 = vpop.xlane.xlu0 %2010  ;;  %v6902_v55 = vpack.c.bf16 %v6885_v49, %v6885_v49 }
 0x647   :  { %9322 = vmatpush3.bf16.msra.mxu1 %v9882_v14  ;;  %9824 = vrcp.f32 %v2011_v52  ;;  %9325 = vmatprep.mubr.msk.bf16.mxu1 %vm9886_vm2, %v12840_v62  ;;  %v12915_v52 = vld [vmem:[#allocation6_spill] sm:$0xff] }
 0x648   :  { %9334 = vmatmul.mubr.msk.bf16.vlgmr.msra.gmra.mrb[168].mxu0 %vm1724_vm14, %v6903_v15  ;;  %9323 = vmatprep.subr.bf16.mxu1 %v12840_v62  ;;  %9826 = vrcp.f32 %v2137_v19 }
 0x649   :  { %v9819_v5 = vpop.eup %9818  ;;  %9346 = vmatpush3.bf16.msra.mxu0 %v12323_v7  ;;  %9349 = vmatprep.mubr.msk.bf16.mxu0 %vm1724_vm14, %v5844_v20  ;;  %v1885_v25 = vpop.xlane.xlu1 %1884  ;;  %v5713_v7 = vpack.c.bf16 %v12090_v45, %v12001_v43  ;;  %v8005_v43 = vand.u32 %v12448_v41, %v10759_v16 }
 0x64a   :  { %9347 = vmatprep.subr.bf16.mxu0 %v7805_v26  ;;  %v2140_v33 = vpop.xlane.xlu0 %2139  ;;  %v4142_v27 = vmul.f32 %v9819_v5, %v11829_v22  ;;  %v7705_v22 = vand.u32 %v11965_v30, %v10759_v16 }
 0x64b   :  { %9324 = vmatpush3.bf16.msra.mxu1 %v11385_v47  ;;  %9828 = vrcp.f32 %v2140_v33 }
 0x64c   :  { %v9821_v36 = vpop.eup %9820  ;;  %9337 = vmatprep.subr.bf16.mxu1 %v12906_v1  ;;  %9830 = vrcp.f32 %v1885_v25  ;;  %v12916_v25 = vld [vmem:[#allocation30_spill] sm:$0xff] }
 0x64d   :  { %v4144_v13 = vmul.f32 %v9821_v36, %v11833_v40  ;;  %9348 = vmatpush3.bf16.msra.mxu0 %v7805_v26  ;;  %v9823_v47 = vpop.eup %9822  ;;  %v5845_v40 = vpack.c.bf16 %v12115_v23, %v12115_v23  ;;  %v5714_v23 = vpack.c.bf16 %v12243_v46, %v12243_v46  ;;  %v6103_v46 = vpack.c.bf16 %v12154_v60, %v12154_v60  ;;  %v9767_v60 = vld [vmem:[%s12766_s2 + $0x8] sm:$0xff]  }
 0x64e   :  { %9361 = vmatprep.subr.bf16.mxu0 %v12400_v10  ;;  %9326 = vmatmul.mubr.msk.bf16.vlgmr.msra.gmra.mrb[156].mxu1 %vm1724_vm14, %v6902_v55  ;;  %v12581_v9 = vpop.xlane.xlu0 %2013 }
 0x64f   :  { %v9656_v50 = vpack.i.bf16 %v4144_v13, %v4142_v27  ;;  %9338 = vmatpush3.bf16.msra.mxu1 %v12906_v1  ;;  %9341 = vmatprep.mubr.msk.bf16.mxu1 %vm1724_vm14, %v5713_v7  ;;  %v4242_v1 = vmul.f32 %v9823_v47, %v11824_v53  ;;  %v5973_v53 = vpack.c.bf16 %v12084_v3, %v12021_v21  ;;  %v9766_v21 = vld [vmem:[%s12766_s2] sm:$0xff]  }
 0x650   :  { %9339 = vmatprep.subr.bf16.mxu1 %v7705_v22  ;;  %9350 = vmatmul.mubr.msk.bf16.vlgmr.msra.gmra.mrb[172].mxu0 %vm1724_vm14, %v5845_v40  ;;  %v5974_v3 = vpack.c.bf16 %v12141_v24, %v12141_v24  ;;  %v9768_v24 = vld [vmem:[%s12766_s2 + $0x10] sm:$0xff]   ;;  %v12917_v13 = vld [vmem:[#allocation5_spill] sm:$0xff] }
 0x651   :  { %9657 = vrot.lane.b32.xlu1 %v9656_v50, %s9893_s11  ;;  %v9825_v45 = vpop.eup %9824  ;;  %9362 = vmatpush3.bf16.msra.mxu0 %v12400_v10 }
 0x652   :  { %9365 = vmatprep.mubr.msk.bf16.mxu0 %vm1724_vm14, %v6102_v31  ;;  %v4244_v30 = vmul.f32 %v9825_v45, %v11831_v42  ;;  %v9827_v59 = vpop.eup %9826  ;;  %9363 = vmatprep.subr.bf16.mxu0 %v8005_v43  ;;  %v12911_v42 = vld [vmem:[#allocation32_spill] sm:$0xff] }
 0x653   :  { %9340 = vmatpush3.bf16.msra.mxu1 %v7705_v22  ;;  %v4342_v10 = vmul.f32 %v9827_v59, %v12911_v42 }
 0x654   :  { %9353 = vmatprep.subr.bf16.mxu1 %v12371_v0  ;;  %v9661_v12 = vpack.i.bf16 %v4244_v30, %v4242_v1 }
 0x655   :  { %v9829_v41 = vpop.eup %9828  ;;  %9364 = vmatpush3.bf16.msra.mxu0 %v8005_v43 }
 0x656   :  { %9342 = vmatmul.mubr.msk.bf16.vlgmr.msra.gmra.mrb[160].mxu1 %vm1724_vm14, %v5714_v23  ;;  %v4344_v29 = vmul.f32 %v9829_v41, %v12912_v51  ;;  %9662 = vrot.lane.b32.xlu0 %v9661_v12, %s9892_s10  ;;  %v9831_v32 = vpop.eup %9830 }
 0x657   :  { %9354 = vmatpush3.bf16.msra.mxu1 %v12371_v0  ;;  %9357 = vmatprep.mubr.msk.bf16.mxu1 %vm1724_vm14, %v5973_v53  ;;  %v12913_v0 = vld [vmem:[#allocation8_spill] sm:$0xff] }
 0x658   :  { %9355 = vmatprep.subr.bf16.mxu1 %v7905_v17  ;;  %v9666_v16 = vpack.i.bf16 %v4344_v29, %v4342_v10  ;;  %9366 = vmatmul.mubr.msk.bf16.vlgmr.msra.gmra.mrb[176].mxu0 %vm1724_vm14, %v6103_v46  ;;  %v4146_v44 = vmul.f32 %v9831_v32, %v12913_v0 }
 0x65a   :  { %9667 = vrot.lane.b32.xlu1 %v9666_v16, %s9891_s9 }
 0x65b   :  { %9356 = vmatpush3.bf16.msra.mxu1 %v7905_v17 }
 0x65c   :  { %9369 = vmatprep.subr.bf16.mxu1 %v12840_v62 }
 0x65e   :  { %9358 = vmatmul.mubr.msk.bf16.vlgmr.msra.gmra.mrb[164].mxu1 %vm1724_vm14, %v5974_v3  ;;  %4354 = vrot.lane.b32.xlu1 %v4146_v44, %s9893_s11 }
 0x65f   :  { %9370 = vmatpush3.bf16.msra.mxu1 %v9766_v21  ;;  %9377 = vmatprep.mubr.msk.bf16.mxu1 %vm9886_vm2, %v12840_v62 }
 0x660   :  { %9371 = vmatprep.subr.bf16.mxu1 %v12840_v62 }
 0x663   :  { %9372 = vmatpush3.bf16.msra.mxu1 %v9767_v60 }
 0x664   :  { %9373 = vmatprep.subr.bf16.mxu1 %v12840_v62 }
 0x667   :  { %9374 = vmatpush3.bf16.msra.mxu1 %v9768_v24 }
 0x668   :  { %9375 = vmatprep.subr.bf16.mxu1 %v12840_v62 }
 0x66b   :  { %9376 = vmatpush3.bf16.msra.mxu1 %v9769_v58 }
 0x683   :  { %v12577_v6 = vpop.xlane.xlu1 %5836 }
 0x68e   :  { %v12579_v61 = vpop.xlane.xlu1 %5965 }
 0x692   :  { %v12585_v56 = vpop.xlane.xlu0 %5839 }
 0x697   :  { %v12587_v18 = vpop.xlane.xlu0 %5968 }
 0x69b   :  { %v12591_v28 = vpop.xlane.xlu0 %6094 }
 0x69c   :  { %v12583_v54 = vpop.xlane.xlu1 %6097 }
 0x69f   :  { %v12598_v4 = vpop.xlane.xlu0 %5842 }
 0x6a0   :  { %v2143_v34 = vpop.xlane.xlu1 %2142 }
 0x6a1   :  { %9832 = vrcp.f32 %v2143_v34 }
 0x6a3   :  { %v12600_v2 = vpop.xlane.xlu0 %6100 }
 0x6a4   :  { %v12589_v48 = vpop.xlane.xlu1 %5971 }
 0x6a7   :  { %v1749_v63 = vpop.xlane.xlu0 %1748 }
 0x6a8   :  { %v1746_v11 = vpop.xlane.xlu1 %1745 }
 0x6ab   :  { %v9833_v31 = vpop.eup %9832  ;;  %v12605_v14 = vpop.xlane.xlu0 %5708 }
 0x6ac   :  { %v12593_v37 = vpop.xlane.xlu1 %5705  ;;  %v12596_v57 = vmul.f32 %v9833_v31, %v12914_v8 }
 0x6af   :  { %v12607_v20 = vpop.xlane.xlu0 %5711 }
 0x6b0   :  { %v1752_v38 = vpop.xlane.xlu1 %1751 }
 0x6b1   :  { %9834 = vrcp.f32 %v1752_v38 }
 0x6b2   :  { %9836 = vrcp.f32 %v1749_v63 }
 0x6b3   :  { %9838 = vrcp.f32 %v1746_v11 }
 0x6b4   :  { %9840 = vrcp.f32 %v12581_v9 }
 0x6b5   :  { %9842 = vrcp.f32 %v12577_v6 }
 0x6b6   :  { %9844 = vrcp.f32 %v12598_v4 }
 0x6b7   :  { %9846 = vrcp.f32 %v12585_v56 }
 0x6b8   :  { %9848 = vrcp.f32 %v12600_v2 }
 0x6b9   :  { %9850 = vrcp.f32 %v12593_v37 }
 0x6ba   :  { %9852 = vrcp.f32 %v12607_v20 }
 0x6bb   :  { %v9835_v19 = vpop.eup %9834  ;;  %9854 = vrcp.f32 %v12605_v14 }
 0x6bc   :  { %v12603_v15 = vmul.f32 %v9835_v19, %v12915_v52  ;;  %v9837_v26 = vpop.eup %9836  ;;  %9856 = vrcp.f32 %v12591_v28 }
 0x6bd   :  { %v9839_v35 = vpop.eup %9838  ;;  %v4042_v7 = vmul.f32 %v9837_v26, %v12917_v13  ;;  %9858 = vrcp.f32 %v12583_v54 }
 0x6be   :  { %v4040_v55 = vmul.f32 %v9839_v35, %v12916_v25  ;;  %v9841_v56 = vpop.eup %9840  ;;  %9860 = vrcp.f32 %v12589_v48 }
 0x6bf   :  { %9862 = vrcp.f32 %v12579_v61 }
 0x6c0   :  { %9864 = vrcp.f32 %v12587_v18 }
 0x6c3   :  { %v9658_v39 = vpop.permute.xlu1 %9657 }
 0x6c4   :  { %v9660_v5 = vunpack.i.h.bf16 %v9658_v39  ;;  %v9659_v49 = vunpack.i.l.bf16 %v9658_v39 }
 0x6c6   :  { %v4383_v22 = vsel %vm637_vm1, %v4040_v55, %v9659_v49  ;;  %v4384_v47 = vsel %vm637_vm1, %v4042_v7, %v9660_v5 }
 0x6c8   :  { %v9663_v33 = vpop.permute.xlu0 %9662 }
 0x6c9   :  { %v9665_v27 = vunpack.i.h.bf16 %v9663_v33  ;;  %v9664_v36 = vunpack.i.l.bf16 %v9663_v33 }
 0x6cb   :  { %v4388_v43 = vsel %vm4386_vm3, %v4384_v47, %v9665_v27  ;;  %v4387_v1 = vsel %vm4386_vm3, %v4383_v22, %v9664_v36 }
 0x6cc   :  { %v9668_v50 = vpop.permute.xlu1 %9667 }
 0x6cd   :  { %v9670_v40 = vunpack.i.h.bf16 %v9668_v50  ;;  %v9669_v45 = vunpack.i.l.bf16 %v9668_v50 }
 0x6cf   :  { %v4391_v30 = vsel %vm4390_vm5, %v4387_v1, %v9669_v45  ;;  %v4392_v59 = vsel %vm4390_vm5, %v4388_v43, %v9670_v40 }
 0x6d0   :  { %v8118_v23 = vpack.c.bf16 %v4392_v59, %v4391_v30 }
 0x6d2   :  { %9378 = vmatmul.mubr.msk.bf16.vlgmr.msra.gmra.mrb[168].mxu1 %vm80_vm0, %v8118_v23 }
 0x6d3   :  { %9381 = vmatprep.mubr.msk.bf16.mxu1 %vm9886_vm2, %v12840_v62 }
 0x6e1   :  { %v6941_v12 = vpop.f32.mrb[124].mxu1 }
 0x6e2   :  { %v9207_v41 = vpop.f32.mrb[125].mxu1  ;;  %v7766_v46 = vrot.slane %v6941_v12, 1  ;;  %v7866_v16 = vrot.slane %v6941_v12, 2  ;;  %v7966_v8 = vrot.slane %v6941_v12, 3 }
 0x6e3   :  { %v6944_v17 = vpop.f32.mrb[126].mxu1  ;;  %v7027_v53 = vpop.f32.mrb[140].mxu0 }
 0x6e4   :  { %v9208_v42 = vpop.f32.mrb[127].mxu1  ;;  %v9223_v10 = vpop.f32.mrb[141].mxu0  ;;  %v7768_v32 = vrot.slane %v7027_v53, 7  ;;  %v7669_v58 = vrot.slane %v7027_v53, 6  ;;  %v7969_v39 = vrot.slane %v7027_v53, 1 }
 0x6e5   :  { %v7030_v51 = vpop.f32.mrb[142].mxu0 }
 0x6e6   :  { %v9224_v29 = vpop.f32.mrb[143].mxu0 }
 0x6e9   :  { %v6984_v21 = vpop.f32.mrb[128].mxu1 }
 0x6ea   :  { %v7667_v3 = vrot.slane %v6984_v21, 7  ;;  %v7767_v0 = vsel %vm1627_vm7, %v6984_v21, %v7766_v46  ;;  %v7867_v44 = vrot.slane %v6984_v21, 1  ;;  %v7967_v60 = vrot.slane %v6984_v21, 2  ;;  %v9215_v24 = vpop.f32.mrb[129].mxu1 }
 0x6eb   :  { %v7769_v34 = vsel %vm1630_vm8, %v7768_v32, %v7767_v0  ;;  %v6987_v11 = vpop.f32.mrb[130].mxu1  ;;  %v7113_v31 = vpop.f32.mrb[144].mxu0 }
 0x6ec   :  { %v7668_v38 = vsel %vm1627_vm7, %v7667_v3, %v6941_v12  ;;  %v7868_v63 = vsel %vm1627_vm7, %v7867_v44, %v7866_v16  ;;  %v9216_v19 = vpop.f32.mrb[131].mxu1  ;;  %v9239_v52 = vpop.f32.mrb[145].mxu0  ;;  %v7968_v33 = vsel %vm1627_vm7, %v7967_v60, %v7966_v8  ;;  %v7972_v36 = vrot.slane %v7113_v31, 7 }
 0x6ed   :  { %v7116_v26 = vpop.f32.mrb[146].mxu0  ;;  %v7670_v35 = vsel %vm1630_vm8, %v7669_v58, %v7668_v38  ;;  %v7869_v5 = vsel %vm1630_vm8, %v7027_v53, %v7868_v63  ;;  %v7970_v27 = vsel %vm1630_vm8, %v7969_v39, %v7968_v33  ;;  %v7673_v47 = vrot.slane %v7113_v31, 4 }
 0x6ee   :  { %v9240_v49 = vpop.f32.mrb[147].mxu0  ;;  %v7772_v40 = vrot.slane %v7113_v31, 5  ;;  %v7872_v30 = vrot.slane %v7113_v31, 6 }
 0x6f1   :  { %v7070_v25 = vpop.f32.mrb[132].mxu1 }
 0x6f2   :  { %v7671_v55 = vrot.slane %v7070_v25, 5  ;;  %v7770_v13 = vrot.slane %v7070_v25, 6  ;;  %v7870_v7 = vrot.slane %v7070_v25, 7  ;;  %v7971_v50 = vsel %vm1633_vm9, %v7070_v25, %v7970_v27  ;;  %v9231_v22 = vpop.f32.mrb[133].mxu1 }
 0x6f3   :  { %v7973_v45 = vsel %vm1636_vm10, %v7972_v36, %v7971_v50  ;;  %v7073_v43 = vpop.f32.mrb[134].mxu1  ;;  %v7199_v1 = vpop.f32.mrb[148].mxu0 }
 0x6f4   :  { %v7672_v59 = vsel %vm1633_vm9, %v7671_v55, %v7670_v35  ;;  %v7771_v23 = vsel %vm1633_vm9, %v7770_v13, %v7769_v34  ;;  %v7871_v12 = vsel %vm1633_vm9, %v7870_v7, %v7869_v5  ;;  %v9232_v41 = vpop.f32.mrb[135].mxu1  ;;  %v9255_v17 = vpop.f32.mrb[149].mxu0  ;;  %v7776_v44 = vrot.slane %v7199_v1, 3 }
 0x6f5   :  { %v7202_v53 = vpop.f32.mrb[150].mxu0  ;;  %v7773_v42 = vsel %vm1636_vm10, %v7772_v40, %v7771_v23  ;;  %v7674_v51 = vsel %vm1636_vm10, %v7673_v47, %v7672_v59  ;;  %v7873_v29 = vsel %vm1636_vm10, %v7872_v30, %v7871_v12  ;;  %v7677_v58 = vrot.slane %v7199_v1, 2 }
 0x6f6   :  { %v9256_v10 = vpop.f32.mrb[151].mxu0  ;;  %v7876_v34 = vrot.slane %v7199_v1, 4  ;;  %v7976_v11 = vrot.slane %v7199_v1, 5 }
 0x6f9   :  { %v7156_v46 = vpop.f32.mrb[136].mxu1 }
 0x6fa   :  { %v7675_v16 = vrot.slane %v7156_v46, 3  ;;  %v7774_v32 = vrot.slane %v7156_v46, 4  ;;  %v7874_v21 = vrot.slane %v7156_v46, 5  ;;  %v7974_v3 = vrot.slane %v7156_v46, 6  ;;  %v9247_v0 = vpop.f32.mrb[137].mxu1 }
 0x6fb   :  { %v7159_v60 = vpop.f32.mrb[138].mxu1  ;;  %v7285_v24 = vpop.f32.mrb[152].mxu0 }
 0x6fc   :  { %v9248_v31 = vpop.f32.mrb[139].mxu1  ;;  %v9271_v8 = vpop.f32.mrb[153].mxu0  ;;  %v7775_v38 = vsel %vm1639_vm11, %v7774_v32, %v7773_v42  ;;  %v7676_v52 = vsel %vm1639_vm11, %v7675_v16, %v7674_v51  ;;  %v7975_v39 = vsel %vm1639_vm11, %v7974_v3, %v7973_v45  ;;  %v7875_v26 = vsel %vm1639_vm11, %v7874_v21, %v7873_v29 }
 0x6fd   :  { %v7288_v63 = vpop.f32.mrb[154].mxu0  ;;  %v7777_v19 = vsel %vm1642_vm12, %v7776_v44, %v7775_v38  ;;  %v7678_v5 = vsel %vm1642_vm12, %v7677_v58, %v7676_v52  ;;  %v7977_v49 = vsel %vm1642_vm12, %v7976_v11, %v7975_v39  ;;  %v7877_v33 = vsel %vm1642_vm12, %v7876_v34, %v7875_v26 }
 0x6fe   :  { %v9272_v35 = vpop.f32.mrb[155].mxu0  ;;  %v7780_v12 = vrot.slane %v7285_v24, 1  ;;  %v7880_v41 = vrot.slane %v7285_v24, 2  ;;  %v7980_v0 = vrot.slane %v7285_v24, 3 }
 0x701   :  { %v7242_v27 = vpop.f32.mrb[140].mxu1 }
 0x702   :  { %v7679_v36 = vrot.slane %v7242_v27, 1  ;;  %v7778_v25 = vrot.slane %v7242_v27, 2  ;;  %v7878_v55 = vrot.slane %v7242_v27, 3  ;;  %v7978_v13 = vrot.slane %v7242_v27, 4  ;;  %v9263_v7 = vpop.f32.mrb[141].mxu1 }
 0x703   :  { %v7245_v50 = vpop.f32.mrb[142].mxu1  ;;  %v7371_v22 = vpop.f32.mrb[156].mxu0 }
 0x704   :  { %v9264_v47 = vpop.f32.mrb[143].mxu1  ;;  %v9287_v40 = vpop.f32.mrb[157].mxu0  ;;  %v12645_v45 = vsel %vm1645_vm13, %v7778_v25, %v7777_v19  ;;  %v12648_v1 = vsel %vm1645_vm13, %v7679_v36, %v7678_v5  ;;  %v12651_v30 = vsel %vm1645_vm13, %v7978_v13, %v7977_v49  ;;  %v12654_v59 = vsel %vm1645_vm13, %v7878_v55, %v7877_v33 }
 0x705   :  { %v7374_v43 = vpop.f32.mrb[158].mxu0  ;;  %v7782_v17 = vrot.slane %v7371_v22, 7  ;;  %v7683_v16 = vrot.slane %v7371_v22, 6  ;;  %v7983_v11 = vrot.slane %v7371_v22, 1 }
 0x706   :  { %v9288_v23 = vpop.f32.mrb[159].mxu0 }
 0x709   :  { %v7328_v53 = vpop.f32.mrb[144].mxu1 }
 0x70a   :  { %v7681_v42 = vrot.slane %v7328_v53, 7  ;;  %v7781_v10 = vsel %vm1627_vm7, %v7328_v53, %v7780_v12  ;;  %v7881_v51 = vrot.slane %v7328_v53, 1  ;;  %v7981_v29 = vrot.slane %v7328_v53, 2  ;;  %v9279_v46 = vpop.f32.mrb[145].mxu1 }
 0x70b   :  { %v7783_v32 = vsel %vm1630_vm8, %v7782_v17, %v7781_v10  ;;  %v7331_v21 = vpop.f32.mrb[146].mxu1  ;;  %v7457_v3 = vpop.f32.mrb[160].mxu0 }
 0x70c   :  { %v7682_v44 = vsel %vm1627_vm7, %v7681_v42, %v7285_v24  ;;  %v7882_v60 = vsel %vm1627_vm7, %v7881_v51, %v7880_v41  ;;  %v9280_v58 = vpop.f32.mrb[147].mxu1  ;;  %v9303_v34 = vpop.f32.mrb[161].mxu0  ;;  %v7982_v19 = vsel %vm1627_vm7, %v7981_v29, %v7980_v0  ;;  %v7986_v39 = vrot.slane %v7457_v3, 7 }
 0x70d   :  { %v7460_v31 = vpop.f32.mrb[162].mxu0  ;;  %v7684_v8 = vsel %vm1630_vm8, %v7683_v16, %v7682_v44  ;;  %v7883_v38 = vsel %vm1630_vm8, %v7371_v22, %v7882_v60  ;;  %v7984_v52 = vsel %vm1630_vm8, %v7983_v11, %v7982_v19  ;;  %v7687_v27 = vrot.slane %v7457_v3, 4 }
 0x70e   :  { %v9304_v63 = vpop.f32.mrb[163].mxu0  ;;  %v7786_v36 = vrot.slane %v7457_v3, 5  ;;  %v7886_v7 = vrot.slane %v7457_v3, 6 }
 0x711   :  { %v7414_v26 = vpop.f32.mrb[148].mxu1 }
 0x712   :  { %v7685_v35 = vrot.slane %v7414_v26, 5  ;;  %v7784_v5 = vrot.slane %v7414_v26, 6  ;;  %v7884_v24 = vrot.slane %v7414_v26, 7  ;;  %v7985_v49 = vsel %vm1633_vm9, %v7414_v26, %v7984_v52  ;;  %v9295_v33 = vpop.f32.mrb[149].mxu1 }
 0x713   :  { %v7987_v25 = vsel %vm1636_vm10, %v7986_v39, %v7985_v49  ;;  %v7417_v55 = vpop.f32.mrb[150].mxu1  ;;  %v7543_v13 = vpop.f32.mrb[164].mxu0 }
 0x714   :  { %v7686_v50 = vsel %vm1633_vm9, %v7685_v35, %v7684_v8  ;;  %v7785_v22 = vsel %vm1633_vm9, %v7784_v5, %v7783_v32  ;;  %v7885_v47 = vsel %vm1633_vm9, %v7884_v24, %v7883_v38  ;;  %v9296_v40 = vpop.f32.mrb[151].mxu1  ;;  %v9319_v43 = vpop.f32.mrb[165].mxu0  ;;  %v7691_v32 = vrot.slane %v7543_v13, 2 }
 0x715   :  { %v7546_v23 = vpop.f32.mrb[166].mxu0  ;;  %v7787_v12 = vsel %vm1636_vm10, %v7786_v36, %v7785_v22  ;;  %v7688_v17 = vsel %vm1636_vm10, %v7687_v27, %v7686_v50  ;;  %v7887_v53 = vsel %vm1636_vm10, %v7886_v7, %v7885_v47  ;;  %v7790_v21 = vrot.slane %v7543_v13, 3 }
 0x716   :  { %v9320_v41 = vpop.f32.mrb[167].mxu0  ;;  %v7990_v44 = vrot.slane %v7543_v13, 5  ;;  %v7890_v11 = vrot.slane %v7543_v13, 4  ;;  %v9843_v13 = vpop.eup %9842 }
 0x717   :  { %v9845_v22 = vpop.eup %9844 }
 0x718   :  { %v9847_v23 = vpop.eup %9846 }
 0x719   :  { %v7500_v42 = vpop.f32.mrb[152].mxu1 }
 0x71a   :  { %v7689_v10 = vrot.slane %v7500_v42, 3  ;;  %v7788_v51 = vrot.slane %v7500_v42, 4  ;;  %v7888_v29 = vrot.slane %v7500_v42, 5  ;;  %v7988_v46 = vrot.slane %v7500_v42, 6  ;;  %v9311_v16 = vpop.f32.mrb[153].mxu1 }
 0x71b   :  { %v7503_v3 = vpop.f32.mrb[154].mxu1  ;;  %v12674_v0 = vpop.f32.mrb[168].mxu0 }
 0x71c   :  { %v9312_v60 = vpop.f32.mrb[155].mxu1  ;;  %v9335_v58 = vpop.f32.mrb[169].mxu0  ;;  %v7789_v9 = vsel %vm1639_vm11, %v7788_v51, %v7787_v12  ;;  %v7690_v34 = vsel %vm1639_vm11, %v7689_v10, %v7688_v17  ;;  %v7989_v38 = vsel %vm1639_vm11, %v7988_v46, %v7987_v25  ;;  %v7889_v19 = vsel %vm1639_vm11, %v7888_v29, %v7887_v53 }
 0x71d   :  { %v7632_v31 = vpop.f32.mrb[170].mxu0  ;;  %v7791_v8 = vsel %vm1642_vm12, %v7790_v21, %v7789_v9  ;;  %v7692_v6 = vsel %vm1642_vm12, %v7691_v32, %v7690_v34  ;;  %v7991_v4 = vsel %vm1642_vm12, %v7990_v44, %v7989_v38  ;;  %v7891_v52 = vsel %vm1642_vm12, %v7890_v11, %v7889_v19  ;;  %v9849_v17 = vpop.eup %9848 }
 0x71e   :  { %v9336_v63 = vpop.f32.mrb[171].mxu0  ;;  %v7794_v27 = vrot.slane %v12674_v0, 1  ;;  %v9851_v42 = vpop.eup %9850  ;;  %v7994_v46 = vrot.slane %v12674_v0, 3  ;;  %v7894_v38 = vrot.slane %v12674_v0, 2 }
 0x71f   :  { %v12918_v63 = vld [vmem:[#allocation31_spill] sm:$0xff] }
 0x721   :  { %v7586_v39 = vpop.f32.mrb[156].mxu1 }
 0x722   :  { %v7693_v26 = vrot.slane %v7586_v39, 1  ;;  %v7792_v35 = vrot.slane %v7586_v39, 2  ;;  %v7892_v5 = vrot.slane %v7586_v39, 3  ;;  %v7992_v24 = vrot.slane %v7586_v39, 4  ;;  %v9327_v49 = vpop.f32.mrb[157].mxu1 }
 0x723   :  { %v7589_v33 = vpop.f32.mrb[158].mxu1  ;;  %v9351_v36 = vpop.f32.mrb[172].mxu0 }
 0x724   :  { %v9328_v2 = vpop.f32.mrb[159].mxu1  ;;  %v7793_v25 = vsel %vm1645_vm13, %v7792_v35, %v7791_v8  ;;  %v7694_v37 = vsel %vm1645_vm13, %v7693_v26, %v7692_v6  ;;  %v7993_v20 = vsel %vm1645_vm13, %v7992_v24, %v7991_v4  ;;  %v7893_v55 = vsel %vm1645_vm13, %v7892_v5, %v7891_v52  ;;  %v7841_v50 = vpop.f32.mrb[173].mxu0 }
 0x725   :  { %v7850_v7 = vadd.f32 %v9351_v36, %v7794_v27  ;;  %v7842_v14 = vadd.f32 %v7841_v50, %v12645_v45  ;;  %v9352_v47 = vpop.f32.mrb[174].mxu0  ;;  %v9853_v45 = vpop.eup %9852  ;;  %v4246_v4 = vmul.f32 %v9841_v56, %v12918_v63 }
 0x726   :  { %v7844_v43 = vpop.f32.mrb[175].mxu0  ;;  %v9855_v3 = vpop.eup %9854 }
 0x727   :  { %v7860_v40 = vmul.f32 %v9845_v22, %v7850_v7  ;;  %v7856_v12 = vmul.f32 %v9843_v13, %v7842_v14  ;;  %v7845_v41 = vadd.f32 %v7844_v43, %v7793_v25 }
 0x729   :  { %v9343_v53 = vpop.f32.mrb[160].mxu1  ;;  %v7858_v28 = vmul.f32 %v9847_v23, %v7845_v41 }
 0x72a   :  { %v7750_v10 = vadd.f32 %v9343_v53, %v12674_v0  ;;  %v7741_v51 = vpop.f32.mrb[161].mxu1 }
 0x72b   :  { %v7742_v29 = vadd.f32 %v7741_v51, %v12648_v1  ;;  %v9344_v54 = vpop.f32.mrb[162].mxu1  ;;  %v9671_v16 = vpack.i.bf16 %v7858_v28, %v7856_v12  ;;  %v9367_v48 = vpop.f32.mrb[176].mxu0 }
 0x72c   :  { %v12704_v32 = vmul.f32 %v9853_v45, %v7750_v10  ;;  %v7744_v21 = vpop.f32.mrb[163].mxu1  ;;  %v8050_v61 = vadd.f32 %v9367_v48, %v7994_v46  ;;  %v8041_v58 = vpop.f32.mrb[177].mxu0 }
 0x72d   :  { %v7756_v44 = vmul.f32 %v9851_v42, %v7742_v29  ;;  %v7745_v60 = vadd.f32 %v7744_v21, %v7694_v37  ;;  %v8042_v9 = vadd.f32 %v8041_v58, %v12651_v30  ;;  %v9368_v34 = vpop.f32.mrb[178].mxu0  ;;  %9672 = vrot.lane.b32.xlu1 %v9671_v16, %s9893_s11  ;;  %v9857_v1 = vpop.eup %9856 }
 0x72e   :  { %v8060_v11 = vmul.f32 %v9849_v17, %v8050_v61  ;;  %v8044_v8 = vpop.f32.mrb[179].mxu0  ;;  %v9859_v19 = vpop.eup %9858 }
 0x72f   :  { %v7758_v31 = vmul.f32 %v9855_v3, %v7745_v60  ;;  %v8056_v18 = vmul.f32 %v9857_v1, %v8042_v9  ;;  %v8045_v6 = vadd.f32 %v8044_v8, %v7993_v20  ;;  %v9861_v35 = vpop.eup %9860  ;;  %v8414_v20 = vld [vmem:[%s12767_s3] ss:$0 sm:$0xff] }
 0x730   :  { %v9863_v49 = vpop.eup %9862 }
 0x731   :  { %v9359_v52 = vpop.f32.mrb[164].mxu1  ;;  %v8058_v39 = vmul.f32 %v9859_v19, %v8045_v6  ;;  %4366 = vrot.lane.b32.xlu1 %v4246_v4, %s9892_s10  ;;  %v9865_v0 = vpop.eup %9864 }
 0x732   :  { %v7950_v26 = vadd.f32 %v9359_v52, %v7894_v38  ;;  %v7941_v30 = vpop.f32.mrb[165].mxu1 }
 0x733   :  { %v7942_v5 = vadd.f32 %v7941_v30, %v12654_v59  ;;  %v9360_v24 = vpop.f32.mrb[166].mxu1  ;;  %v9676_v33 = vpack.i.bf16 %v8058_v39, %v8056_v18  ;;  %v4355_v59 = vpop.permute.xlu1 %4354 }
 0x734   :  { %v7960_v27 = vmul.f32 %v9861_v35, %v7950_v26  ;;  %v7944_v36 = vpop.f32.mrb[167].mxu1  ;;  %v4385_v51 = vsel %vm637_vm1, %v12603_v15, %v4355_v59 }
 0x735   :  { %v7956_v2 = vmul.f32 %v9863_v49, %v7942_v5  ;;  %v7945_v25 = vadd.f32 %v7944_v36, %v7893_v55  ;;  %9677 = vrot.lane.b32.xlu0 %v9676_v33, %s9891_s9  ;;  %8068 = vrot.lane.b32.xlu1 %v7860_v40, %s9893_s11 }
 0x737   :  { %v7958_v56 = vmul.f32 %v9865_v0, %v7945_v25 }
 0x739   :  { %v9681_v37 = vpack.i.bf16 %v7958_v56, %v7956_v2  ;;  %8092 = vrot.lane.b32.xlu1 %v8060_v11, %s9891_s9 }
 0x73b   :  { %9682 = vrot.lane.b32.xlu0 %v9681_v37, %s9892_s10 }
 0x73f   :  { %4378 = vrot.lane.b32.xlu0 %v12596_v57, %s9891_s9 }
 0x743   :  { %8080 = vrot.lane.b32.xlu0 %v7960_v27, %s9892_s10 }
 0x79f   :  { %v9673_v55 = vpop.permute.xlu1 %9672 }
 0x7a0   :  { %v9675_v43 = vunpack.i.h.bf16 %v9673_v55  ;;  %v9674_v23 = vunpack.i.l.bf16 %v9673_v55 }
 0x7a2   :  { %v8097_v53 = vsel %vm637_vm1, %v7756_v44, %v9674_v23  ;;  %v8098_v42 = vsel %vm637_vm1, %v7758_v31, %v9675_v43 }
 0x7a3   :  { %v4367_v40 = vpop.permute.xlu1 %4366 }
 0x7a4   :  { %v4389_v46 = vsel %vm4386_vm3, %v4385_v51, %v4367_v40 }
 0x7a5   :  { %v8203_v13 = vpop.f32.mrb[168].mxu1 }
 0x7a6   :  { %v8204_v7 = vadd.f32 %v8414_v20, %v8203_v13  ;;  %v9379_v50 = vpop.f32.mrb[169].mxu1 }
 0x7a7   :  { %v8206_v22 = vpop.f32.mrb[170].mxu1  ;;  %v9678_v47 = vpop.permute.xlu0 %9677 }
 0x7a8   :  { %8225 = vst.msk [vmem:[%s12768_s6] sm:$0xff] %vm80_vm0, %v8204_v7  ;;  %v8207_v14 = vadd.f32 %v8414_v20, %v8206_v22  ;;  %v9380_v57 = vpop.f32.mrb[171].mxu1  ;;  %v9680_v28 = vunpack.i.h.bf16 %v9678_v47  ;;  %v9679_v10 = vunpack.i.l.bf16 %v9678_v47  ;;  %v8069_v45 = vpop.permute.xlu1 %8068 }
 0x7a9   :  { %v8099_v58 = vsel %vm637_vm1, %v12704_v32, %v8069_v45  ;;  %vm8229_vm1 = vcmask 517120  }
 0x7aa   :  { %8226 = vst.msk [vmem:[%s12768_s6 + $0x8] sm:$0xff] %vm80_vm0, %v8207_v14 }
 0x7ac   :  { %v8093_v1 = vpop.permute.xlu1 %8092 }
 0x7ad   :  { %v9683_v12 = vpop.permute.xlu0 %9682 }
 0x7ae   :  { %v9685_v41 = vunpack.i.h.bf16 %v9683_v12  ;;  %v9684_v17 = vunpack.i.l.bf16 %v9683_v12 }
 0x7b0   :  { %v8101_v29 = vsel %vm4386_vm3, %v8098_v42, %v9685_v41  ;;  %v8100_v54 = vsel %vm4386_vm3, %v8097_v53, %v9684_v17 }
 0x7b1   :  { %v8103_v16 = vsel %vm4390_vm5, %v8100_v54, %v9679_v10  ;;  %v8104_v48 = vsel %vm4390_vm5, %v8101_v29, %v9680_v28  ;;  %v4379_v21 = vpop.permute.xlu0 %4378 }
 0x7b2   :  { %v8110_v3 = vrot.slane %v8104_v48, 7  ;;  %v4393_v44 = vsel %vm4390_vm5, %v4389_v46, %v4379_v21  ;;  %v8109_v61 = vrot.slane %v8103_v16, 7 }
 0x7b4   :  { %v8111_v60 = vsel %vm507_vm4, %v8109_v61, %v8110_v3  ;;  %v8117_v15 = vsel %vm507_vm4, %v4393_v44, %v8109_v61 }
 0x7b5   :  { %v8119_v9 = vpack.c.bf16 %v8111_v60, %v8117_v15  ;;  %v8081_v34 = vpop.permute.xlu0 %8080 }
 0x7b6   :  { %v8102_v11 = vsel %vm4386_vm3, %v8099_v58, %v8081_v34 }
 0x7b7   :  { %v8105_v31 = vsel %vm4390_vm5, %v8102_v11, %v8093_v1  ;;  %9382 = vmatmul.mubr.msk.bf16.gmra.mrb[172].mxu1 %vm80_vm0, %v8119_v9 }
 0x7b8   :  { %v8112_v8 = vrot.slane %v8105_v31, 7  ;;  %9385 = vmatprep.mubr.msk.bf16.mxu1 %vm9886_vm2, %v12840_v62 }
 0x7ba   :  { %v8113_v18 = vsel %vm507_vm4, %v8110_v3, %v8112_v8 }
 0x7bb   :  { %v8120_v6 = vpack.c.bf16 %v8113_v18, %v8113_v18 }
 0x7bf   :  { %9386 = vmatmul.mubr.msk.bf16.gmra.mrb[176].mxu1 %vm80_vm0, %v8120_v6 }
 0x88a   :  { %v8211_v38 = vpop.f32.mrb[172].mxu1 }
 0x88b   :  { %v8212_v32 = vadd.f32 %v8414_v20, %v8211_v38  ;;  %v9383_v63 = vpop.f32.mrb[173].mxu1 }
 0x88c   :  { %v8214_v4 = vpop.f32.mrb[174].mxu1 }
 0x88d   :  { %8227 = vst.msk [vmem:[%s12768_s6 + $0x10] sm:$0xff] %vm80_vm0, %v8212_v32  ;;  %v8215_v19 = vadd.f32 %v8414_v20, %v8214_v4  ;;  %v9384_v52 = vpop.f32.mrb[175].mxu1 }
 0x88f   :  { %8228 = vst.msk [vmem:[%s12768_s6 + $0x18] sm:$0xff] %vm80_vm0, %v8215_v19 }
 0x892   :  { %v8219_v62 = vpop.f32.mrb[176].mxu1 }
 0x893   :  { %v8220_v39 = vadd.f32 %v8414_v20, %v8219_v62  ;;  %v9387_v26 = vpop.f32.mrb[177].mxu1 }
 0x894   :  { %v8222_v30 = vpop.f32.mrb[178].mxu1 }
 0x895   :  { %8230 = vst.msk [vmem:[%s12768_s6 + $0x20] sm:$0x3] %vm8229_vm1, %v8220_v39  ;;  %v9388_v35 = vpop.f32.mrb[179].mxu1 }

</bundles_post_ra>
